<compile_context>
chip_gen: v7x
topology: tpu7x:2x2x1
jax: 0.10.0
libtpu: 0.0.40
codegen_flags: <defaults>
</compile_context>

<pallas_src>
import functools

import jax
import jax.numpy as jnp
from jax.experimental import pallas as pl
from jax.experimental.pallas import tpu as pltpu


# ----------------------------------------------------------------------------
# Fused conv3x3 + folded BN + ReLU kernel (optionally fused skip-add / upsample)
# ----------------------------------------------------------------------------
def _fused_conv_kernel(*args, H, W, C, H_out, W_out, stride, dil, res_mode,
                       pre_relu, heven, TH):
    """
    args layout (depending on res_mode):
      x_ref    : (1, H, W*C)            input feature map, lane-flat
      [r_ref]  : (1, H, W*C)            same-resolution residual   (res_mode="same")
      [r_ref]  : (1, h_lo, w_lo*C)      low-res residual            (res_mode="up")
      [my_ref] : (H, h_lo)              bilinear row-interp matrix  (res_mode="up")
      [rxb_ref]: (w_lo*C, W*C)          banded bilinear col-interp  (res_mode="up")
      b_ref    : (3, Wp*C, W_out*C)     banded conv weights (BN scale folded), bf16
      bias_ref : (1, W_out*C)           folded BN bias (tiled over W_out)
      o_ref    : (1, H_out, W_out*C)
      xp_ref   : VMEM scratch, zero-padded (parity-grouped for stride 2) image
    """
    i = 0
    x_ref = args[i]; i += 1
    r_ref = my_ref = rxb_ref = None
    if res_mode == "same":
        r_ref = args[i]; i += 1
    elif res_mode == "up":
        r_ref, my_ref, rxb_ref = args[i:i + 3]; i += 3
    b_ref, bias_ref, o_ref, xp_ref = args[i:i + 4]

    pad = dil                       # module invariant: padding == dilation
    Nout = W_out * C

    # ---- in-kernel zero padding: clear the scratch once per image ----------
    xp_ref[...] = jnp.zeros(xp_ref.shape, xp_ref.dtype)

    if stride == 1:
        # ---- fused residual / bilinear upsample / pre-ReLU ------------------
        xin = x_ref[0].astype(jnp.float32)                       # (H, W*C)
        if res_mode == "same":
            xin = xin + r_ref[0].astype(jnp.float32)
        elif res_mode == "up":
            r = r_ref[0].astype(jnp.float32)                     # (h_lo, w_lo*C)
            up = jnp.dot(my_ref[...], r,
                         preferred_element_type=jnp.float32)     # (H, w_lo*C)
            up = jnp.dot(up, rxb_ref[...],
                         preferred_element_type=jnp.float32)     # (H, W*C)
            xin = xin + up
        if pre_relu:
            xin = jnp.maximum(xin, 0.0)
        # one dense store into the interior of the padded scratch
        xp_ref[pl.ds(pad, H), pl.ds(pad * C, W * C)] = xin.astype(xp_ref.dtype)
    else:
        # stride-2: place padded rows grouped by parity so every ky tap of an
        # output-row block is one contiguous slab -> native stride-2, no
        # strided loads, no 4x over-compute.  (stride-2 convs have no residual)
        for h in range(H):                                       # static unroll
            p = h + pad
            row = (p // 2) if (p % 2 == 0) else (heven + p // 2)
            xp_ref[pl.ds(row, 1), pl.ds(pad * C, W * C)] = (
                x_ref[0, pl.ds(h, 1), :].astype(xp_ref.dtype))

    # ---- 3x3 conv as 3 banded MXU matmuls per output-row block --------------
    nblk = (H_out + TH - 1) // TH
    for blk in range(nblk):                                      # static
        h0 = blk * TH
        th = min(TH, H_out - h0)
        acc = jnp.zeros((th, Nout), jnp.float32)
        for ky in range(3):
            if stride == 1:
                rs = h0 + ky * dil
            else:
                rs = (h0, heven + h0, h0 + 1)[ky]
            a = xp_ref[pl.ds(rs, th), :].astype(jnp.bfloat16)    # (th, Wp*C)
            acc = acc + jnp.dot(a, b_ref[ky],
                                preferred_element_type=jnp.float32)
        y = jnp.maximum(acc + bias_ref[...], 0.0)                # BN bias + ReLU
        o_ref[0, pl.ds(h0, th), :] = y.astype(o_ref.dtype)       # lane-dense store


# ----------------------------------------------------------------------------
# Wrapper-side (static) weight preparation
# ----------------------------------------------------------------------------
def _interp_matrix(n_in, n_out):
    """(n_out, n_in) bilinear align_corners=True interpolation matrix."""
    if n_in == 1:
        return jnp.ones((n_out, 1), jnp.float32)
    if n_out == 1:
        return jnp.zeros((1, n_in), jnp.float32).at[0, 0].set(1.0)
    pos = jnp.arange(n_out, dtype=jnp.float32) * ((n_in - 1) / (n_out - 1))
    lo = jnp.minimum(jnp.floor(pos).astype(jnp.int32), n_in - 2)
    frac = pos - lo.astype(jnp.float32)
    m = (jax.nn.one_hot(lo, n_in, dtype=jnp.float32) * (1.0 - frac)[:, None]
         + jax.nn.one_hot(lo + 1, n_in, dtype=jnp.float32) * frac[:, None])
    return m


def _build_lane_interp(mx, C):
    """mx: (W, w_lo) column interp -> banded (w_lo*C, W*C) for lane-flat layout."""
    W, w_lo = mx.shape
    eye = jnp.eye(C, dtype=jnp.float32)
    return jnp.einsum('wv,cd->vcwd', mx, eye).reshape(w_lo * C, W * C)


def _build_banded_weight(w9, scale, W_out, Wp, stride, dil, C):
    """(3, Wp*C, W_out*C) banded conv weights; kx taps + column selection + BN
    scale folded in.  w9: (9, Cin, Cout), tap index ky*3+kx."""
    wf = (w9.reshape(3, 3, C, C) * scale[None, None, None, :]).astype(jnp.float32)
    cols = jnp.arange(W_out)
    sel = jnp.stack([jax.nn.one_hot(cols * stride + kx * dil, Wp,
                                    dtype=jnp.float32).T
                     for kx in range(3)])                         # (3, Wp, W_out)
    b = jnp.einsum('xpw,yxio->ypiwo', sel, wf).reshape(3, Wp * C, W_out * C)
    return b.astype(jnp.bfloat16)


# ----------------------------------------------------------------------------
# conv3x3_bn block wrapper
# ----------------------------------------------------------------------------
def conv_block(x_flat, layer, H, W, C, *, stride, dil, res=None, res_hw=None,
               pre_relu=False):
    """x_flat: (N, H, W*C) lane-flat f32.  Returns (N, H_out, W_out*C) f32."""
    w9, scale, bias = layer
    pad = dil
    H_out = (H - 1) // stride + 1
    W_out = (W - 1) // stride + 1
    Wp = W + 2 * pad
    N = x_flat.shape[0]

    B = _build_banded_weight(w9, scale, W_out, Wp, stride, dil, C)
    bias_row = jnp.tile(bias, W_out)[None, :].astype(jnp.float32)   # (1, W_out*C)

    if res is None:
        res_mode = "none"
    elif res_hw == (H, W):
        res_mode = "same"
    else:
        res_mode = "up"
    assert stride == 1 or res_mode == "none", "residual fusion only on stride-1"

    if stride == 1:
        heven, s_rows = 0, H + 2 * pad
    else:
        heven = H_out + 1
        s_rows = 2 * (H_out + 1)

    # row tile: whole image for small maps, halved until the A-slab is modest
    TH = H_out
    while TH > 8 and TH * Wp * C * 4 > (2 << 20):
        TH = (TH + 1) // 2

    in_specs = [pl.BlockSpec((1, H, W * C), lambda n: (n, 0, 0))]
    inputs = [x_flat]
    if res_mode == "same":
        in_specs.append(pl.BlockSpec((1, H, W * C), lambda n: (n, 0, 0)))
        inputs.append(res)
    elif res_mode == "up":
        h_lo, w_lo = res_hw
        my = _interp_matrix(h_lo, H)                                 # (H, h_lo)
        rxb = _build_lane_interp(_interp_matrix(w_lo, W), C)         # (w_lo*C, W*C)
        in_specs += [pl.BlockSpec((1, h_lo, w_lo * C), lambda n: (n, 0, 0)),
                     pl.BlockSpec((H, h_lo), lambda n: (0, 0)),
                     pl.BlockSpec((w_lo * C, W * C), lambda n: (0, 0))]
        inputs += [res, my, rxb]
    in_specs += [pl.BlockSpec((3, Wp * C, W_out * C), lambda n: (0, 0, 0)),
                 pl.BlockSpec((1, W_out * C), lambda n: (0, 0))]
    inputs += [B, bias_row]

    kern = functools.partial(
        _fused_conv_kernel, H=H, W=W, C=C, H_out=H_out, W_out=W_out,
        stride=stride, dil=dil, res_mode=res_mode, pre_relu=pre_relu,
        heven=heven, TH=TH)

    return pl.pallas_call(
        kern,
        out_shape=jax.ShapeDtypeStruct((N, H_out, W_out * C), jnp.float32),
        grid=(N,),
        in_specs=in_specs,
        out_specs=pl.BlockSpec((1, H_out, W_out * C), lambda n: (n, 0, 0)),
        scratch_shapes=[pltpu.VMEM((s_rows, Wp * C), jnp.float32)],
        compiler_params=pltpu.CompilerParams(
            dimension_semantics=("parallel",),
            vmem_limit_bytes=48 * 1024 * 1024),
    )(*inputs)


# ----------------------------------------------------------------------------
# Deterministic parameter init (synthetic; BN folded in inference mode)
# ----------------------------------------------------------------------------
def _init_conv_bn(key, c):
    kw, kg, kb = jax.random.split(key, 3)
    bound = 1.0 / jnp.sqrt(jnp.float32(c * 9))
    w = jax.random.uniform(kw, (9, c, c), jnp.float32, -bound, bound)
    gamma = 1.0 + 0.1 * jax.random.normal(kg, (c,), jnp.float32)
    beta = 0.1 * jax.random.normal(kb, (c,), jnp.float32)
    running_mean = jnp.zeros((c,), jnp.float32)
    running_var = jnp.ones((c,), jnp.float32)
    scale = gamma / jnp.sqrt(running_var + 1e-5)
    bias = beta - running_mean * scale
    return w, scale, bias


def init_usrm_params(key, channel):
    names = ["conv1", "conv2", "conv3", "conv_rev1", "conv_rev2", "conv_sum"]
    keys = jax.random.split(key, len(names))
    return {n: _init_conv_bn(k, channel) for n, k in zip(names, keys)}


# ----------------------------------------------------------------------------
# USRM forward
# ----------------------------------------------------------------------------
def usrm_forward(x_nchw, params):
    N, C, H, W = x_nchw.shape
    # NCHW -> lane-flat (N, H, W*C); the only layout conversions in the forward.
    x = jnp.transpose(x_nchw, (0, 2, 3, 1)).reshape(N, H, W * C)

    def down(n):
        return (n - 1) // 2 + 1

    y1 = conv_block(x, params["conv1"], H, W, C, stride=2, dil=1)        # H/2
    H1, W1 = down(H), down(W)
    y2 = conv_block(y1, params["conv2"], H1, W1, C, stride=2, dil=1)     # H/4
    H2, W2 = down(H1), down(W1)
    y3 = conv_block(y2, params["conv3"], H2, W2, C, stride=1, dil=2)     # H/4

    # conv_rev1( y2 + upsample(y3 -> y2 size) )   [same size -> fused add]
    y2r = conv_block(y2, params["conv_rev1"], H2, W2, C, stride=1, dil=1,
                     res=y3, res_hw=(H2, W2))
    # conv_rev2( y1 + upsample(y2r -> y1 size) )  [fused bilinear + add]
    y1r = conv_block(y1, params["conv_rev2"], H1, W1, C, stride=1, dil=1,
                     res=y2r, res_hw=(H2, W2))
    # conv_sum( relu(x + upsample(y1r -> x size)) )  [fused bilinear + add + relu]
    out = conv_block(x, params["conv_sum"], H, W, C, stride=1, dil=1,
                     res=y1r, res_hw=(H1, W1), pre_relu=True)

    return jnp.transpose(out.reshape(N, H, W, C), (0, 3, 1, 2))          # -> NCHW


if __name__ == "__main__":
    key = jax.random.PRNGKey(0)
    N, C, H, W = 2, 8, 16, 16

    pkey, xkey = jax.random.split(key)
    params = init_usrm_params(pkey, C)
    x = jax.random.normal(xkey, (N, C, H, W), jnp.float32)

    fwd = jax.jit(usrm_forward)
    out = jax.block_until_ready(fwd(x, params))

    assert out.shape == (N, C, H, W), out.shape
    assert out.dtype == jnp.float32
    assert bool(jnp.all(jnp.isfinite(out)))
    print("KERNEL_OK")
</pallas_src>

<mosaic_0001>
module attributes {stable_mosaic.version = 11 : i64} {
  func.func @_fused_conv_kernel(%arg0: i32, %arg1: memref<1x16x128xf32, #tpu.memory_space<vmem>>, %arg2: memref<3x144x64xbf16, #tpu.memory_space<vmem>>, %arg3: memref<1x64xf32, #tpu.memory_space<vmem>>, %arg4: memref<1x8x64xf32, #tpu.memory_space<vmem>>, %arg5: memref<18x144xf32, #tpu.memory_space<vmem>>) attributes {dimension_semantics = [#tpu.dimension_semantics<parallel>], iteration_bounds = array<i64: 2>, scalar_prefetch = 0 : i64, scratch_operands = 1 : i64, tpu.core_type = #tpu.core_type<tc>, window_params = [{transform_indices = @transform_0, window_bounds = array<i64: 1, 16, 128>}, {pipeline_mode = #tpu.pipeline_mode<synchronous>, transform_indices = @transform_1, window_bounds = array<i64: 3, 144, 64>}, {pipeline_mode = #tpu.pipeline_mode<synchronous>, transform_indices = @transform_2, window_bounds = array<i64: 1, 64>}, {transform_indices = @transform_3, window_bounds = array<i64: 1, 8, 64>}]} {
    %cst = arith.constant 0.000000e+00 : f32
    %0 = vector.broadcast %cst : f32 to vector<18x144xf32>
    %c0 = arith.constant 0 : index
    %c0_0 = arith.constant 0 : index
    %1 = vector.load %arg5[%c0, %c0_0] : memref<18x144xf32, #tpu.memory_space<vmem>>, vector<18x144xf32>
    tpu.vector_store %arg5[%c0, %c0_0], %0 {strides = array<i32>} : memref<18x144xf32, #tpu.memory_space<vmem>>, vector<18x144xf32>,
    %c0_1 = arith.constant 0 : index
    %c0_2 = arith.constant 0 : index
    %c0_3 = arith.constant 0 : index
    %2 = vector.load %arg1[%c0_1, %c0_2, %c0_3] : memref<1x16x128xf32, #tpu.memory_space<vmem>>, vector<1x1x128xf32>
    %3 = vector.shape_cast %2 : vector<1x1x128xf32> to vector<1x128xf32>
    %c9 = arith.constant 9 : index
    %c8 = arith.constant 8 : index
    %4 = vector.load %arg5[%c9, %c8] : memref<18x144xf32, #tpu.memory_space<vmem>>, vector<1x128xf32>
    tpu.vector_store %arg5[%c9, %c8], %3 {strides = array<i32>} : memref<18x144xf32, #tpu.memory_space<vmem>>, vector<1x128xf32>,
    %c0_4 = arith.constant 0 : index
    %c1 = arith.constant 1 : index
    %c0_5 = arith.constant 0 : index
    %5 = vector.load %arg1[%c0_4, %c1, %c0_5] : memref<1x16x128xf32, #tpu.memory_space<vmem>>, vector<1x1x128xf32>
    %6 = vector.shape_cast %5 : vector<1x1x128xf32> to vector<1x128xf32>
    %c1_6 = arith.constant 1 : index
    %c8_7 = arith.constant 8 : index
    %7 = vector.load %arg5[%c1_6, %c8_7] : memref<18x144xf32, #tpu.memory_space<vmem>>, vector<1x128xf32>
    tpu.vector_store %arg5[%c1_6, %c8_7], %6 {strides = array<i32>} : memref<18x144xf32, #tpu.memory_space<vmem>>, vector<1x128xf32>,
    %c0_8 = arith.constant 0 : index
    %c2 = arith.constant 2 : index
    %c0_9 = arith.constant 0 : index
    %8 = vector.load %arg1[%c0_8, %c2, %c0_9] : memref<1x16x128xf32, #tpu.memory_space<vmem>>, vector<1x1x128xf32>
    %9 = vector.shape_cast %8 : vector<1x1x128xf32> to vector<1x128xf32>
    %c10 = arith.constant 10 : index
    %c8_10 = arith.constant 8 : index
    %10 = vector.load %arg5[%c10, %c8_10] : memref<18x144xf32, #tpu.memory_space<vmem>>, vector<1x128xf32>
    tpu.vector_store %arg5[%c10, %c8_10], %9 {strides = array<i32>} : memref<18x144xf32, #tpu.memory_space<vmem>>, vector<1x128xf32>,
    %c0_11 = arith.constant 0 : index
    %c3 = arith.constant 3 : index
    %c0_12 = arith.constant 0 : index
    %11 = vector.load %arg1[%c0_11, %c3, %c0_12] : memref<1x16x128xf32, #tpu.memory_space<vmem>>, vector<1x1x128xf32>
    %12 = vector.shape_cast %11 : vector<1x1x128xf32> to vector<1x128xf32>
    %c2_13 = arith.constant 2 : index
    %c8_14 = arith.constant 8 : index
    %13 = vector.load %arg5[%c2_13, %c8_14] : memref<18x144xf32, #tpu.memory_space<vmem>>, vector<1x128xf32>
    tpu.vector_store %arg5[%c2_13, %c8_14], %12 {strides = array<i32>} : memref<18x144xf32, #tpu.memory_space<vmem>>, vector<1x128xf32>,
    %c0_15 = arith.constant 0 : index
    %c4 = arith.constant 4 : index
    %c0_16 = arith.constant 0 : index
    %14 = vector.load %arg1[%c0_15, %c4, %c0_16] : memref<1x16x128xf32, #tpu.memory_space<vmem>>, vector<1x1x128xf32>
    %15 = vector.shape_cast %14 : vector<1x1x128xf32> to vector<1x128xf32>
    %c11 = arith.constant 11 : index
    %c8_17 = arith.constant 8 : index
    %16 = vector.load %arg5[%c11, %c8_17] : memref<18x144xf32, #tpu.memory_space<vmem>>, vector<1x128xf32>
    tpu.vector_store %arg5[%c11, %c8_17], %15 {strides = array<i32>} : memref<18x144xf32, #tpu.memory_space<vmem>>, vector<1x128xf32>,
    %c0_18 = arith.constant 0 : index
    %c5 = arith.constant 5 : index
    %c0_19 = arith.constant 0 : index
    %17 = vector.load %arg1[%c0_18, %c5, %c0_19] : memref<1x16x128xf32, #tpu.memory_space<vmem>>, vector<1x1x128xf32>
    %18 = vector.shape_cast %17 : vector<1x1x128xf32> to vector<1x128xf32>
    %c3_20 = arith.constant 3 : index
    %c8_21 = arith.constant 8 : index
    %19 = vector.load %arg5[%c3_20, %c8_21] : memref<18x144xf32, #tpu.memory_space<vmem>>, vector<1x128xf32>
    tpu.vector_store %arg5[%c3_20, %c8_21], %18 {strides = array<i32>} : memref<18x144xf32, #tpu.memory_space<vmem>>, vector<1x128xf32>,
    %c0_22 = arith.constant 0 : index
    %c6 = arith.constant 6 : index
    %c0_23 = arith.constant 0 : index
    %20 = vector.load %arg1[%c0_22, %c6, %c0_23] : memref<1x16x128xf32, #tpu.memory_space<vmem>>, vector<1x1x128xf32>
    %21 = vector.shape_cast %20 : vector<1x1x128xf32> to vector<1x128xf32>
    %c12 = arith.constant 12 : index
    %c8_24 = arith.constant 8 : index
    %22 = vector.load %arg5[%c12, %c8_24] : memref<18x144xf32, #tpu.memory_space<vmem>>, vector<1x128xf32>
    tpu.vector_store %arg5[%c12, %c8_24], %21 {strides = array<i32>} : memref<18x144xf32, #tpu.memory_space<vmem>>, vector<1x128xf32>,
    %c0_25 = arith.constant 0 : index
    %c7 = arith.constant 7 : index
    %c0_26 = arith.constant 0 : index
    %23 = vector.load %arg1[%c0_25, %c7, %c0_26] : memref<1x16x128xf32, #tpu.memory_space<vmem>>, vector<1x1x128xf32>
    %24 = vector.shape_cast %23 : vector<1x1x128xf32> to vector<1x128xf32>
    %c4_27 = arith.constant 4 : index
    %c8_28 = arith.constant 8 : index
    %25 = vector.load %arg5[%c4_27, %c8_28] : memref<18x144xf32, #tpu.memory_space<vmem>>, vector<1x128xf32>
    tpu.vector_store %arg5[%c4_27, %c8_28], %24 {strides = array<i32>} : memref<18x144xf32, #tpu.memory_space<vmem>>, vector<1x128xf32>,
    %c0_29 = arith.constant 0 : index
    %c8_30 = arith.constant 8 : index
    %c0_31 = arith.constant 0 : index
    %26 = vector.load %arg1[%c0_29, %c8_30, %c0_31] : memref<1x16x128xf32, #tpu.memory_space<vmem>>, vector<1x1x128xf32>
    %27 = vector.shape_cast %26 : vector<1x1x128xf32> to vector<1x128xf32>
    %c13 = arith.constant 13 : index
    %c8_32 = arith.constant 8 : index
    %28 = vector.load %arg5[%c13, %c8_32] : memref<18x144xf32, #tpu.memory_space<vmem>>, vector<1x128xf32>
    tpu.vector_store %arg5[%c13, %c8_32], %27 {strides = array<i32>} : memref<18x144xf32, #tpu.memory_space<vmem>>, vector<1x128xf32>,
    %c0_33 = arith.constant 0 : index
    %c9_34 = arith.constant 9 : index
    %c0_35 = arith.constant 0 : index
    %29 = vector.load %arg1[%c0_33, %c9_34, %c0_35] : memref<1x16x128xf32, #tpu.memory_space<vmem>>, vector<1x1x128xf32>
    %30 = vector.shape_cast %29 : vector<1x1x128xf32> to vector<1x128xf32>
    %c5_36 = arith.constant 5 : index
    %c8_37 = arith.constant 8 : index
    %31 = vector.load %arg5[%c5_36, %c8_37] : memref<18x144xf32, #tpu.memory_space<vmem>>, vector<1x128xf32>
    tpu.vector_store %arg5[%c5_36, %c8_37], %30 {strides = array<i32>} : memref<18x144xf32, #tpu.memory_space<vmem>>, vector<1x128xf32>,
    %c0_38 = arith.constant 0 : index
    %c10_39 = arith.constant 10 : index
    %c0_40 = arith.constant 0 : index
    %32 = vector.load %arg1[%c0_38, %c10_39, %c0_40] : memref<1x16x128xf32, #tpu.memory_space<vmem>>, vector<1x1x128xf32>
    %33 = vector.shape_cast %32 : vector<1x1x128xf32> to vector<1x128xf32>
    %c14 = arith.constant 14 : index
    %c8_41 = arith.constant 8 : index
    %34 = vector.load %arg5[%c14, %c8_41] : memref<18x144xf32, #tpu.memory_space<vmem>>, vector<1x128xf32>
    tpu.vector_store %arg5[%c14, %c8_41], %33 {strides = array<i32>} : memref<18x144xf32, #tpu.memory_space<vmem>>, vector<1x128xf32>,
    %c0_42 = arith.constant 0 : index
    %c11_43 = arith.constant 11 : index
    %c0_44 = arith.constant 0 : index
    %35 = vector.load %arg1[%c0_42, %c11_43, %c0_44] : memref<1x16x128xf32, #tpu.memory_space<vmem>>, vector<1x1x128xf32>
    %36 = vector.shape_cast %35 : vector<1x1x128xf32> to vector<1x128xf32>
    %c6_45 = arith.constant 6 : index
    %c8_46 = arith.constant 8 : index
    %37 = vector.load %arg5[%c6_45, %c8_46] : memref<18x144xf32, #tpu.memory_space<vmem>>, vector<1x128xf32>
    tpu.vector_store %arg5[%c6_45, %c8_46], %36 {strides = array<i32>} : memref<18x144xf32, #tpu.memory_space<vmem>>, vector<1x128xf32>,
    %c0_47 = arith.constant 0 : index
    %c12_48 = arith.constant 12 : index
    %c0_49 = arith.constant 0 : index
    %38 = vector.load %arg1[%c0_47, %c12_48, %c0_49] : memref<1x16x128xf32, #tpu.memory_space<vmem>>, vector<1x1x128xf32>
    %39 = vector.shape_cast %38 : vector<1x1x128xf32> to vector<1x128xf32>
    %c15 = arith.constant 15 : index
    %c8_50 = arith.constant 8 : index
    %40 = vector.load %arg5[%c15, %c8_50] : memref<18x144xf32, #tpu.memory_space<vmem>>, vector<1x128xf32>
    tpu.vector_store %arg5[%c15, %c8_50], %39 {strides = array<i32>} : memref<18x144xf32, #tpu.memory_space<vmem>>, vector<1x128xf32>,
    %c0_51 = arith.constant 0 : index
    %c13_52 = arith.constant 13 : index
    %c0_53 = arith.constant 0 : index
    %41 = vector.load %arg1[%c0_51, %c13_52, %c0_53] : memref<1x16x128xf32, #tpu.memory_space<vmem>>, vector<1x1x128xf32>
    %42 = vector.shape_cast %41 : vector<1x1x128xf32> to vector<1x128xf32>
    %c7_54 = arith.constant 7 : index
    %c8_55 = arith.constant 8 : index
    %43 = vector.load %arg5[%c7_54, %c8_55] : memref<18x144xf32, #tpu.memory_space<vmem>>, vector<1x128xf32>
    tpu.vector_store %arg5[%c7_54, %c8_55], %42 {strides = array<i32>} : memref<18x144xf32, #tpu.memory_space<vmem>>, vector<1x128xf32>,
    %c0_56 = arith.constant 0 : index
    %c14_57 = arith.constant 14 : index
    %c0_58 = arith.constant 0 : index
    %44 = vector.load %arg1[%c0_56, %c14_57, %c0_58] : memref<1x16x128xf32, #tpu.memory_space<vmem>>, vector<1x1x128xf32>
    %45 = vector.shape_cast %44 : vector<1x1x128xf32> to vector<1x128xf32>
    %c16 = arith.constant 16 : index
    %c8_59 = arith.constant 8 : index
    %46 = vector.load %arg5[%c16, %c8_59] : memref<18x144xf32, #tpu.memory_space<vmem>>, vector<1x128xf32>
    tpu.vector_store %arg5[%c16, %c8_59], %45 {strides = array<i32>} : memref<18x144xf32, #tpu.memory_space<vmem>>, vector<1x128xf32>,
    %c0_60 = arith.constant 0 : index
    %c15_61 = arith.constant 15 : index
    %c0_62 = arith.constant 0 : index
    %47 = vector.load %arg1[%c0_60, %c15_61, %c0_62] : memref<1x16x128xf32, #tpu.memory_space<vmem>>, vector<1x1x128xf32>
    %48 = vector.shape_cast %47 : vector<1x1x128xf32> to vector<1x128xf32>
    %c8_63 = arith.constant 8 : index
    %c8_64 = arith.constant 8 : index
    %49 = vector.load %arg5[%c8_63, %c8_64] : memref<18x144xf32, #tpu.memory_space<vmem>>, vector<1x128xf32>
    tpu.vector_store %arg5[%c8_63, %c8_64], %48 {strides = array<i32>} : memref<18x144xf32, #tpu.memory_space<vmem>>, vector<1x128xf32>,
    %cst_65 = arith.constant 0.000000e+00 : f32
    %50 = vector.broadcast %cst_65 : f32 to vector<8x64xf32>
    %c0_66 = arith.constant 0 : index
    %c0_67 = arith.constant 0 : index
    %51 = vector.load %arg5[%c0_66, %c0_67] : memref<18x144xf32, #tpu.memory_space<vmem>>, vector<8x144xf32>
    %52 = arith.truncf %51 : vector<8x144xf32> to vector<8x144xbf16>
    %c0_68 = arith.constant 0 : index
    %c0_69 = arith.constant 0 : index
    %c0_70 = arith.constant 0 : index
    %53 = vector.load %arg2[%c0_68, %c0_69, %c0_70] : memref<3x144x64xbf16, #tpu.memory_space<vmem>>, vector<1x144x64xbf16>
    %54 = vector.shape_cast %53 : vector<1x144x64xbf16> to vector<144x64xbf16>
    %cst_71 = arith.constant dense<0.000000e+00> : vector<8x64xf32>
    %55 = tpu.matmul %52, %54, %cst_71 {dimension_numbers = #tpu.dot_dimension_numbers<[1], [0], [0], [1], [0, 0, 1, 1], [], []>} : vector<8x144xbf16>, vector<144x64xbf16>, vector<8x64xf32> -> vector<8x64xf32>
    %56 = arith.addf %50, %55 : vector<8x64xf32>
    %c9_72 = arith.constant 9 : index
    %c0_73 = arith.constant 0 : index
    %57 = vector.load %arg5[%c9_72, %c0_73] : memref<18x144xf32, #tpu.memory_space<vmem>>, vector<8x144xf32>
    %58 = arith.truncf %57 : vector<8x144xf32> to vector<8x144xbf16>
    %c1_74 = arith.constant 1 : index
    %c0_75 = arith.constant 0 : index
    %c0_76 = arith.constant 0 : index
    %59 = vector.load %arg2[%c1_74, %c0_75, %c0_76] : memref<3x144x64xbf16, #tpu.memory_space<vmem>>, vector<1x144x64xbf16>
    %60 = vector.shape_cast %59 : vector<1x144x64xbf16> to vector<144x64xbf16>
    %cst_77 = arith.constant dense<0.000000e+00> : vector<8x64xf32>
    %61 = tpu.matmul %58, %60, %cst_77 {dimension_numbers = #tpu.dot_dimension_numbers<[1], [0], [0], [1], [0, 0, 1, 1], [], []>} : vector<8x144xbf16>, vector<144x64xbf16>, vector<8x64xf32> -> vector<8x64xf32>
    %62 = arith.addf %56, %61 : vector<8x64xf32>
    %c1_78 = arith.constant 1 : index
    %c0_79 = arith.constant 0 : index
    %63 = vector.load %arg5[%c1_78, %c0_79] : memref<18x144xf32, #tpu.memory_space<vmem>>, vector<8x144xf32>
    %64 = arith.truncf %63 : vector<8x144xf32> to vector<8x144xbf16>
    %c2_80 = arith.constant 2 : index
    %c0_81 = arith.constant 0 : index
    %c0_82 = arith.constant 0 : index
    %65 = vector.load %arg2[%c2_80, %c0_81, %c0_82] : memref<3x144x64xbf16, #tpu.memory_space<vmem>>, vector<1x144x64xbf16>
    %66 = vector.shape_cast %65 : vector<1x144x64xbf16> to vector<144x64xbf16>
    %cst_83 = arith.constant dense<0.000000e+00> : vector<8x64xf32>
    %67 = tpu.matmul %64, %66, %cst_83 {dimension_numbers = #tpu.dot_dimension_numbers<[1], [0], [0], [1], [0, 0, 1, 1], [], []>} : vector<8x144xbf16>, vector<144x64xbf16>, vector<8x64xf32> -> vector<8x64xf32>
    %68 = arith.addf %62, %67 : vector<8x64xf32>
    %c0_84 = arith.constant 0 : index
    %c0_85 = arith.constant 0 : index
    %69 = vector.load %arg3[%c0_84, %c0_85] : memref<1x64xf32, #tpu.memory_space<vmem>>, vector<1x64xf32>
    %70 = vector.broadcast %69 : vector<1x64xf32> to vector<8x64xf32>
    %71 = arith.addf %68, %70 : vector<8x64xf32>
    %cst_86 = arith.constant 0.000000e+00 : f32
    %72 = vector.broadcast %cst_86 : f32 to vector<8x64xf32>
    %73 = arith.maximumf %71, %72 : vector<8x64xf32>
    %c0_87 = arith.constant 0 : index
    %c0_88 = arith.constant 0 : index
    %c0_89 = arith.constant 0 : index
    %74 = vector.load %arg4[%c0_87, %c0_88, %c0_89] : memref<1x8x64xf32, #tpu.memory_space<vmem>>, vector<1x8x64xf32>
    %75 = vector.shape_cast %74 : vector<1x8x64xf32> to vector<8x64xf32>
    %76 = vector.shape_cast %73 : vector<8x64xf32> to vector<1x8x64xf32>
    tpu.vector_store %arg4[%c0_87, %c0_88, %c0_89], %76 {strides = array<i32>} : memref<1x8x64xf32, #tpu.memory_space<vmem>>, vector<1x8x64xf32>,
    return
  }
  func.func @transform_0(%arg0: i32) -> (i32, i32, i32) {
    %c0_i32 = arith.constant 0 : i32
    %c0_i32_0 = arith.constant 0 : i32
    %c0_i32_1 = arith.constant 0 : i32
    return %arg0, %c0_i32, %c0_i32_0 : i32, i32, i32
  }
  func.func @transform_1(%arg0: i32) -> (i32, i32, i32) {
    %c0_i32 = arith.constant 0 : i32
    %c0_i32_0 = arith.constant 0 : i32
    %c0_i32_1 = arith.constant 0 : i32
    %c0_i32_2 = arith.constant 0 : i32
    return %c0_i32, %c0_i32_0, %c0_i32_1 : i32, i32, i32
  }
  func.func @transform_2(%arg0: i32) -> (i32, i32) {
    %c0_i32 = arith.constant 0 : i32
    %c0_i32_0 = arith.constant 0 : i32
    %c0_i32_1 = arith.constant 0 : i32
    return %c0_i32, %c0_i32_0 : i32, i32
  }
  func.func @transform_3(%arg0: i32) -> (i32, i32, i32) {
    %c0_i32 = arith.constant 0 : i32
    %c0_i32_0 = arith.constant 0 : i32
    %c0_i32_1 = arith.constant 0 : i32
    return %arg0, %c0_i32, %c0_i32_0 : i32, i32, i32
  }
}

module attributes {stable_mosaic.version = 11 : i64} {
  func.func @_fused_conv_kernel(%arg0: i32, %arg1: memref<1x8x64xf32, #tpu.memory_space<vmem>>, %arg2: memref<3x80x32xbf16, #tpu.memory_space<vmem>>, %arg3: memref<1x32xf32, #tpu.memory_space<vmem>>, %arg4: memref<1x4x32xf32, #tpu.memory_space<vmem>>, %arg5: memref<10x80xf32, #tpu.memory_space<vmem>>) attributes {dimension_semantics = [#tpu.dimension_semantics<parallel>], iteration_bounds = array<i64: 2>, scalar_prefetch = 0 : i64, scratch_operands = 1 : i64, tpu.core_type = #tpu.core_type<tc>, window_params = [{transform_indices = @transform_0, window_bounds = array<i64: 1, 8, 64>}, {pipeline_mode = #tpu.pipeline_mode<synchronous>, transform_indices = @transform_1, window_bounds = array<i64: 3, 80, 32>}, {pipeline_mode = #tpu.pipeline_mode<synchronous>, transform_indices = @transform_2, window_bounds = array<i64: 1, 32>}, {transform_indices = @transform_3, window_bounds = array<i64: 1, 4, 32>}]} {
    %cst = arith.constant 0.000000e+00 : f32
    %0 = vector.broadcast %cst : f32 to vector<10x80xf32>
    %c0 = arith.constant 0 : index
    %c0_0 = arith.constant 0 : index
    %1 = vector.load %arg5[%c0, %c0_0] : memref<10x80xf32, #tpu.memory_space<vmem>>, vector<10x80xf32>
    tpu.vector_store %arg5[%c0, %c0_0], %0 {strides = array<i32>} : memref<10x80xf32, #tpu.memory_space<vmem>>, vector<10x80xf32>,
    %c0_1 = arith.constant 0 : index
    %c0_2 = arith.constant 0 : index
    %c0_3 = arith.constant 0 : index
    %2 = vector.load %arg1[%c0_1, %c0_2, %c0_3] : memref<1x8x64xf32, #tpu.memory_space<vmem>>, vector<1x1x64xf32>
    %3 = vector.shape_cast %2 : vector<1x1x64xf32> to vector<1x64xf32>
    %c5 = arith.constant 5 : index
    %c8 = arith.constant 8 : index
    %4 = vector.load %arg5[%c5, %c8] : memref<10x80xf32, #tpu.memory_space<vmem>>, vector<1x64xf32>
    tpu.vector_store %arg5[%c5, %c8], %3 {strides = array<i32>} : memref<10x80xf32, #tpu.memory_space<vmem>>, vector<1x64xf32>,
    %c0_4 = arith.constant 0 : index
    %c1 = arith.constant 1 : index
    %c0_5 = arith.constant 0 : index
    %5 = vector.load %arg1[%c0_4, %c1, %c0_5] : memref<1x8x64xf32, #tpu.memory_space<vmem>>, vector<1x1x64xf32>
    %6 = vector.shape_cast %5 : vector<1x1x64xf32> to vector<1x64xf32>
    %c1_6 = arith.constant 1 : index
    %c8_7 = arith.constant 8 : index
    %7 = vector.load %arg5[%c1_6, %c8_7] : memref<10x80xf32, #tpu.memory_space<vmem>>, vector<1x64xf32>
    tpu.vector_store %arg5[%c1_6, %c8_7], %6 {strides = array<i32>} : memref<10x80xf32, #tpu.memory_space<vmem>>, vector<1x64xf32>,
    %c0_8 = arith.constant 0 : index
    %c2 = arith.constant 2 : index
    %c0_9 = arith.constant 0 : index
    %8 = vector.load %arg1[%c0_8, %c2, %c0_9] : memref<1x8x64xf32, #tpu.memory_space<vmem>>, vector<1x1x64xf32>
    %9 = vector.shape_cast %8 : vector<1x1x64xf32> to vector<1x64xf32>
    %c6 = arith.constant 6 : index
    %c8_10 = arith.constant 8 : index
    %10 = vector.load %arg5[%c6, %c8_10] : memref<10x80xf32, #tpu.memory_space<vmem>>, vector<1x64xf32>
    tpu.vector_store %arg5[%c6, %c8_10], %9 {strides = array<i32>} : memref<10x80xf32, #tpu.memory_space<vmem>>, vector<1x64xf32>,
    %c0_11 = arith.constant 0 : index
    %c3 = arith.constant 3 : index
    %c0_12 = arith.constant 0 : index
    %11 = vector.load %arg1[%c0_11, %c3, %c0_12] : memref<1x8x64xf32, #tpu.memory_space<vmem>>, vector<1x1x64xf32>
    %12 = vector.shape_cast %11 : vector<1x1x64xf32> to vector<1x64xf32>
    %c2_13 = arith.constant 2 : index
    %c8_14 = arith.constant 8 : index
    %13 = vector.load %arg5[%c2_13, %c8_14] : memref<10x80xf32, #tpu.memory_space<vmem>>, vector<1x64xf32>
    tpu.vector_store %arg5[%c2_13, %c8_14], %12 {strides = array<i32>} : memref<10x80xf32, #tpu.memory_space<vmem>>, vector<1x64xf32>,
    %c0_15 = arith.constant 0 : index
    %c4 = arith.constant 4 : index
    %c0_16 = arith.constant 0 : index
    %14 = vector.load %arg1[%c0_15, %c4, %c0_16] : memref<1x8x64xf32, #tpu.memory_space<vmem>>, vector<1x1x64xf32>
    %15 = vector.shape_cast %14 : vector<1x1x64xf32> to vector<1x64xf32>
    %c7 = arith.constant 7 : index
    %c8_17 = arith.constant 8 : index
    %16 = vector.load %arg5[%c7, %c8_17] : memref<10x80xf32, #tpu.memory_space<vmem>>, vector<1x64xf32>
    tpu.vector_store %arg5[%c7, %c8_17], %15 {strides = array<i32>} : memref<10x80xf32, #tpu.memory_space<vmem>>, vector<1x64xf32>,
    %c0_18 = arith.constant 0 : index
    %c5_19 = arith.constant 5 : index
    %c0_20 = arith.constant 0 : index
    %17 = vector.load %arg1[%c0_18, %c5_19, %c0_20] : memref<1x8x64xf32, #tpu.memory_space<vmem>>, vector<1x1x64xf32>
    %18 = vector.shape_cast %17 : vector<1x1x64xf32> to vector<1x64xf32>
    %c3_21 = arith.constant 3 : index
    %c8_22 = arith.constant 8 : index
    %19 = vector.load %arg5[%c3_21, %c8_22] : memref<10x80xf32, #tpu.memory_space<vmem>>, vector<1x64xf32>
    tpu.vector_store %arg5[%c3_21, %c8_22], %18 {strides = array<i32>} : memref<10x80xf32, #tpu.memory_space<vmem>>, vector<1x64xf32>,
    %c0_23 = arith.constant 0 : index
    %c6_24 = arith.constant 6 : index
    %c0_25 = arith.constant 0 : index
    %20 = vector.load %arg1[%c0_23, %c6_24, %c0_25] : memref<1x8x64xf32, #tpu.memory_space<vmem>>, vector<1x1x64xf32>
    %21 = vector.shape_cast %20 : vector<1x1x64xf32> to vector<1x64xf32>
    %c8_26 = arith.constant 8 : index
    %c8_27 = arith.constant 8 : index
    %22 = vector.load %arg5[%c8_26, %c8_27] : memref<10x80xf32, #tpu.memory_space<vmem>>, vector<1x64xf32>
    tpu.vector_store %arg5[%c8_26, %c8_27], %21 {strides = array<i32>} : memref<10x80xf32, #tpu.memory_space<vmem>>, vector<1x64xf32>,
    %c0_28 = arith.constant 0 : index
    %c7_29 = arith.constant 7 : index
    %c0_30 = arith.constant 0 : index
    %23 = vector.load %arg1[%c0_28, %c7_29, %c0_30] : memref<1x8x64xf32, #tpu.memory_space<vmem>>, vector<1x1x64xf32>
    %24 = vector.shape_cast %23 : vector<1x1x64xf32> to vector<1x64xf32>
    %c4_31 = arith.constant 4 : index
    %c8_32 = arith.constant 8 : index
    %25 = vector.load %arg5[%c4_31, %c8_32] : memref<10x80xf32, #tpu.memory_space<vmem>>, vector<1x64xf32>
    tpu.vector_store %arg5[%c4_31, %c8_32], %24 {strides = array<i32>} : memref<10x80xf32, #tpu.memory_space<vmem>>, vector<1x64xf32>,
    %cst_33 = arith.constant 0.000000e+00 : f32
    %26 = vector.broadcast %cst_33 : f32 to vector<4x32xf32>
    %c0_34 = arith.constant 0 : index
    %c0_35 = arith.constant 0 : index
    %27 = vector.load %arg5[%c0_34, %c0_35] : memref<10x80xf32, #tpu.memory_space<vmem>>, vector<4x80xf32>
    %28 = arith.truncf %27 : vector<4x80xf32> to vector<4x80xbf16>
    %c0_36 = arith.constant 0 : index
    %c0_37 = arith.constant 0 : index
    %c0_38 = arith.constant 0 : index
    %29 = vector.load %arg2[%c0_36, %c0_37, %c0_38] : memref<3x80x32xbf16, #tpu.memory_space<vmem>>, vector<1x80x32xbf16>
    %30 = vector.shape_cast %29 : vector<1x80x32xbf16> to vector<80x32xbf16>
    %cst_39 = arith.constant dense<0.000000e+00> : vector<4x32xf32>
    %31 = tpu.matmul %28, %30, %cst_39 {dimension_numbers = #tpu.dot_dimension_numbers<[1], [0], [0], [1], [0, 0, 1, 1], [], []>} : vector<4x80xbf16>, vector<80x32xbf16>, vector<4x32xf32> -> vector<4x32xf32>
    %32 = arith.addf %26, %31 : vector<4x32xf32>
    %c5_40 = arith.constant 5 : index
    %c0_41 = arith.constant 0 : index
    %33 = vector.load %arg5[%c5_40, %c0_41] : memref<10x80xf32, #tpu.memory_space<vmem>>, vector<4x80xf32>
    %34 = arith.truncf %33 : vector<4x80xf32> to vector<4x80xbf16>
    %c1_42 = arith.constant 1 : index
    %c0_43 = arith.constant 0 : index
    %c0_44 = arith.constant 0 : index
    %35 = vector.load %arg2[%c1_42, %c0_43, %c0_44] : memref<3x80x32xbf16, #tpu.memory_space<vmem>>, vector<1x80x32xbf16>
    %36 = vector.shape_cast %35 : vector<1x80x32xbf16> to vector<80x32xbf16>
    %cst_45 = arith.constant dense<0.000000e+00> : vector<4x32xf32>
    %37 = tpu.matmul %34, %36, %cst_45 {dimension_numbers = #tpu.dot_dimension_numbers<[1], [0], [0], [1], [0, 0, 1, 1], [], []>} : vector<4x80xbf16>, vector<80x32xbf16>, vector<4x32xf32> -> vector<4x32xf32>
    %38 = arith.addf %32, %37 : vector<4x32xf32>
    %c1_46 = arith.constant 1 : index
    %c0_47 = arith.constant 0 : index
    %39 = vector.load %arg5[%c1_46, %c0_47] : memref<10x80xf32, #tpu.memory_space<vmem>>, vector<4x80xf32>
    %40 = arith.truncf %39 : vector<4x80xf32> to vector<4x80xbf16>
    %c2_48 = arith.constant 2 : index
    %c0_49 = arith.constant 0 : index
    %c0_50 = arith.constant 0 : index
    %41 = vector.load %arg2[%c2_48, %c0_49, %c0_50] : memref<3x80x32xbf16, #tpu.memory_space<vmem>>, vector<1x80x32xbf16>
    %42 = vector.shape_cast %41 : vector<1x80x32xbf16> to vector<80x32xbf16>
    %cst_51 = arith.constant dense<0.000000e+00> : vector<4x32xf32>
    %43 = tpu.matmul %40, %42, %cst_51 {dimension_numbers = #tpu.dot_dimension_numbers<[1], [0], [0], [1], [0, 0, 1, 1], [], []>} : vector<4x80xbf16>, vector<80x32xbf16>, vector<4x32xf32> -> vector<4x32xf32>
    %44 = arith.addf %38, %43 : vector<4x32xf32>
    %c0_52 = arith.constant 0 : index
    %c0_53 = arith.constant 0 : index
    %45 = vector.load %arg3[%c0_52, %c0_53] : memref<1x32xf32, #tpu.memory_space<vmem>>, vector<1x32xf32>
    %46 = vector.broadcast %45 : vector<1x32xf32> to vector<4x32xf32>
    %47 = arith.addf %44, %46 : vector<4x32xf32>
    %cst_54 = arith.constant 0.000000e+00 : f32
    %48 = vector.broadcast %cst_54 : f32 to vector<4x32xf32>
    %49 = arith.maximumf %47, %48 : vector<4x32xf32>
    %c0_55 = arith.constant 0 : index
    %c0_56 = arith.constant 0 : index
    %c0_57 = arith.constant 0 : index
    %50 = vector.load %arg4[%c0_55, %c0_56, %c0_57] : memref<1x4x32xf32, #tpu.memory_space<vmem>>, vector<1x4x32xf32>
    %51 = vector.shape_cast %50 : vector<1x4x32xf32> to vector<4x32xf32>
    %52 = vector.shape_cast %49 : vector<4x32xf32> to vector<1x4x32xf32>
    tpu.vector_store %arg4[%c0_55, %c0_56, %c0_57], %52 {strides = array<i32>} : memref<1x4x32xf32, #tpu.memory_space<vmem>>, vector<1x4x32xf32>,
    return
  }
  func.func @transform_0(%arg0: i32) -> (i32, i32, i32) {
    %c0_i32 = arith.constant 0 : i32
    %c0_i32_0 = arith.constant 0 : i32
    %c0_i32_1 = arith.constant 0 : i32
    return %arg0, %c0_i32, %c0_i32_0 : i32, i32, i32
  }
  func.func @transform_1(%arg0: i32) -> (i32, i32, i32) {
    %c0_i32 = arith.constant 0 : i32
    %c0_i32_0 = arith.constant 0 : i32
    %c0_i32_1 = arith.constant 0 : i32
    %c0_i32_2 = arith.constant 0 : i32
    return %c0_i32, %c0_i32_0, %c0_i32_1 : i32, i32, i32
  }
  func.func @transform_2(%arg0: i32) -> (i32, i32) {
    %c0_i32 = arith.constant 0 : i32
    %c0_i32_0 = arith.constant 0 : i32
    %c0_i32_1 = arith.constant 0 : i32
    return %c0_i32, %c0_i32_0 : i32, i32
  }
  func.func @transform_3(%arg0: i32) -> (i32, i32, i32) {
    %c0_i32 = arith.constant 0 : i32
    %c0_i32_0 = arith.constant 0 : i32
    %c0_i32_1 = arith.constant 0 : i32
    return %arg0, %c0_i32, %c0_i32_0 : i32, i32, i32
  }
}

module attributes {stable_mosaic.version = 11 : i64} {
  func.func @_fused_conv_kernel(%arg0: i32, %arg1: memref<1x4x32xf32, #tpu.memory_space<vmem>>, %arg2: memref<3x64x32xbf16, #tpu.memory_space<vmem>>, %arg3: memref<1x32xf32, #tpu.memory_space<vmem>>, %arg4: memref<1x4x32xf32, #tpu.memory_space<vmem>>, %arg5: memref<8x64xf32, #tpu.memory_space<vmem>>) attributes {dimension_semantics = [#tpu.dimension_semantics<parallel>], iteration_bounds = array<i64: 2>, scalar_prefetch = 0 : i64, scratch_operands = 1 : i64, tpu.core_type = #tpu.core_type<tc>, window_params = [{transform_indices = @transform_0, window_bounds = array<i64: 1, 4, 32>}, {pipeline_mode = #tpu.pipeline_mode<synchronous>, transform_indices = @transform_1, window_bounds = array<i64: 3, 64, 32>}, {pipeline_mode = #tpu.pipeline_mode<synchronous>, transform_indices = @transform_2, window_bounds = array<i64: 1, 32>}, {transform_indices = @transform_3, window_bounds = array<i64: 1, 4, 32>}]} {
    %cst = arith.constant 0.000000e+00 : f32
    %0 = vector.broadcast %cst : f32 to vector<8x64xf32>
    %c0 = arith.constant 0 : index
    %c0_0 = arith.constant 0 : index
    %1 = vector.load %arg5[%c0, %c0_0] : memref<8x64xf32, #tpu.memory_space<vmem>>, vector<8x64xf32>
    tpu.vector_store %arg5[%c0, %c0_0], %0 {strides = array<i32>} : memref<8x64xf32, #tpu.memory_space<vmem>>, vector<8x64xf32>,
    %c0_1 = arith.constant 0 : index
    %c0_2 = arith.constant 0 : index
    %c0_3 = arith.constant 0 : index
    %2 = vector.load %arg1[%c0_1, %c0_2, %c0_3] : memref<1x4x32xf32, #tpu.memory_space<vmem>>, vector<1x4x32xf32>
    %3 = vector.shape_cast %2 : vector<1x4x32xf32> to vector<4x32xf32>
    %c2 = arith.constant 2 : index
    %c16 = arith.constant 16 : index
    %4 = vector.load %arg5[%c2, %c16] : memref<8x64xf32, #tpu.memory_space<vmem>>, vector<4x32xf32>
    tpu.vector_store %arg5[%c2, %c16], %3 {strides = array<i32>} : memref<8x64xf32, #tpu.memory_space<vmem>>, vector<4x32xf32>,
    %cst_4 = arith.constant 0.000000e+00 : f32
    %5 = vector.broadcast %cst_4 : f32 to vector<4x32xf32>
    %c0_5 = arith.constant 0 : index
    %c0_6 = arith.constant 0 : index
    %6 = vector.load %arg5[%c0_5, %c0_6] : memref<8x64xf32, #tpu.memory_space<vmem>>, vector<4x64xf32>
    %7 = arith.truncf %6 : vector<4x64xf32> to vector<4x64xbf16>
    %c0_7 = arith.constant 0 : index
    %c0_8 = arith.constant 0 : index
    %c0_9 = arith.constant 0 : index
    %8 = vector.load %arg2[%c0_7, %c0_8, %c0_9] : memref<3x64x32xbf16, #tpu.memory_space<vmem>>, vector<1x64x32xbf16>
    %9 = vector.shape_cast %8 : vector<1x64x32xbf16> to vector<64x32xbf16>
    %cst_10 = arith.constant dense<0.000000e+00> : vector<4x32xf32>
    %10 = tpu.matmul %7, %9, %cst_10 {dimension_numbers = #tpu.dot_dimension_numbers<[1], [0], [0], [1], [0, 0, 1, 1], [], []>} : vector<4x64xbf16>, vector<64x32xbf16>, vector<4x32xf32> -> vector<4x32xf32>
    %11 = arith.addf %5, %10 : vector<4x32xf32>
    %c2_11 = arith.constant 2 : index
    %c0_12 = arith.constant 0 : index
    %12 = vector.load %arg5[%c2_11, %c0_12] : memref<8x64xf32, #tpu.memory_space<vmem>>, vector<4x64xf32>
    %13 = arith.truncf %12 : vector<4x64xf32> to vector<4x64xbf16>
    %c1 = arith.constant 1 : index
    %c0_13 = arith.constant 0 : index
    %c0_14 = arith.constant 0 : index
    %14 = vector.load %arg2[%c1, %c0_13, %c0_14] : memref<3x64x32xbf16, #tpu.memory_space<vmem>>, vector<1x64x32xbf16>
    %15 = vector.shape_cast %14 : vector<1x64x32xbf16> to vector<64x32xbf16>
    %cst_15 = arith.constant dense<0.000000e+00> : vector<4x32xf32>
    %16 = tpu.matmul %13, %15, %cst_15 {dimension_numbers = #tpu.dot_dimension_numbers<[1], [0], [0], [1], [0, 0, 1, 1], [], []>} : vector<4x64xbf16>, vector<64x32xbf16>, vector<4x32xf32> -> vector<4x32xf32>
    %17 = arith.addf %11, %16 : vector<4x32xf32>
    %c4 = arith.constant 4 : index
    %c0_16 = arith.constant 0 : index
    %18 = vector.load %arg5[%c4, %c0_16] : memref<8x64xf32, #tpu.memory_space<vmem>>, vector<4x64xf32>
    %19 = arith.truncf %18 : vector<4x64xf32> to vector<4x64xbf16>
    %c2_17 = arith.constant 2 : index
    %c0_18 = arith.constant 0 : index
    %c0_19 = arith.constant 0 : index
    %20 = vector.load %arg2[%c2_17, %c0_18, %c0_19] : memref<3x64x32xbf16, #tpu.memory_space<vmem>>, vector<1x64x32xbf16>
    %21 = vector.shape_cast %20 : vector<1x64x32xbf16> to vector<64x32xbf16>
    %cst_20 = arith.constant dense<0.000000e+00> : vector<4x32xf32>
    %22 = tpu.matmul %19, %21, %cst_20 {dimension_numbers = #tpu.dot_dimension_numbers<[1], [0], [0], [1], [0, 0, 1, 1], [], []>} : vector<4x64xbf16>, vector<64x32xbf16>, vector<4x32xf32> -> vector<4x32xf32>
    %23 = arith.addf %17, %22 : vector<4x32xf32>
    %c0_21 = arith.constant 0 : index
    %c0_22 = arith.constant 0 : index
    %24 = vector.load %arg3[%c0_21, %c0_22] : memref<1x32xf32, #tpu.memory_space<vmem>>, vector<1x32xf32>
    %25 = vector.broadcast %24 : vector<1x32xf32> to vector<4x32xf32>
    %26 = arith.addf %23, %25 : vector<4x32xf32>
    %cst_23 = arith.constant 0.000000e+00 : f32
    %27 = vector.broadcast %cst_23 : f32 to vector<4x32xf32>
    %28 = arith.maximumf %26, %27 : vector<4x32xf32>
    %c0_24 = arith.constant 0 : index
    %c0_25 = arith.constant 0 : index
    %c0_26 = arith.constant 0 : index
    %29 = vector.load %arg4[%c0_24, %c0_25, %c0_26] : memref<1x4x32xf32, #tpu.memory_space<vmem>>, vector<1x4x32xf32>
    %30 = vector.shape_cast %29 : vector<1x4x32xf32> to vector<4x32xf32>
    %31 = vector.shape_cast %28 : vector<4x32xf32> to vector<1x4x32xf32>
    tpu.vector_store %arg4[%c0_24, %c0_25, %c0_26], %31 {strides = array<i32>} : memref<1x4x32xf32, #tpu.memory_space<vmem>>, vector<1x4x32xf32>,
    return
  }
  func.func @transform_0(%arg0: i32) -> (i32, i32, i32) {
    %c0_i32 = arith.constant 0 : i32
    %c0_i32_0 = arith.constant 0 : i32
    %c0_i32_1 = arith.constant 0 : i32
    return %arg0, %c0_i32, %c0_i32_0 : i32, i32, i32
  }
  func.func @transform_1(%arg0: i32) -> (i32, i32, i32) {
    %c0_i32 = arith.constant 0 : i32
    %c0_i32_0 = arith.constant 0 : i32
    %c0_i32_1 = arith.constant 0 : i32
    %c0_i32_2 = arith.constant 0 : i32
    return %c0_i32, %c0_i32_0, %c0_i32_1 : i32, i32, i32
  }
  func.func @transform_2(%arg0: i32) -> (i32, i32) {
    %c0_i32 = arith.constant 0 : i32
    %c0_i32_0 = arith.constant 0 : i32
    %c0_i32_1 = arith.constant 0 : i32
    return %c0_i32, %c0_i32_0 : i32, i32
  }
  func.func @transform_3(%arg0: i32) -> (i32, i32, i32) {
    %c0_i32 = arith.constant 0 : i32
    %c0_i32_0 = arith.constant 0 : i32
    %c0_i32_1 = arith.constant 0 : i32
    return %arg0, %c0_i32, %c0_i32_0 : i32, i32, i32
  }
}

module attributes {stable_mosaic.version = 11 : i64} {
  func.func @_fused_conv_kernel(%arg0: i32, %arg1: memref<1x4x32xf32, #tpu.memory_space<vmem>>, %arg2: memref<1x4x32xf32, #tpu.memory_space<vmem>>, %arg3: memref<3x48x32xbf16, #tpu.memory_space<vmem>>, %arg4: memref<1x32xf32, #tpu.memory_space<vmem>>, %arg5: memref<1x4x32xf32, #tpu.memory_space<vmem>>, %arg6: memref<6x48xf32, #tpu.memory_space<vmem>>) attributes {dimension_semantics = [#tpu.dimension_semantics<parallel>], iteration_bounds = array<i64: 2>, scalar_prefetch = 0 : i64, scratch_operands = 1 : i64, tpu.core_type = #tpu.core_type<tc>, window_params = [{transform_indices = @transform_0, window_bounds = array<i64: 1, 4, 32>}, {transform_indices = @transform_1, window_bounds = array<i64: 1, 4, 32>}, {pipeline_mode = #tpu.pipeline_mode<synchronous>, transform_indices = @transform_2, window_bounds = array<i64: 3, 48, 32>}, {pipeline_mode = #tpu.pipeline_mode<synchronous>, transform_indices = @transform_3, window_bounds = array<i64: 1, 32>}, {transform_indices = @transform_4, window_bounds = array<i64: 1, 4, 32>}]} {
    %cst = arith.constant 0.000000e+00 : f32
    %0 = vector.broadcast %cst : f32 to vector<6x48xf32>
    %c0 = arith.constant 0 : index
    %c0_0 = arith.constant 0 : index
    %1 = vector.load %arg6[%c0, %c0_0] : memref<6x48xf32, #tpu.memory_space<vmem>>, vector<6x48xf32>
    tpu.vector_store %arg6[%c0, %c0_0], %0 {strides = array<i32>} : memref<6x48xf32, #tpu.memory_space<vmem>>, vector<6x48xf32>,
    %c0_1 = arith.constant 0 : index
    %c0_2 = arith.constant 0 : index
    %c0_3 = arith.constant 0 : index
    %2 = vector.load %arg1[%c0_1, %c0_2, %c0_3] : memref<1x4x32xf32, #tpu.memory_space<vmem>>, vector<1x4x32xf32>
    %3 = vector.shape_cast %2 : vector<1x4x32xf32> to vector<4x32xf32>
    %c0_4 = arith.constant 0 : index
    %c0_5 = arith.constant 0 : index
    %c0_6 = arith.constant 0 : index
    %4 = vector.load %arg2[%c0_4, %c0_5, %c0_6] : memref<1x4x32xf32, #tpu.memory_space<vmem>>, vector<1x4x32xf32>
    %5 = vector.shape_cast %4 : vector<1x4x32xf32> to vector<4x32xf32>
    %6 = arith.addf %3, %5 : vector<4x32xf32>
    %c1 = arith.constant 1 : index
    %c8 = arith.constant 8 : index
    %7 = vector.load %arg6[%c1, %c8] : memref<6x48xf32, #tpu.memory_space<vmem>>, vector<4x32xf32>
    tpu.vector_store %arg6[%c1, %c8], %6 {strides = array<i32>} : memref<6x48xf32, #tpu.memory_space<vmem>>, vector<4x32xf32>,
    %cst_7 = arith.constant 0.000000e+00 : f32
    %8 = vector.broadcast %cst_7 : f32 to vector<4x32xf32>
    %c0_8 = arith.constant 0 : index
    %c0_9 = arith.constant 0 : index
    %9 = vector.load %arg6[%c0_8, %c0_9] : memref<6x48xf32, #tpu.memory_space<vmem>>, vector<4x48xf32>
    %10 = arith.truncf %9 : vector<4x48xf32> to vector<4x48xbf16>
    %c0_10 = arith.constant 0 : index
    %c0_11 = arith.constant 0 : index
    %c0_12 = arith.constant 0 : index
    %11 = vector.load %arg3[%c0_10, %c0_11, %c0_12] : memref<3x48x32xbf16, #tpu.memory_space<vmem>>, vector<1x48x32xbf16>
    %12 = vector.shape_cast %11 : vector<1x48x32xbf16> to vector<48x32xbf16>
    %cst_13 = arith.constant dense<0.000000e+00> : vector<4x32xf32>
    %13 = tpu.matmul %10, %12, %cst_13 {dimension_numbers = #tpu.dot_dimension_numbers<[1], [0], [0], [1], [0, 0, 1, 1], [], []>} : vector<4x48xbf16>, vector<48x32xbf16>, vector<4x32xf32> -> vector<4x32xf32>
    %14 = arith.addf %8, %13 : vector<4x32xf32>
    %c1_14 = arith.constant 1 : index
    %c0_15 = arith.constant 0 : index
    %15 = vector.load %arg6[%c1_14, %c0_15] : memref<6x48xf32, #tpu.memory_space<vmem>>, vector<4x48xf32>
    %16 = arith.truncf %15 : vector<4x48xf32> to vector<4x48xbf16>
    %c1_16 = arith.constant 1 : index
    %c0_17 = arith.constant 0 : index
    %c0_18 = arith.constant 0 : index
    %17 = vector.load %arg3[%c1_16, %c0_17, %c0_18] : memref<3x48x32xbf16, #tpu.memory_space<vmem>>, vector<1x48x32xbf16>
    %18 = vector.shape_cast %17 : vector<1x48x32xbf16> to vector<48x32xbf16>
    %cst_19 = arith.constant dense<0.000000e+00> : vector<4x32xf32>
    %19 = tpu.matmul %16, %18, %cst_19 {dimension_numbers = #tpu.dot_dimension_numbers<[1], [0], [0], [1], [0, 0, 1, 1], [], []>} : vector<4x48xbf16>, vector<48x32xbf16>, vector<4x32xf32> -> vector<4x32xf32>
    %20 = arith.addf %14, %19 : vector<4x32xf32>
    %c2 = arith.constant 2 : index
    %c0_20 = arith.constant 0 : index
    %21 = vector.load %arg6[%c2, %c0_20] : memref<6x48xf32, #tpu.memory_space<vmem>>, vector<4x48xf32>
    %22 = arith.truncf %21 : vector<4x48xf32> to vector<4x48xbf16>
    %c2_21 = arith.constant 2 : index
    %c0_22 = arith.constant 0 : index
    %c0_23 = arith.constant 0 : index
    %23 = vector.load %arg3[%c2_21, %c0_22, %c0_23] : memref<3x48x32xbf16, #tpu.memory_space<vmem>>, vector<1x48x32xbf16>
    %24 = vector.shape_cast %23 : vector<1x48x32xbf16> to vector<48x32xbf16>
    %cst_24 = arith.constant dense<0.000000e+00> : vector<4x32xf32>
    %25 = tpu.matmul %22, %24, %cst_24 {dimension_numbers = #tpu.dot_dimension_numbers<[1], [0], [0], [1], [0, 0, 1, 1], [], []>} : vector<4x48xbf16>, vector<48x32xbf16>, vector<4x32xf32> -> vector<4x32xf32>
    %26 = arith.addf %20, %25 : vector<4x32xf32>
    %c0_25 = arith.constant 0 : index
    %c0_26 = arith.constant 0 : index
    %27 = vector.load %arg4[%c0_25, %c0_26] : memref<1x32xf32, #tpu.memory_space<vmem>>, vector<1x32xf32>
    %28 = vector.broadcast %27 : vector<1x32xf32> to vector<4x32xf32>
    %29 = arith.addf %26, %28 : vector<4x32xf32>
    %cst_27 = arith.constant 0.000000e+00 : f32
    %30 = vector.broadcast %cst_27 : f32 to vector<4x32xf32>
    %31 = arith.maximumf %29, %30 : vector<4x32xf32>
    %c0_28 = arith.constant 0 : index
    %c0_29 = arith.constant 0 : index
    %c0_30 = arith.constant 0 : index
    %32 = vector.load %arg5[%c0_28, %c0_29, %c0_30] : memref<1x4x32xf32, #tpu.memory_space<vmem>>, vector<1x4x32xf32>
    %33 = vector.shape_cast %32 : vector<1x4x32xf32> to vector<4x32xf32>
    %34 = vector.shape_cast %31 : vector<4x32xf32> to vector<1x4x32xf32>
    tpu.vector_store %arg5[%c0_28, %c0_29, %c0_30], %34 {strides = array<i32>} : memref<1x4x32xf32, #tpu.memory_space<vmem>>, vector<1x4x32xf32>,
    return
  }
  func.func @transform_0(%arg0: i32) -> (i32, i32, i32) {
    %c0_i32 = arith.constant 0 : i32
    %c0_i32_0 = arith.constant 0 : i32
    %c0_i32_1 = arith.constant 0 : i32
    return %arg0, %c0_i32, %c0_i32_0 : i32, i32, i32
  }
  func.func @transform_1(%arg0: i32) -> (i32, i32, i32) {
    %c0_i32 = arith.constant 0 : i32
    %c0_i32_0 = arith.constant 0 : i32
    %c0_i32_1 = arith.constant 0 : i32
    return %arg0, %c0_i32, %c0_i32_0 : i32, i32, i32
  }
  func.func @transform_2(%arg0: i32) -> (i32, i32, i32) {
    %c0_i32 = arith.constant 0 : i32
    %c0_i32_0 = arith.constant 0 : i32
    %c0_i32_1 = arith.constant 0 : i32
    %c0_i32_2 = arith.constant 0 : i32
    return %c0_i32, %c0_i32_0, %c0_i32_1 : i32, i32, i32
  }
  func.func @transform_3(%arg0: i32) -> (i32, i32) {
    %c0_i32 = arith.constant 0 : i32
    %c0_i32_0 = arith.constant 0 : i32
    %c0_i32_1 = arith.constant 0 : i32
    return %c0_i32, %c0_i32_0 : i32, i32
  }
  func.func @transform_4(%arg0: i32) -> (i32, i32, i32) {
    %c0_i32 = arith.constant 0 : i32
    %c0_i32_0 = arith.constant 0 : i32
    %c0_i32_1 = arith.constant 0 : i32
    return %arg0, %c0_i32, %c0_i32_0 : i32, i32, i32
  }
}

module attributes {stable_mosaic.version = 11 : i64} {
  func.func @_fused_conv_kernel(%arg0: i32, %arg1: memref<1x8x64xf32, #tpu.memory_space<vmem>>, %arg2: memref<1x4x32xf32, #tpu.memory_space<vmem>>, %arg3: memref<8x4xf32, #tpu.memory_space<vmem>>, %arg4: memref<32x64xf32, #tpu.memory_space<vmem>>, %arg5: memref<3x80x64xbf16, #tpu.memory_space<vmem>>, %arg6: memref<1x64xf32, #tpu.memory_space<vmem>>, %arg7: memref<1x8x64xf32, #tpu.memory_space<vmem>>, %arg8: memref<10x80xf32, #tpu.memory_space<vmem>>) attributes {dimension_semantics = [#tpu.dimension_semantics<parallel>], iteration_bounds = array<i64: 2>, scalar_prefetch = 0 : i64, scratch_operands = 1 : i64, tpu.core_type = #tpu.core_type<tc>, window_params = [{transform_indices = @transform_0, window_bounds = array<i64: 1, 8, 64>}, {transform_indices = @transform_1, window_bounds = array<i64: 1, 4, 32>}, {pipeline_mode = #tpu.pipeline_mode<synchronous>, transform_indices = @transform_2, window_bounds = array<i64: 8, 4>}, {pipeline_mode = #tpu.pipeline_mode<synchronous>, transform_indices = @transform_3, window_bounds = array<i64: 32, 64>}, {pipeline_mode = #tpu.pipeline_mode<synchronous>, transform_indices = @transform_4, window_bounds = array<i64: 3, 80, 64>}, {pipeline_mode = #tpu.pipeline_mode<synchronous>, transform_indices = @transform_5, window_bounds = array<i64: 1, 64>}, {transform_indices = @transform_6, window_bounds = array<i64: 1, 8, 64>}]} {
    %cst = arith.constant 0.000000e+00 : f32
    %0 = vector.broadcast %cst : f32 to vector<10x80xf32>
    %c0 = arith.constant 0 : index
    %c0_0 = arith.constant 0 : index
    %1 = vector.load %arg8[%c0, %c0_0] : memref<10x80xf32, #tpu.memory_space<vmem>>, vector<10x80xf32>
    tpu.vector_store %arg8[%c0, %c0_0], %0 {strides = array<i32>} : memref<10x80xf32, #tpu.memory_space<vmem>>, vector<10x80xf32>,
    %c0_1 = arith.constant 0 : index
    %c0_2 = arith.constant 0 : index
    %c0_3 = arith.constant 0 : index
    %2 = vector.load %arg1[%c0_1, %c0_2, %c0_3] : memref<1x8x64xf32, #tpu.memory_space<vmem>>, vector<1x8x64xf32>
    %3 = vector.shape_cast %2 : vector<1x8x64xf32> to vector<8x64xf32>
    %c0_4 = arith.constant 0 : index
    %c0_5 = arith.constant 0 : index
    %c0_6 = arith.constant 0 : index
    %4 = vector.load %arg2[%c0_4, %c0_5, %c0_6] : memref<1x4x32xf32, #tpu.memory_space<vmem>>, vector<1x4x32xf32>
    %5 = vector.shape_cast %4 : vector<1x4x32xf32> to vector<4x32xf32>
    %c0_7 = arith.constant 0 : index
    %c0_8 = arith.constant 0 : index
    %6 = vector.load %arg3[%c0_7, %c0_8] : memref<8x4xf32, #tpu.memory_space<vmem>>, vector<8x4xf32>
    %cst_9 = arith.constant dense<0.000000e+00> : vector<8x32xf32>
    %7 = tpu.matmul %6, %5, %cst_9 {dimension_numbers = #tpu.dot_dimension_numbers<[1], [0], [0], [1], [0, 0, 1, 1], [], []>} : vector<8x4xf32>, vector<4x32xf32>, vector<8x32xf32> -> vector<8x32xf32>
    %c0_10 = arith.constant 0 : index
    %c0_11 = arith.constant 0 : index
    %8 = vector.load %arg4[%c0_10, %c0_11] : memref<32x64xf32, #tpu.memory_space<vmem>>, vector<32x64xf32>
    %cst_12 = arith.constant dense<0.000000e+00> : vector<8x64xf32>
    %9 = tpu.matmul %7, %8, %cst_12 {dimension_numbers = #tpu.dot_dimension_numbers<[1], [0], [0], [1], [0, 0, 1, 1], [], []>} : vector<8x32xf32>, vector<32x64xf32>, vector<8x64xf32> -> vector<8x64xf32>
    %10 = arith.addf %3, %9 : vector<8x64xf32>
    %c1 = arith.constant 1 : index
    %c8 = arith.constant 8 : index
    %11 = vector.load %arg8[%c1, %c8] : memref<10x80xf32, #tpu.memory_space<vmem>>, vector<8x64xf32>
    tpu.vector_store %arg8[%c1, %c8], %10 {strides = array<i32>} : memref<10x80xf32, #tpu.memory_space<vmem>>, vector<8x64xf32>,
    %cst_13 = arith.constant 0.000000e+00 : f32
    %12 = vector.broadcast %cst_13 : f32 to vector<8x64xf32>
    %c0_14 = arith.constant 0 : index
    %c0_15 = arith.constant 0 : index
    %13 = vector.load %arg8[%c0_14, %c0_15] : memref<10x80xf32, #tpu.memory_space<vmem>>, vector<8x80xf32>
    %14 = arith.truncf %13 : vector<8x80xf32> to vector<8x80xbf16>
    %c0_16 = arith.constant 0 : index
    %c0_17 = arith.constant 0 : index
    %c0_18 = arith.constant 0 : index
    %15 = vector.load %arg5[%c0_16, %c0_17, %c0_18] : memref<3x80x64xbf16, #tpu.memory_space<vmem>>, vector<1x80x64xbf16>
    %16 = vector.shape_cast %15 : vector<1x80x64xbf16> to vector<80x64xbf16>
    %cst_19 = arith.constant dense<0.000000e+00> : vector<8x64xf32>
    %17 = tpu.matmul %14, %16, %cst_19 {dimension_numbers = #tpu.dot_dimension_numbers<[1], [0], [0], [1], [0, 0, 1, 1], [], []>} : vector<8x80xbf16>, vector<80x64xbf16>, vector<8x64xf32> -> vector<8x64xf32>
    %18 = arith.addf %12, %17 : vector<8x64xf32>
    %c1_20 = arith.constant 1 : index
    %c0_21 = arith.constant 0 : index
    %19 = vector.load %arg8[%c1_20, %c0_21] : memref<10x80xf32, #tpu.memory_space<vmem>>, vector<8x80xf32>
    %20 = arith.truncf %19 : vector<8x80xf32> to vector<8x80xbf16>
    %c1_22 = arith.constant 1 : index
    %c0_23 = arith.constant 0 : index
    %c0_24 = arith.constant 0 : index
    %21 = vector.load %arg5[%c1_22, %c0_23, %c0_24] : memref<3x80x64xbf16, #tpu.memory_space<vmem>>, vector<1x80x64xbf16>
    %22 = vector.shape_cast %21 : vector<1x80x64xbf16> to vector<80x64xbf16>
    %cst_25 = arith.constant dense<0.000000e+00> : vector<8x64xf32>
    %23 = tpu.matmul %20, %22, %cst_25 {dimension_numbers = #tpu.dot_dimension_numbers<[1], [0], [0], [1], [0, 0, 1, 1], [], []>} : vector<8x80xbf16>, vector<80x64xbf16>, vector<8x64xf32> -> vector<8x64xf32>
    %24 = arith.addf %18, %23 : vector<8x64xf32>
    %c2 = arith.constant 2 : index
    %c0_26 = arith.constant 0 : index
    %25 = vector.load %arg8[%c2, %c0_26] : memref<10x80xf32, #tpu.memory_space<vmem>>, vector<8x80xf32>
    %26 = arith.truncf %25 : vector<8x80xf32> to vector<8x80xbf16>
    %c2_27 = arith.constant 2 : index
    %c0_28 = arith.constant 0 : index
    %c0_29 = arith.constant 0 : index
    %27 = vector.load %arg5[%c2_27, %c0_28, %c0_29] : memref<3x80x64xbf16, #tpu.memory_space<vmem>>, vector<1x80x64xbf16>
    %28 = vector.shape_cast %27 : vector<1x80x64xbf16> to vector<80x64xbf16>
    %cst_30 = arith.constant dense<0.000000e+00> : vector<8x64xf32>
    %29 = tpu.matmul %26, %28, %cst_30 {dimension_numbers = #tpu.dot_dimension_numbers<[1], [0], [0], [1], [0, 0, 1, 1], [], []>} : vector<8x80xbf16>, vector<80x64xbf16>, vector<8x64xf32> -> vector<8x64xf32>
    %30 = arith.addf %24, %29 : vector<8x64xf32>
    %c0_31 = arith.constant 0 : index
    %c0_32 = arith.constant 0 : index
    %31 = vector.load %arg6[%c0_31, %c0_32] : memref<1x64xf32, #tpu.memory_space<vmem>>, vector<1x64xf32>
    %32 = vector.broadcast %31 : vector<1x64xf32> to vector<8x64xf32>
    %33 = arith.addf %30, %32 : vector<8x64xf32>
    %cst_33 = arith.constant 0.000000e+00 : f32
    %34 = vector.broadcast %cst_33 : f32 to vector<8x64xf32>
    %35 = arith.maximumf %33, %34 : vector<8x64xf32>
    %c0_34 = arith.constant 0 : index
    %c0_35 = arith.constant 0 : index
    %c0_36 = arith.constant 0 : index
    %36 = vector.load %arg7[%c0_34, %c0_35, %c0_36] : memref<1x8x64xf32, #tpu.memory_space<vmem>>, vector<1x8x64xf32>
    %37 = vector.shape_cast %36 : vector<1x8x64xf32> to vector<8x64xf32>
    %38 = vector.shape_cast %35 : vector<8x64xf32> to vector<1x8x64xf32>
    tpu.vector_store %arg7[%c0_34, %c0_35, %c0_36], %38 {strides = array<i32>} : memref<1x8x64xf32, #tpu.memory_space<vmem>>, vector<1x8x64xf32>,
    return
  }
  func.func @transform_0(%arg0: i32) -> (i32, i32, i32) {
    %c0_i32 = arith.constant 0 : i32
    %c0_i32_0 = arith.constant 0 : i32
    %c0_i32_1 = arith.constant 0 : i32
    return %arg0, %c0_i32, %c0_i32_0 : i32, i32, i32
  }
  func.func @transform_1(%arg0: i32) -> (i32, i32, i32) {
    %c0_i32 = arith.constant 0 : i32
    %c0_i32_0 = arith.constant 0 : i32
    %c0_i32_1 = arith.constant 0 : i32
    return %arg0, %c0_i32, %c0_i32_0 : i32, i32, i32
  }
  func.func @transform_2(%arg0: i32) -> (i32, i32) {
    %c0_i32 = arith.constant 0 : i32
    %c0_i32_0 = arith.constant 0 : i32
    %c0_i32_1 = arith.constant 0 : i32
    return %c0_i32, %c0_i32_0 : i32, i32
  }
  func.func @transform_3(%arg0: i32) -> (i32, i32) {
    %c0_i32 = arith.constant 0 : i32
    %c0_i32_0 = arith.constant 0 : i32
    %c0_i32_1 = arith.constant 0 : i32
    return %c0_i32, %c0_i32_0 : i32, i32
  }
  func.func @transform_4(%arg0: i32) -> (i32, i32, i32) {
    %c0_i32 = arith.constant 0 : i32
    %c0_i32_0 = arith.constant 0 : i32
    %c0_i32_1 = arith.constant 0 : i32
    %c0_i32_2 = arith.constant 0 : i32
    return %c0_i32, %c0_i32_0, %c0_i32_1 : i32, i32, i32
  }
  func.func @transform_5(%arg0: i32) -> (i32, i32) {
    %c0_i32 = arith.constant 0 : i32
    %c0_i32_0 = arith.constant 0 : i32
    %c0_i32_1 = arith.constant 0 : i32
    return %c0_i32, %c0_i32_0 : i32, i32
  }
  func.func @transform_6(%arg0: i32) -> (i32, i32, i32) {
    %c0_i32 = arith.constant 0 : i32
    %c0_i32_0 = arith.constant 0 : i32
    %c0_i32_1 = arith.constant 0 : i32
    return %arg0, %c0_i32, %c0_i32_0 : i32, i32, i32
  }
}

module attributes {stable_mosaic.version = 11 : i64} {
  func.func @_fused_conv_kernel(%arg0: i32, %arg1: memref<1x16x128xf32, #tpu.memory_space<vmem>>, %arg2: memref<1x8x64xf32, #tpu.memory_space<vmem>>, %arg3: memref<16x8xf32, #tpu.memory_space<vmem>>, %arg4: memref<64x128xf32, #tpu.memory_space<vmem>>, %arg5: memref<3x144x128xbf16, #tpu.memory_space<vmem>>, %arg6: memref<1x128xf32, #tpu.memory_space<vmem>>, %arg7: memref<1x16x128xf32, #tpu.memory_space<vmem>>, %arg8: memref<18x144xf32, #tpu.memory_space<vmem>>) attributes {dimension_semantics = [#tpu.dimension_semantics<parallel>], iteration_bounds = array<i64: 2>, scalar_prefetch = 0 : i64, scratch_operands = 1 : i64, tpu.core_type = #tpu.core_type<tc>, window_params = [{transform_indices = @transform_0, window_bounds = array<i64: 1, 16, 128>}, {transform_indices = @transform_1, window_bounds = array<i64: 1, 8, 64>}, {pipeline_mode = #tpu.pipeline_mode<synchronous>, transform_indices = @transform_2, window_bounds = array<i64: 16, 8>}, {pipeline_mode = #tpu.pipeline_mode<synchronous>, transform_indices = @transform_3, window_bounds = array<i64: 64, 128>}, {pipeline_mode = #tpu.pipeline_mode<synchronous>, transform_indices = @transform_4, window_bounds = array<i64: 3, 144, 128>}, {pipeline_mode = #tpu.pipeline_mode<synchronous>, transform_indices = @transform_5, window_bounds = array<i64: 1, 128>}, {transform_indices = @transform_6, window_bounds = array<i64: 1, 16, 128>}]} {
    %cst = arith.constant 0.000000e+00 : f32
    %0 = vector.broadcast %cst : f32 to vector<18x144xf32>
    %c0 = arith.constant 0 : index
    %c0_0 = arith.constant 0 : index
    %1 = vector.load %arg8[%c0, %c0_0] : memref<18x144xf32, #tpu.memory_space<vmem>>, vector<18x144xf32>
    tpu.vector_store %arg8[%c0, %c0_0], %0 {strides = array<i32>} : memref<18x144xf32, #tpu.memory_space<vmem>>, vector<18x144xf32>,
    %c0_1 = arith.constant 0 : index
    %c0_2 = arith.constant 0 : index
    %c0_3 = arith.constant 0 : index
    %2 = vector.load %arg1[%c0_1, %c0_2, %c0_3] : memref<1x16x128xf32, #tpu.memory_space<vmem>>, vector<1x16x128xf32>
    %3 = vector.shape_cast %2 : vector<1x16x128xf32> to vector<16x128xf32>
    %c0_4 = arith.constant 0 : index
    %c0_5 = arith.constant 0 : index
    %c0_6 = arith.constant 0 : index
    %4 = vector.load %arg2[%c0_4, %c0_5, %c0_6] : memref<1x8x64xf32, #tpu.memory_space<vmem>>, vector<1x8x64xf32>
    %5 = vector.shape_cast %4 : vector<1x8x64xf32> to vector<8x64xf32>
    %c0_7 = arith.constant 0 : index
    %c0_8 = arith.constant 0 : index
    %6 = vector.load %arg3[%c0_7, %c0_8] : memref<16x8xf32, #tpu.memory_space<vmem>>, vector<16x8xf32>
    %cst_9 = arith.constant dense<0.000000e+00> : vector<16x64xf32>
    %7 = tpu.matmul %6, %5, %cst_9 {dimension_numbers = #tpu.dot_dimension_numbers<[1], [0], [0], [1], [0, 0, 1, 1], [], []>} : vector<16x8xf32>, vector<8x64xf32>, vector<16x64xf32> -> vector<16x64xf32>
    %c0_10 = arith.constant 0 : index
    %c0_11 = arith.constant 0 : index
    %8 = vector.load %arg4[%c0_10, %c0_11] : memref<64x128xf32, #tpu.memory_space<vmem>>, vector<64x128xf32>
    %cst_12 = arith.constant dense<0.000000e+00> : vector<16x128xf32>
    %9 = tpu.matmul %7, %8, %cst_12 {dimension_numbers = #tpu.dot_dimension_numbers<[1], [0], [0], [1], [0, 0, 1, 1], [], []>} : vector<16x64xf32>, vector<64x128xf32>, vector<16x128xf32> -> vector<16x128xf32>
    %10 = arith.addf %3, %9 : vector<16x128xf32>
    %cst_13 = arith.constant 0.000000e+00 : f32
    %11 = vector.broadcast %cst_13 : f32 to vector<16x128xf32>
    %12 = arith.maximumf %10, %11 : vector<16x128xf32>
    %c1 = arith.constant 1 : index
    %c8 = arith.constant 8 : index
    %13 = vector.load %arg8[%c1, %c8] : memref<18x144xf32, #tpu.memory_space<vmem>>, vector<16x128xf32>
    tpu.vector_store %arg8[%c1, %c8], %12 {strides = array<i32>} : memref<18x144xf32, #tpu.memory_space<vmem>>, vector<16x128xf32>,
    %cst_14 = arith.constant 0.000000e+00 : f32
    %14 = vector.broadcast %cst_14 : f32 to vector<16x128xf32>
    %c0_15 = arith.constant 0 : index
    %c0_16 = arith.constant 0 : index
    %15 = vector.load %arg8[%c0_15, %c0_16] : memref<18x144xf32, #tpu.memory_space<vmem>>, vector<16x144xf32>
    %16 = arith.truncf %15 : vector<16x144xf32> to vector<16x144xbf16>
    %c0_17 = arith.constant 0 : index
    %c0_18 = arith.constant 0 : index
    %c0_19 = arith.constant 0 : index
    %17 = vector.load %arg5[%c0_17, %c0_18, %c0_19] : memref<3x144x128xbf16, #tpu.memory_space<vmem>>, vector<1x144x128xbf16>
    %18 = vector.shape_cast %17 : vector<1x144x128xbf16> to vector<144x128xbf16>
    %cst_20 = arith.constant dense<0.000000e+00> : vector<16x128xf32>
    %19 = tpu.matmul %16, %18, %cst_20 {dimension_numbers = #tpu.dot_dimension_numbers<[1], [0], [0], [1], [0, 0, 1, 1], [], []>} : vector<16x144xbf16>, vector<144x128xbf16>, vector<16x128xf32> -> vector<16x128xf32>
    %20 = arith.addf %14, %19 : vector<16x128xf32>
    %c1_21 = arith.constant 1 : index
    %c0_22 = arith.constant 0 : index
    %21 = vector.load %arg8[%c1_21, %c0_22] : memref<18x144xf32, #tpu.memory_space<vmem>>, vector<16x144xf32>
    %22 = arith.truncf %21 : vector<16x144xf32> to vector<16x144xbf16>
    %c1_23 = arith.constant 1 : index
    %c0_24 = arith.constant 0 : index
    %c0_25 = arith.constant 0 : index
    %23 = vector.load %arg5[%c1_23, %c0_24, %c0_25] : memref<3x144x128xbf16, #tpu.memory_space<vmem>>, vector<1x144x128xbf16>
    %24 = vector.shape_cast %23 : vector<1x144x128xbf16> to vector<144x128xbf16>
    %cst_26 = arith.constant dense<0.000000e+00> : vector<16x128xf32>
    %25 = tpu.matmul %22, %24, %cst_26 {dimension_numbers = #tpu.dot_dimension_numbers<[1], [0], [0], [1], [0, 0, 1, 1], [], []>} : vector<16x144xbf16>, vector<144x128xbf16>, vector<16x128xf32> -> vector<16x128xf32>
    %26 = arith.addf %20, %25 : vector<16x128xf32>
    %c2 = arith.constant 2 : index
    %c0_27 = arith.constant 0 : index
    %27 = vector.load %arg8[%c2, %c0_27] : memref<18x144xf32, #tpu.memory_space<vmem>>, vector<16x144xf32>
    %28 = arith.truncf %27 : vector<16x144xf32> to vector<16x144xbf16>
    %c2_28 = arith.constant 2 : index
    %c0_29 = arith.constant 0 : index
    %c0_30 = arith.constant 0 : index
    %29 = vector.load %arg5[%c2_28, %c0_29, %c0_30] : memref<3x144x128xbf16, #tpu.memory_space<vmem>>, vector<1x144x128xbf16>
    %30 = vector.shape_cast %29 : vector<1x144x128xbf16> to vector<144x128xbf16>
    %cst_31 = arith.constant dense<0.000000e+00> : vector<16x128xf32>
    %31 = tpu.matmul %28, %30, %cst_31 {dimension_numbers = #tpu.dot_dimension_numbers<[1], [0], [0], [1], [0, 0, 1, 1], [], []>} : vector<16x144xbf16>, vector<144x128xbf16>, vector<16x128xf32> -> vector<16x128xf32>
    %32 = arith.addf %26, %31 : vector<16x128xf32>
    %c0_32 = arith.constant 0 : index
    %c0_33 = arith.constant 0 : index
    %33 = vector.load %arg6[%c0_32, %c0_33] : memref<1x128xf32, #tpu.memory_space<vmem>>, vector<1x128xf32>
    %34 = vector.broadcast %33 : vector<1x128xf32> to vector<16x128xf32>
    %35 = arith.addf %32, %34 : vector<16x128xf32>
    %cst_34 = arith.constant 0.000000e+00 : f32
    %36 = vector.broadcast %cst_34 : f32 to vector<16x128xf32>
    %37 = arith.maximumf %35, %36 : vector<16x128xf32>
    %c0_35 = arith.constant 0 : index
    %c0_36 = arith.constant 0 : index
    %c0_37 = arith.constant 0 : index
    %38 = vector.load %arg7[%c0_35, %c0_36, %c0_37] : memref<1x16x128xf32, #tpu.memory_space<vmem>>, vector<1x16x128xf32>
    %39 = vector.shape_cast %38 : vector<1x16x128xf32> to vector<16x128xf32>
    %40 = vector.shape_cast %37 : vector<16x128xf32> to vector<1x16x128xf32>
    tpu.vector_store %arg7[%c0_35, %c0_36, %c0_37], %40 {strides = array<i32>} : memref<1x16x128xf32, #tpu.memory_space<vmem>>, vector<1x16x128xf32>,
    return
  }
  func.func @transform_0(%arg0: i32) -> (i32, i32, i32) {
    %c0_i32 = arith.constant 0 : i32
    %c0_i32_0 = arith.constant 0 : i32
    %c0_i32_1 = arith.constant 0 : i32
    return %arg0, %c0_i32, %c0_i32_0 : i32, i32, i32
  }
  func.func @transform_1(%arg0: i32) -> (i32, i32, i32) {
    %c0_i32 = arith.constant 0 : i32
    %c0_i32_0 = arith.constant 0 : i32
    %c0_i32_1 = arith.constant 0 : i32
    return %arg0, %c0_i32, %c0_i32_0 : i32, i32, i32
  }
  func.func @transform_2(%arg0: i32) -> (i32, i32) {
    %c0_i32 = arith.constant 0 : i32
    %c0_i32_0 = arith.constant 0 : i32
    %c0_i32_1 = arith.constant 0 : i32
    return %c0_i32, %c0_i32_0 : i32, i32
  }
  func.func @transform_3(%arg0: i32) -> (i32, i32) {
    %c0_i32 = arith.constant 0 : i32
    %c0_i32_0 = arith.constant 0 : i32
    %c0_i32_1 = arith.constant 0 : i32
    return %c0_i32, %c0_i32_0 : i32, i32
  }
  func.func @transform_4(%arg0: i32) -> (i32, i32, i32) {
    %c0_i32 = arith.constant 0 : i32
    %c0_i32_0 = arith.constant 0 : i32
    %c0_i32_1 = arith.constant 0 : i32
    %c0_i32_2 = arith.constant 0 : i32
    return %c0_i32, %c0_i32_0, %c0_i32_1 : i32, i32, i32
  }
  func.func @transform_5(%arg0: i32) -> (i32, i32) {
    %c0_i32 = arith.constant 0 : i32
    %c0_i32_0 = arith.constant 0 : i32
    %c0_i32_1 = arith.constant 0 : i32
    return %c0_i32, %c0_i32_0 : i32, i32
  }
  func.func @transform_6(%arg0: i32) -> (i32, i32, i32) {
    %c0_i32 = arith.constant 0 : i32
    %c0_i32_0 = arith.constant 0 : i32
    %c0_i32_1 = arith.constant 0 : i32
    return %arg0, %c0_i32, %c0_i32_0 : i32, i32, i32
  }
}

</mosaic_0001>

<bundles_post_ra>
// kernel: tile.33
= control target key start
LH: loop header
LB: loop body
LE: loop exit
PB: predicated region body
PF: predicated region fallthrough
CT: control target
= control target key end

     0   :  { %s22_s0 = inlined_call_operand.vmem [shape: f32[8], index: 0, kind: input, shape index: {}]   ;;  %s23_s1 = inlined_call_operand.vmem [shape: f32[8,8], index: 1, kind: output, shape index: {}]  }
   0x1   :  { %v4_v0 = vld [vmem:[%s22_s0] ss:$0 sm:$0xff] }
   0x2   :  { %5 = vst [vmem:[%s23_s1] sm:$0xff] %v4_v0 }

// kernel: tile.34
= control target key start
LH: loop header
LB: loop body
LE: loop exit
PB: predicated region body
PF: predicated region fallthrough
CT: control target
= control target key end

     0   :  { %s67_s10 = smov 56   ;;  %s68_s11 = smov 40   ;;  %vm3_vm0 = vcmask 64512   ;;  %vm9_vm1 = vcmask 523712   ;;  %vm15_vm2 = vcmask 458112   ;;  %vm21_vm3 = vcmask 392512   ;;  %s111_s0 = inlined_call_operand.vmem [shape: f32[8,8], index: 0, kind: input, shape index: {}]   ;;  %s112_s1 = inlined_call_operand.vmem [shape: f32[1,64], index: 1, kind: output, shape index: {}]  }
   0x1   :  { %v53_v0 = vld [vmem:[%s111_s0 + $0x7] sm:$0x1]   ;;  %v55_v1 = vld [vmem:[%s111_s0 + $0x5] sm:$0x1]   ;;  %v54_v2 = vld [vmem:[%s111_s0 + $0x6] sm:$0x1]  }
   0x2   :  { %7 = vrot.lane.b32.xlu0 %v53_v0, %s67_s10  ;;  %19 = vrot.lane.b32.xlu1 %v55_v1, %s68_s11  ;;  %v56_v3 = vld [vmem:[%s111_s0 + $0x4] sm:$0x1]   ;;  %v2_v4 = vld [vmem:[%s111_s0] sm:$0x1]   ;;  %s69_s18 = smov 48   ;;  %s70_s19 = smov 32  }
   0x3   :  { %4 = vst.msk [vmem:[#allocation0] sm:$0x1] %vm3_vm0, %v2_v4   ;;  %v57_v5 = vld [vmem:[%s111_s0 + $0x3] sm:$0x1]   ;;  %v58_v6 = vld [vmem:[%s111_s0 + $0x2] sm:$0x1]  }
   0x4   :  { %s71_s24 = smov 24   ;;  %s72_s25 = smov 16   ;;  %v59_v7 = vld [vmem:[%s111_s0 + $0x1] sm:$0x1]   ;;  %vm27_vm4 = vcmask 326912   ;;  %vm33_vm5 = vcmask 261312  }
   0x5   :  { %s73_s0 = smov 8   ;;  %vm39_vm6 = vcmask 195712   ;;  %vm45_vm7 = vcmask 130112  }
   0x6   :  { %13 = vrot.lane.b32.xlu0 %v54_v2, %s69_s18  ;;  %25 = vrot.lane.b32.xlu1 %v56_v3, %s70_s19 }
   0xa   :  { %31 = vrot.lane.b32.xlu0 %v57_v5, %s71_s24  ;;  %37 = vrot.lane.b32.xlu1 %v58_v6, %s72_s25 }
   0xe   :  { %43 = vrot.lane.b32.xlu0 %v59_v7, %s73_s0 }
  0x74   :  { %v8_v8 = vpop.permute.xlu0 %7   ;;  %v20_v9 = vpop.permute.xlu1 %19  }
  0x75   :  { %10 = vst.msk [vmem:[#allocation0] sm:$0x1] %vm9_vm1, %v8_v8  }
  0x78   :  { %v14_v10 = vpop.permute.xlu0 %13   ;;  %v26_v11 = vpop.permute.xlu1 %25  }
  0x79   :  { %16 = vst.msk [vmem:[#allocation0] sm:$0x1] %vm15_vm2, %v14_v10  }
  0x7a   :  { %22 = vst.msk [vmem:[#allocation0] sm:$0x1] %vm21_vm3, %v20_v9  }
  0x7b   :  { %28 = vst.msk [vmem:[#allocation0] sm:$0x1] %vm27_vm4, %v26_v11  }
  0x7c   :  { %v32_v12 = vpop.permute.xlu0 %31   ;;  %v38_v13 = vpop.permute.xlu1 %37  }
  0x7d   :  { %34 = vst.msk [vmem:[#allocation0] sm:$0x1] %vm33_vm5, %v32_v12  }
  0x7e   :  { %40 = vst.msk [vmem:[#allocation0] sm:$0x1] %vm39_vm6, %v38_v13  }
  0x80   :  { %v44_v14 = vpop.permute.xlu0 %43  }
  0x81   :  { %46 = vst.msk [vmem:[#allocation0] sm:$0x1] %vm45_vm7, %v44_v14  }
  0x88   :  { %v50_v15 = vld [vmem:[#allocation0] sm:$0x1] }
  0x89   :  { %52 = vst [vmem:[%s112_s1] sm:$0x1] %v50_v15 }

// kernel: usrm_forward.6
= control target key start
LH: loop header
LB: loop body
LE: loop exit
PB: predicated region body
PF: predicated region fallthrough
CT: control target
= control target key end

     0   :  { %s897_s12 = smov 0   ;;  %s1100_s0 = inlined_call_operand.vmem [shape: f32[2,16,128], index: 0, kind: input, shape index: {}]   ;;  %s1101_s1 = inlined_call_operand.vmem [shape: bf16[3,144,64], index: 1, kind: input, shape index: {}]   ;;  %s1102_s2 = inlined_call_operand.vmem [shape: f32[1,64], index: 2, kind: input, shape index: {}]   ;;  %s1103_s3 = inlined_call_operand.vmem [shape: f32[2,8,64], index: 3, kind: output, shape index: {}]  }
   0x1 LB: > { %s750_s13 = sadd.s32 4294967295, %s872_s12   ;;  %p754_p0 = scmp.ge.s32.totalorder %s872_s12, 1  ;;  %s872_s12 = sphi %s897_s12, %s13_s12  }
   0x2   : > { %p137_p1 = scmp.lt.s32.totalorder %s872_s12, 3 }
   0x4   : > { %p138_p2 = pnand %p754_p0, %p137_p1 }
   0x5   : > { %p160_p3 = scmp.lt.s32.totalorder (!%p138_p2), %s750_s13, 1  ;;  %v839_v0 = vld [vmem:[%s1101_s1 + $0x48] sm:$0xff] (!%p138_p2)   ;;  %v874_v1 = vmov (!%p138_p2), 0   ;;  %v840_v2 = vld [vmem:[%s1101_s1 + $0x50] sm:$0xff] (!%p138_p2)   ;;  %vm171_vm0 = vcmask (!%p138_p2), 130048   ;;  %v875_v3 = vmov (!%p138_p2), 0.0  }
   0x6   : > { %141 = sbr.rel (%p138_p2) target bundleno = 417 (0x1a1), region = 32  ;;  %411 = vmatprep.subr.bf16.mxu0 (!%p138_p2), %v874_v1  ;;  %508 = vmatprep.subr.bf16.mxu1 (!%p138_p2), %v874_v1  ;;  %173 = vst [vmem:[#allocation2 + $0x10] sm:$0xff] (!%p138_p2), %v875_v3  ;;  %174 = vst.msk [vmem:[#allocation2 + $0x18] sm:$0xff] (!%p138_p2), %vm171_vm0, %v875_v3  ;;  %vm176_vm1 = vcmask (!%p138_p2), 123904   ;;  %v842_v4 = vld [vmem:[%s1101_s1] sm:$0xff] (!%p138_p2)   ;;  %v841_v7 = vld [vmem:[%s1101_s1 + $0x58] sm:$0xff] (!%p138_p2)  }
   0x7   : > { %412 = vmatpush1.bf16.msra.mxu0 (!%p138_p2), %v839_v0  ;;  %170 = vst [vmem:[#allocation2] sm:$0xff] (!%p138_p2), %v875_v3  ;;  %172 = vst.msk [vmem:[#allocation2 + $0x8] sm:$0xff] (!%p138_p2), %vm171_vm0, %v875_v3  ;;  %509 = vmatpush1.bf16.msra.mxu1 (!%p138_p2), %v842_v4  ;;  %s876_s26 = smov (!%p138_p2), 8   ;;  %v843_v10 = vld [vmem:[%s1101_s1 + $0x60] sm:$0xff] (!%p138_p2)   ;;  %v844_v13 = vld [vmem:[%s1101_s1 + $0x8] sm:$0xff] (!%p138_p2)   ;;  %vm183_vm2 = vcmask (!%p138_p2), 1040448  }
   0x8   : > { %413 = vmatprep.subr.bf16.mxu0 (!%p138_p2), %v874_v1  ;;  %175 = vst [vmem:[#allocation2 + $0x20] sm:$0x3] (!%p138_p2), %v875_v3  ;;  %177 = vst.msk [vmem:[#allocation2 + $0x28] sm:$0x3] (!%p138_p2), %vm176_vm1, %v875_v3  ;;  %510 = vmatprep.subr.bf16.mxu1 (!%p138_p2), %v874_v1  ;;  %v845_v14 = vld [vmem:[%s1101_s1 + $0x68] sm:$0xff] (!%p138_p2)   ;;  %v846_v16 = vld [vmem:[%s1101_s1 + $0x10] sm:$0xff] (!%p138_p2)  }
   0x9   : > { %v847_v18 = vld [vmem:[%s1101_s1 + $0x70] sm:$0xff] (!%p138_p2)   ;;  %v848_v19 = vld [vmem:[%s1101_s1 + $0x18] sm:$0xff] (!%p138_p2)   ;;  %v850_v23 = vld [vmem:[%s1101_s1 + $0x20] sm:$0xff] (!%p138_p2)   ;;  %vm185_vm3 = vcmask (!%p138_p2), 57344   ;;  %vm695_vm4 = vcmask (!%p138_p2), 523264  }
   0xa   : > { %v849_v22 = vld [vmem:[%s1101_s1 + $0x78] sm:$0xff] (!%p138_p2)   ;;  %v851_v26 = vld [vmem:[%s1101_s1 + $0x80] sm:$0xff] (!%p138_p2)   ;;  %v852_v29 = vld [vmem:[%s1101_s1 + $0x28] sm:$0xff] (!%p138_p2)  }
   0xb   : > { %414 = vmatpush1.bf16.msra.mxu0 (!%p138_p2), %v840_v2  ;;  %511 = vmatpush1.bf16.msra.mxu1 (!%p138_p2), %v844_v13  ;;  %v853_v30 = vld [vmem:[%s1101_s1 + $0x88] sm:$0xff] (!%p138_p2)   ;;  %v854_v31 = vld [vmem:[%s1101_s1 + $0x30] sm:$0xff] (!%p138_p2)   ;;  %v856_v34 = vld [vmem:[%s1101_s1 + $0x38] sm:$0xff] (!%p138_p2)  }
   0xc   : > { %415 = vmatprep.subr.bf16.mxu0 (!%p138_p2), %v874_v1  ;;  %512 = vmatprep.subr.bf16.mxu1 (!%p138_p2), %v874_v1  ;;  %v858_v35 = vld [vmem:[%s1101_s1 + $0x40] sm:$0xff] (!%p138_p2)   ;;  %v855_v63 = vld [vmem:[%s1101_s1 + $0x90] sm:$0xff] (!%p138_p2)   ;;  %v857_v4 = vld [vmem:[%s1101_s1 + $0x98] sm:$0xff] (!%p138_p2)  }
   0xd   : > { %s1105_s13 = smov (!%p160_p3, %s750_s13), 1  ;;  %v860_v13 = vld [vmem:[%s1101_s1 + $0xa8] sm:$0xff]  }
   0xe   : > { %s827_s18 = sshll.u32 %s1105_s13, 4  ;;  %s757_s27 = sshll.u32 %s1105_s13, 3 }
   0xf   : > { %s925_s23 = scalar_lea.vmem %s1100_s0, %s827_s18  ;;  %416 = vmatpush1.bf16.msra.mxu0 %v841_v7  ;;  %513 = vmatpush1.bf16.msra.mxu1 %v846_v16 }
  0x10   : > { %v208_v5 = vld [vmem:[%s925_s23 + $0x4] sm:$0x1]  ;;  %v178_v6 = vld [vmem:[%s925_s23] sm:$0x1]  ;;  %v222_v8 = vld [vmem:[%s925_s23 + $0x6] sm:$0x1]  ;;  %417 = vmatprep.subr.bf16.mxu0 %v874_v1  ;;  %514 = vmatprep.subr.bf16.mxu1 %v874_v1 }
  0x11   : > { %210 = vrot.lane.b32.xlu1 %v208_v5, %s876_s26  ;;  %180 = vrot.lane.b32.xlu0 %v178_v6, %s876_s26  ;;  %v194_v9 = vld [vmem:[%s925_s23 + $0x2] sm:$0x1]  ;;  %v250_v11 = vld [vmem:[%s925_s23 + $0xa] sm:$0x1] }
  0x12   : > { %v236_v12 = vld [vmem:[%s925_s23 + $0x8] sm:$0x1]  ;;  %v278_v15 = vld [vmem:[%s925_s23 + $0xe] sm:$0x1]  ;;  %v264_v17 = vld [vmem:[%s925_s23 + $0xc] sm:$0x1] }
  0x13   : > { %418 = vmatpush1.bf16.msra.mxu0 %v843_v10  ;;  %v187_v20 = vld [vmem:[%s925_s23 + $0x1] sm:$0x1]  ;;  %v201_v21 = vld [vmem:[%s925_s23 + $0x3] sm:$0x1]  ;;  %515 = vmatpush1.bf16.msra.mxu1 %v848_v19  ;;  %v215_v24 = vld [vmem:[%s925_s23 + $0x5] sm:$0x1] }
  0x14   : > { %419 = vmatprep.subr.bf16.mxu0 %v874_v1  ;;  %v229_v25 = vld [vmem:[%s925_s23 + $0x7] sm:$0x1]  ;;  %516 = vmatprep.subr.bf16.mxu1 %v874_v1  ;;  %v243_v27 = vld [vmem:[%s925_s23 + $0x9] sm:$0x1]  ;;  %v257_v28 = vld [vmem:[%s925_s23 + $0xb] sm:$0x1] }
  0x15   : > { %224 = vrot.lane.b32.xlu1 %v222_v8, %s876_s26  ;;  %196 = vrot.lane.b32.xlu0 %v194_v9, %s876_s26  ;;  %v271_v32 = vld [vmem:[%s925_s23 + $0xd] sm:$0x1]  ;;  %v285_v33 = vld [vmem:[%s925_s23 + $0xf] sm:$0x1]  ;;  %s168_s23 = scalar_lea.vmem %s1103_s3, %s757_s27 }
  0x16   : > { %v859_v5 = vld [vmem:[%s1101_s1 + $0xa0] sm:$0xff]   ;;  %v862_v19 = vld [vmem:[%s1101_s1 + $0xb8] sm:$0xff]  }
  0x17   : > { %420 = vmatpush1.bf16.msra.mxu0 %v845_v14  ;;  %517 = vmatpush1.bf16.msra.mxu1 %v850_v23 }
  0x18   : > { %421 = vmatprep.subr.bf16.mxu0 %v874_v1  ;;  %518 = vmatprep.subr.bf16.mxu1 %v874_v1 }
  0x19   : > { %252 = vrot.lane.b32.xlu1 %v250_v11, %s876_s26  ;;  %238 = vrot.lane.b32.xlu0 %v236_v12, %s876_s26 }
  0x1b   : > { %422 = vmatpush1.bf16.msra.mxu0 %v847_v18  ;;  %519 = vmatpush1.bf16.msra.mxu1 %v852_v29 }
  0x1c   : > { %423 = vmatprep.subr.bf16.mxu0 %v874_v1  ;;  %520 = vmatprep.subr.bf16.mxu1 %v874_v1 }
  0x1d   : > { %280 = vrot.lane.b32.xlu1 %v278_v15, %s876_s26  ;;  %266 = vrot.lane.b32.xlu0 %v264_v17, %s876_s26  ;;  %v861_v17 = vld [vmem:[%s1101_s1 + $0xb0] sm:$0xff]  }
  0x1f   : > { %424 = vmatpush1.bf16.msra.mxu0 %v849_v22  ;;  %521 = vmatpush1.bf16.msra.mxu1 %v854_v31  ;;  %v863_v22 = vld [vmem:[%s1101_s1 + $0xc0] sm:$0xff]  }
  0x20   : > { %425 = vmatprep.subr.bf16.mxu0 %v874_v1  ;;  %522 = vmatprep.subr.bf16.mxu1 %v874_v1 }
  0x21   : > { %189 = vrot.lane.b32.xlu0 %v187_v20, %s876_s26  ;;  %203 = vrot.lane.b32.xlu1 %v201_v21, %s876_s26 }
  0x23   : > { %426 = vmatpush1.bf16.msra.mxu0 %v851_v26  ;;  %523 = vmatpush1.bf16.msra.mxu1 %v856_v34  ;;  %v865_v26 = vld [vmem:[%s1101_s1 + $0xd0] sm:$0xff]  }
  0x24   : > { %427 = vmatprep.subr.bf16.mxu0 %v874_v1  ;;  %524 = vmatprep.subr.bf16.mxu1 %v874_v1 }
  0x25   : > { %217 = vrot.lane.b32.xlu0 %v215_v24, %s876_s26  ;;  %231 = vrot.lane.b32.xlu1 %v229_v25, %s876_s26  ;;  %v864_v24 = vld [vmem:[%s1101_s1 + $0xc8] sm:$0xff]  }
  0x27   : > { %428 = vmatpush1.bf16.msra.mxu0 %v853_v30  ;;  %525 = vmatpush1.bf16.msra.mxu1 %v858_v35 }
  0x28   : > { %645 = vmatprep.subr.bf16.mxu0 %v874_v1 }
  0x29   : > { %245 = vrot.lane.b32.xlu0 %v243_v27, %s876_s26  ;;  %259 = vrot.lane.b32.xlu1 %v257_v28, %s876_s26 }
  0x2d   : > { %273 = vrot.lane.b32.xlu0 %v271_v32, %s876_s26  ;;  %287 = vrot.lane.b32.xlu1 %v285_v33, %s876_s26 }
  0x83   : > { %v211_v36 = vpop.permute.xlu1 %210  ;;  %v181_v37 = vpop.permute.xlu0 %180 }
  0x84   : > { %213 = vst.msk [vmem:[#allocation2 + $0x13] sm:$0x1] %vm183_vm2, %v211_v36  ;;  %184 = vst.msk [vmem:[#allocation2 + $0x11] sm:$0x1] %vm183_vm2, %v181_v37 }
  0x85   : > { %214 = vst.msk [vmem:[#allocation2 + $0x1b] sm:$0x1] %vm185_vm3, %v211_v36  ;;  %186 = vst.msk [vmem:[#allocation2 + $0x19] sm:$0x1] %vm185_vm3, %v181_v37 }
  0x87   : > { %v225_v38 = vpop.permute.xlu1 %224  ;;  %v197_v39 = vpop.permute.xlu0 %196 }
  0x88   : > { %227 = vst.msk [vmem:[#allocation2 + $0x14] sm:$0x1] %vm183_vm2, %v225_v38  ;;  %199 = vst.msk [vmem:[#allocation2 + $0x12] sm:$0x1] %vm183_vm2, %v197_v39 }
  0x89   : > { %228 = vst.msk [vmem:[#allocation2 + $0x1c] sm:$0x1] %vm185_vm3, %v225_v38  ;;  %200 = vst.msk [vmem:[#allocation2 + $0x1a] sm:$0x1] %vm185_vm3, %v197_v39 }
  0x8b   : > { %v253_v40 = vpop.permute.xlu1 %252  ;;  %v239_v41 = vpop.permute.xlu0 %238 }
  0x8c   : > { %255 = vst.msk [vmem:[#allocation2 + $0x16] sm:$0x1] %vm183_vm2, %v253_v40  ;;  %241 = vst.msk [vmem:[#allocation2 + $0x15] sm:$0x1] %vm183_vm2, %v239_v41 }
  0x8d   : > { %256 = vst.msk [vmem:[#allocation2 + $0x1e] sm:$0x1] %vm185_vm3, %v253_v40  ;;  %242 = vst.msk [vmem:[#allocation2 + $0x1d] sm:$0x1] %vm185_vm3, %v239_v41 }
  0x8f   : > { %v281_v42 = vpop.permute.xlu1 %280  ;;  %v267_v43 = vpop.permute.xlu0 %266 }
  0x90   : > { %283 = vst.msk [vmem:[#allocation2 + $0x20] sm:$0x1] %vm183_vm2, %v281_v42  ;;  %269 = vst.msk [vmem:[#allocation2 + $0x17] sm:$0x1] %vm183_vm2, %v267_v43 }
  0x91   : > { %284 = vst.msk [vmem:[#allocation2 + $0x28] sm:$0x1] %vm185_vm3, %v281_v42  ;;  %270 = vst.msk [vmem:[#allocation2 + $0x1f] sm:$0x1] %vm185_vm3, %v267_v43 }
  0x93   : > { %v190_v44 = vpop.permute.xlu0 %189  ;;  %v204_v45 = vpop.permute.xlu1 %203 }
  0x94   : > { %192 = vst.msk [vmem:[#allocation2 + $0x1] sm:$0x1] %vm183_vm2, %v190_v44  ;;  %206 = vst.msk [vmem:[#allocation2 + $0x2] sm:$0x1] %vm183_vm2, %v204_v45 }
  0x95   : > { %193 = vst.msk [vmem:[#allocation2 + $0x9] sm:$0x1] %vm185_vm3, %v190_v44  ;;  %207 = vst.msk [vmem:[#allocation2 + $0xa] sm:$0x1] %vm185_vm3, %v204_v45 }
  0x97   : > { %v218_v46 = vpop.permute.xlu0 %217  ;;  %v232_v47 = vpop.permute.xlu1 %231  ;;  %v314_v50 = vld [vmem:[#allocation2 + $0x10] sm:$0xfe]  ;;  %v316_v52 = vld [vmem:[#allocation2 + $0x20] sm:$0x1] }
  0x98   : > { %v315_v48 = vld [vmem:[#allocation2 + $0x18] sm:$0xfe]  ;;  %v317_v49 = vld [vmem:[#allocation2 + $0x28] sm:$0x1]  ;;  %220 = vst.msk [vmem:[#allocation2 + $0x3] sm:$0x1] %vm183_vm2, %v218_v46  ;;  %v318_v53 = vpack.c.bf16 %v316_v52, %v314_v50 }
  0x99   : > { %221 = vst.msk [vmem:[#allocation2 + $0xb] sm:$0x1] %vm185_vm3, %v218_v46  ;;  %235 = vst.msk [vmem:[#allocation2 + $0xc] sm:$0x1] %vm185_vm3, %v232_v47  ;;  %v319_v51 = vpack.c.bf16 %v317_v49, %v315_v48 }
  0x9a   : > { %234 = vst.msk [vmem:[#allocation2 + $0x4] sm:$0x1] %vm183_vm2, %v232_v47  ;;  %v342_v57 = vshll.u32 %v318_v53, 16  ;;  %v340_v60 = vshrl.u32 %v318_v53, 16 }
  0x9b   : > { %v349_v54 = vshll.u32 %v319_v51, 16  ;;  %v246_v55 = vpop.permute.xlu0 %245  ;;  %v260_v56 = vpop.permute.xlu1 %259  ;;  %v347_v58 = vshrl.u32 %v319_v51, 16 }
  0x9c   : > { %248 = vst.msk [vmem:[#allocation2 + $0x5] sm:$0x1] %vm183_vm2, %v246_v55  ;;  %262 = vst.msk [vmem:[#allocation2 + $0x6] sm:$0x1] %vm183_vm2, %v260_v56  ;;  %v344_v61 = vrot.slane %v342_v57, 1 }
  0x9d   : > { %249 = vst.msk [vmem:[#allocation2 + $0xd] sm:$0x1] %vm185_vm3, %v246_v55  ;;  %263 = vst.msk [vmem:[#allocation2 + $0xe] sm:$0x1] %vm185_vm3, %v260_v56  ;;  %v351_v59 = vrot.slane %v349_v54, 1 }
  0x9e   : > { %v345_v2 = vor.u32 %v344_v61, %v340_v60 }
  0x9f   : > { %v352_v62 = vor.u32 %v351_v59, %v347_v58  ;;  %v274_v0 = vpop.permute.xlu0 %273  ;;  %v288_v3 = vpop.permute.xlu1 %287 }
  0xa0   : > { %276 = vst.msk [vmem:[#allocation2 + $0x7] sm:$0x1] %vm183_vm2, %v274_v0  ;;  %290 = vst.msk [vmem:[#allocation2 + $0x10] sm:$0x1] %vm183_vm2, %v288_v3 }
  0xa1   : > { %277 = vst.msk [vmem:[#allocation2 + $0xf] sm:$0x1] %vm185_vm3, %v274_v0  ;;  %785 = vmatprep.mubr.msk.bf16.mxu0 %vm171_vm0, %v352_v62  ;;  %291 = vst.msk [vmem:[#allocation2 + $0x18] sm:$0x1] %vm185_vm3, %v288_v3 }
  0xa2   : > { %444 = vmatmul.mubr.bf16.vlgmr.msra.gmra.mrb[0].mxu0 %v345_v2 }
  0xa3   : > { %646 = vmatpush1.bf16.msra.mxu0 %v855_v63 }
  0xa4   : > { %647 = vmatprep.subr.bf16.mxu0 %v874_v1 }
  0xa7   : > { %648 = vmatpush1.bf16.msra.mxu0 %v857_v4  ;;  %v292_v7 = vld [vmem:[#allocation2] sm:$0xff]  ;;  %v550_v21 = vld [vmem:[#allocation2 + $0x10] sm:$0x1] }
  0xa8   : > { %649 = vmatprep.subr.bf16.mxu0 %v874_v1  ;;  %v293_v6 = vld [vmem:[#allocation2 + $0x8] sm:$0xff]  ;;  %v294_v10 = vpack.c.bf16 %v292_v7, %v292_v7  ;;  %v551_v11 = vld [vmem:[#allocation2 + $0x18] sm:$0x1]  ;;  %v548_v20 = vld [vmem:[#allocation2] sm:$0xfe] }
  0xa9   : > { %v549_v8 = vld [vmem:[#allocation2 + $0x8] sm:$0xfe]  ;;  %v295_v9 = vpack.c.bf16 %v293_v6, %v293_v6  ;;  %v552_v23 = vpack.c.bf16 %v550_v21, %v548_v20 }
  0xaa   : > { %v553_v12 = vpack.c.bf16 %v551_v11, %v549_v8 }
  0xab   : > { %650 = vmatpush1.bf16.msra.mxu0 %v859_v5  ;;  %795 = vmatprep.mubr.msk.bf16.mxu1 %vm171_vm0, %v295_v9  ;;  %v576_v25 = vshll.u32 %v552_v23, 16  ;;  %v574_v27 = vshrl.u32 %v552_v23, 16 }
  0xac   : > { %541 = vmatmul.mubr.bf16.vlgmr.msra.gmra.mrb[0].mxu1 %v294_v10  ;;  %651 = vmatprep.subr.bf16.mxu0 %v874_v1  ;;  %v581_v14 = vshrl.u32 %v553_v12, 16  ;;  %v583_v15 = vshll.u32 %v553_v12, 16 }
  0xad   : > { %v578_v28 = vrot.slane %v576_v25, 1 }
  0xae   : > { %v585_v16 = vrot.slane %v583_v15, 1 }
  0xaf   : > { %652 = vmatpush1.bf16.msra.mxu0 %v860_v13  ;;  %v579_v29 = vor.u32 %v578_v28, %v574_v27 }
  0xb0   : > { %653 = vmatprep.subr.bf16.mxu0 %v874_v1  ;;  %v586_v18 = vor.u32 %v585_v16, %v581_v14 }
  0xb2   : > { %823 = vmatprep.mubr.msk.bf16.mxu0 %vm171_vm0, %v586_v18 }
  0xb3   : > { %654 = vmatpush1.bf16.msra.mxu0 %v861_v17 }
  0xb4   : > { %655 = vmatprep.subr.bf16.mxu0 %v874_v1 }
  0xb7   : > { %656 = vmatpush1.bf16.msra.mxu0 %v862_v19 }
  0xb8   : > { %657 = vmatprep.subr.bf16.mxu0 %v874_v1 }
  0xbb   : > { %658 = vmatpush1.bf16.msra.mxu0 %v863_v22 }
  0xbc   : > { %659 = vmatprep.subr.bf16.mxu0 %v874_v1 }
  0xbf   : > { %660 = vmatpush1.bf16.msra.mxu0 %v864_v24 }
  0xc0   : > { %661 = vmatprep.subr.bf16.mxu0 %v874_v1  ;;  %v824_v1 = vld [vmem:[%s1102_s2] ss:$0 sm:$0xff] }
  0xc3   : > { %662 = vmatpush1.bf16.msra.mxu0 %v865_v26 }
  0xc6   : > { %678 = vmatmul.mubr.bf16.vlgmr.msra.gmra.mrb[4].mxu0 %v579_v29 }
 0x175   : > { %v445_v30 = vpop.f32.mrb[0].mxu0 }
 0x176   : > { %v447_v31 = vpop.f32.mrb[1].mxu0 }
 0x177   : > { %v448_v32 = vpop.f32.mrb[2].mxu0 }
 0x178   : > { %v449_v33 = vpop.f32.mrb[3].mxu0 }
 0x17f   : > { %v542_v34 = vpop.f32.mrb[0].mxu1 }
 0x180   : > { %v543_v35 = vadd.f32 %v542_v34, %v445_v30  ;;  %v544_v36 = vpop.f32.mrb[1].mxu1 }
 0x181   : > { %v545_v37 = vpop.f32.mrb[2].mxu1 }
 0x182   : > { %v546_v38 = vpop.f32.mrb[3].mxu1 }
 0x199   : > { %v679_v39 = vpop.f32.mrb[4].mxu0 }
 0x19a   : > { %v685_v40 = vadd.f32 %v679_v39, %v543_v35  ;;  %v681_v41 = vpop.f32.mrb[5].mxu0 }
 0x19b   : > { %v682_v42 = vpop.f32.mrb[6].mxu0 }
 0x19c   : > { %v693_v43 = vadd.f32 %v824_v1, %v685_v40  ;;  %v683_v44 = vpop.f32.mrb[7].mxu0 }
 0x19e   : > { %v694_v45 = vmax.f32 %v693_v43, 0.0 }
 0x1a0   : > { %696 = vst.msk [vmem:[%s168_s23] sm:$0xff] %vm695_vm4, %v694_v45 }
 0x1a1 PF: > { %s13_s12 = sadd.s32 1, %s872_s12  }
 0x1a2   : > { %p10_p4 = scmp.ge.s32.totalorder %s13_s12, 4  }
 0x1a4   :  { %12 = sbr.rel (!%p10_p4) target bundleno = 1 (0x1), region = 64 }

// kernel: tile.38
= control target key start
LH: loop header
LB: loop body
LE: loop exit
PB: predicated region body
PF: predicated region fallthrough
CT: control target
= control target key end

     0   :  { %s22_s0 = inlined_call_operand.vmem [shape: f32[8], index: 0, kind: input, shape index: {}]   ;;  %s23_s1 = inlined_call_operand.vmem [shape: f32[4,8], index: 1, kind: output, shape index: {}]  }
   0x1   :  { %v4_v0 = vld [vmem:[%s22_s0] ss:$0 sm:$0xff] }
   0x2   :  { %5 = vst [vmem:[%s23_s1] sm:$0xf] %v4_v0 }

// kernel: tile.39
= control target key start
LH: loop header
LB: loop body
LE: loop exit
PB: predicated region body
PF: predicated region fallthrough
CT: control target
= control target key end

     0   :  { %vm7_vm0 = vcmask 64512   ;;  %s37_s8 = smov 8   ;;  %s38_s9 = smov 16   ;;  %vm13_vm1 = vcmask 261312   ;;  %vm19_vm2 = vcmask 195712   ;;  %vm25_vm3 = vcmask 130112   ;;  %s55_s0 = inlined_call_operand.vmem [shape: f32[4,8], index: 0, kind: input, shape index: {}]   ;;  %s56_s1 = inlined_call_operand.vmem [shape: f32[1,32], index: 1, kind: output, shape index: {}]  }
   0x1   :  { %v4_v0 = vld [vmem:[%s55_s0] sm:$0xf]  ;;  %s36_s0 = smov 24  }
   0x2   :  { %5 = vst [vmem:[#allocation1] sm:$0xf] %v4_v0 }
   0x9   :  { %v10_v1 = vld [vmem:[#allocation1 + $0x3] sm:$0x1]   ;;  %v22_v2 = vld [vmem:[#allocation1 + $0x1] sm:$0x1]   ;;  %v6_v3 = vld [vmem:[#allocation1] sm:$0x1]  }
   0xa   :  { %11 = vrot.lane.b32.xlu0 %v10_v1, %s36_s0  ;;  %23 = vrot.lane.b32.xlu1 %v22_v2, %s37_s8  ;;  %v16_v4 = vld [vmem:[#allocation1 + $0x2] sm:$0x1]   ;;  %8 = vst.msk [vmem:[#allocation0] sm:$0x1] %vm7_vm0, %v6_v3  }
   0xe   :  { %17 = vrot.lane.b32.xlu0 %v16_v4, %s38_s9 }
  0x7c   :  { %v12_v5 = vpop.permute.xlu0 %11   ;;  %v24_v6 = vpop.permute.xlu1 %23  }
  0x7d   :  { %14 = vst.msk [vmem:[#allocation0] sm:$0x1] %vm13_vm1, %v12_v5  }
  0x80   :  { %v18_v7 = vpop.permute.xlu0 %17  }
  0x81   :  { %20 = vst.msk [vmem:[#allocation0] sm:$0x1] %vm19_vm2, %v18_v7  }
  0x82   :  { %26 = vst.msk [vmem:[#allocation0] sm:$0x1] %vm25_vm3, %v24_v6  }
  0x89   :  { %v30_v8 = vld [vmem:[#allocation0] sm:$0x1] }
  0x8a   :  { %32 = vst [vmem:[%s56_s1] sm:$0x1] %v30_v8 }

// kernel: usrm_forward.7
= control target key start
LH: loop header
LB: loop body
LE: loop exit
PB: predicated region body
PF: predicated region fallthrough
CT: control target
= control target key end

     0   :  { %s707_s12 = smov 0   ;;  %s819_s0 = inlined_call_operand.vmem [shape: f32[2,8,64], index: 0, kind: input, shape index: {}]   ;;  %s820_s1 = inlined_call_operand.vmem [shape: bf16[3,80,32], index: 1, kind: input, shape index: {}]   ;;  %s821_s2 = inlined_call_operand.vmem [shape: f32[1,32], index: 2, kind: input, shape index: {}]   ;;  %s822_s3 = inlined_call_operand.vmem [shape: f32[2,4,32], index: 3, kind: output, shape index: {}]  }
   0x1 LB: > { %s542_s13 = sadd.s32 4294967295, %s682_s12   ;;  %p546_p0 = scmp.ge.s32.totalorder %s682_s12, 1  ;;  %s682_s12 = sphi %s707_s12, %s13_s12  }
   0x2   : > { %p136_p1 = scmp.lt.s32.totalorder %s682_s12, 3 }
   0x4   : > { %p137_p2 = pnand %p546_p0, %p136_p1 }
   0x5   : > { %p158_p3 = scmp.lt.s32.totalorder (!%p137_p2), %s542_s13, 1  ;;  %v661_v0 = vld [vmem:[%s820_s1 + $0x28] sm:$0xff] (!%p137_p2)   ;;  %v684_v1 = vmov (!%p137_p2), 0.0   ;;  %v662_v2 = vld [vmem:[%s820_s1 + $0x30] sm:$0xff] (!%p137_p2)   ;;  %vm167_vm0 = vcmask (!%p137_p2), 654336   ;;  %vm169_vm1 = vcmask (!%p137_p2), 648192  }
   0x6   : > { %140 = sbr.rel (%p137_p2) target bundleno = 385 (0x181), region = 32  ;;  %608 = vmatprep.subr.bf16.mxu0 (!%p137_p2), %v684_v1  ;;  %622 = vmatprep.subr.bf16.mxu1 (!%p137_p2), %v684_v1  ;;  %168 = vst.msk [vmem:[#allocation2] sm:$0xff] (!%p137_p2), %vm167_vm0, %v684_v1  ;;  %v664_v3 = vld [vmem:[%s820_s1] sm:$0xff] (!%p137_p2)   ;;  %v663_v6 = vld [vmem:[%s820_s1 + $0x38] sm:$0xff] (!%p137_p2)   ;;  %s685_s26 = smov (!%p137_p2), 8   ;;  %v666_v10 = vld [vmem:[%s820_s1 + $0x8] sm:$0xff] (!%p137_p2)  }
   0x7   : > { %609 = vmatpush3.bf16.msra.mxu0 (!%p137_p2), %v661_v0  ;;  %170 = vst.msk [vmem:[#allocation2 + $0x8] sm:$0x3] (!%p137_p2), %vm169_vm1, %v684_v1  ;;  %623 = vmatpush3.bf16.msra.mxu1 (!%p137_p2), %v664_v3  ;;  %v665_v9 = vld [vmem:[%s820_s1 + $0x40] sm:$0xff] (!%p137_p2)   ;;  %vm686_vm2 = vmmov (!%p137_p2), 0   ;;  %v668_v13 = vld [vmem:[%s820_s1 + $0x10] sm:$0xff] (!%p137_p2)   ;;  %v667_v16 = vld [vmem:[%s820_s1 + $0x48] sm:$0xff] (!%p137_p2)  }
   0x8   : > { %610 = vmatprep.subr.bf16.mxu0 (!%p137_p2), %v684_v1  ;;  %624 = vmatprep.subr.bf16.mxu1 (!%p137_p2), %v684_v1  ;;  %v670_v17 = vld [vmem:[%s820_s1 + $0x18] sm:$0xff] (!%p137_p2)   ;;  %v672_v18 = vld [vmem:[%s820_s1 + $0x20] sm:$0xff] (!%p137_p2)   ;;  %vm176_vm3 = vcmask (!%p137_p2), 581696   ;;  %v669_v27 = vld [vmem:[%s820_s1 + $0x50] sm:$0xff] (!%p137_p2)   ;;  %vm487_vm4 = vcmask (!%p137_p2), 257024  }
   0x9   : > { %618 = vmatprep.mubr.msk.bf16.mxu0 (!%p137_p2), %vm686_vm2, %v684_v1  ;;  %632 = vmatprep.mubr.msk.bf16.mxu1 (!%p137_p2), %vm686_vm2, %v684_v1  ;;  %v671_v30 = vld [vmem:[%s820_s1 + $0x58] sm:$0xff] (!%p137_p2)   ;;  %v673_v32 = vld [vmem:[%s820_s1 + $0x60] sm:$0xff] (!%p137_p2)   ;;  %v674_v34 = vld [vmem:[%s820_s1 + $0x68] sm:$0xff] (!%p137_p2)  }
   0xa   : > { %v675_v35 = vld [vmem:[%s820_s1 + $0x70] sm:$0xff] (!%p137_p2)   ;;  %v587_v48 = vld [vmem:[%s821_s2] ss:$0 sm:$0xff] (!%p137_p2) }
   0xb   : > { %611 = vmatpush3.bf16.msra.mxu0 (!%p137_p2), %v662_v2  ;;  %625 = vmatpush3.bf16.msra.mxu1 (!%p137_p2), %v666_v10 }
   0xc   : > { %612 = vmatprep.subr.bf16.mxu0 (!%p137_p2), %v684_v1  ;;  %626 = vmatprep.subr.bf16.mxu1 (!%p137_p2), %v684_v1 }
   0xd   : > { %s824_s13 = smov (!%p158_p3, %s542_s13), 1 }
   0xe   : > { %s547_s18 = sshll.u32 %s824_s13, 3 }
   0xf   : > { %s161_s23 = scalar_lea.vmem %s819_s0, %s547_s18  ;;  %613 = vmatpush3.bf16.msra.mxu0 %v663_v6  ;;  %627 = vmatpush3.bf16.msra.mxu1 %v668_v13 }
  0x10   : > { %v196_v4 = vld [vmem:[%s161_s23 + $0x4] sm:$0x1]  ;;  %v171_v5 = vld [vmem:[%s161_s23] sm:$0x1]  ;;  %v208_v7 = vld [vmem:[%s161_s23 + $0x6] sm:$0x1]  ;;  %614 = vmatprep.subr.bf16.mxu0 %v684_v1  ;;  %628 = vmatprep.subr.bf16.mxu1 %v684_v1 }
  0x11   : > { %198 = vrot.lane.b32.xlu1 %v196_v4, %s685_s26  ;;  %173 = vrot.lane.b32.xlu0 %v171_v5, %s685_s26  ;;  %v184_v8 = vld [vmem:[%s161_s23 + $0x2] sm:$0x1]  ;;  %v178_v11 = vld [vmem:[%s161_s23 + $0x1] sm:$0x1] }
  0x12   : > { %v190_v12 = vld [vmem:[%s161_s23 + $0x3] sm:$0x1]  ;;  %v202_v14 = vld [vmem:[%s161_s23 + $0x5] sm:$0x1]  ;;  %v214_v15 = vld [vmem:[%s161_s23 + $0x7] sm:$0x1] }
  0x13   : > { %615 = vmatpush3.bf16.msra.mxu0 %v665_v9  ;;  %629 = vmatpush3.bf16.msra.mxu1 %v670_v17 }
  0x14   : > { %616 = vmatprep.subr.bf16.mxu0 %v684_v1  ;;  %630 = vmatprep.subr.bf16.mxu1 %v684_v1 }
  0x15   : > { %210 = vrot.lane.b32.xlu1 %v208_v7, %s685_s26  ;;  %186 = vrot.lane.b32.xlu0 %v184_v8, %s685_s26 }
  0x17   : > { %617 = vmatpush3.bf16.msra.mxu0 %v667_v16  ;;  %631 = vmatpush3.bf16.msra.mxu1 %v672_v18 }
  0x18   : > { %636 = vmatprep.subr.bf16.mxu0 %v684_v1 }
  0x19   : > { %180 = vrot.lane.b32.xlu0 %v178_v11, %s685_s26  ;;  %192 = vrot.lane.b32.xlu1 %v190_v12, %s685_s26 }
  0x1d   : > { %204 = vrot.lane.b32.xlu0 %v202_v14, %s685_s26  ;;  %216 = vrot.lane.b32.xlu1 %v214_v15, %s685_s26  ;;  %s548_s26 = sshll.u32 %s824_s13, 2 }
  0x1e   : > { %s165_s29 = scalar_lea.vmem %s822_s3, %s548_s26 }
  0x83   : > { %v199_v19 = vpop.permute.xlu1 %198  ;;  %v174_v20 = vpop.permute.xlu0 %173 }
  0x84   : > { %201 = vst.msk [vmem:[#allocation2 + $0x7] sm:$0x1] %vm176_vm3, %v199_v19  ;;  %177 = vst.msk [vmem:[#allocation2 + $0x5] sm:$0x1] %vm176_vm3, %v174_v20 }
  0x87   : > { %v211_v21 = vpop.permute.xlu1 %210  ;;  %v187_v22 = vpop.permute.xlu0 %186 }
  0x88   : > { %213 = vst.msk [vmem:[#allocation2 + $0x8] sm:$0x1] %vm176_vm3, %v211_v21  ;;  %189 = vst.msk [vmem:[#allocation2 + $0x6] sm:$0x1] %vm176_vm3, %v187_v22 }
  0x8b   : > { %v181_v23 = vpop.permute.xlu0 %180  ;;  %v193_v24 = vpop.permute.xlu1 %192 }
  0x8c   : > { %183 = vst.msk [vmem:[#allocation2 + $0x1] sm:$0x1] %vm176_vm3, %v181_v23  ;;  %195 = vst.msk [vmem:[#allocation2 + $0x2] sm:$0x1] %vm176_vm3, %v193_v24 }
  0x8f   : > { %v205_v25 = vpop.permute.xlu0 %204  ;;  %v232_v26 = vld [vmem:[#allocation2 + $0x5] sm:$0xf]  ;;  %v217_v28 = vpop.permute.xlu1 %216 }
  0x90   : > { %207 = vst.msk [vmem:[#allocation2 + $0x3] sm:$0x1] %vm176_vm3, %v205_v25  ;;  %v233_v29 = vpack.c.bf16 %v232_v26, %v232_v26  ;;  %219 = vst.msk [vmem:[#allocation2 + $0x4] sm:$0x1] %vm176_vm3, %v217_v28 }
  0x92   : > { %619 = vmatmul.mubr.msk.bf16.vlgmr.msra.gmra.mrb[0].mxu0 %vm167_vm0, %v233_v29 }
  0x93   : > { %637 = vmatpush3.bf16.msra.mxu0 %v669_v27  ;;  %646 = vmatprep.mubr.msk.bf16.mxu0 %vm686_vm2, %v684_v1 }
  0x94   : > { %638 = vmatprep.subr.bf16.mxu0 %v684_v1 }
  0x97   : > { %639 = vmatpush3.bf16.msra.mxu0 %v671_v30  ;;  %v220_v31 = vld [vmem:[#allocation2] sm:$0xf] }
  0x98   : > { %640 = vmatprep.subr.bf16.mxu0 %v684_v1  ;;  %v221_v33 = vpack.c.bf16 %v220_v31, %v220_v31  ;;  %v391_v36 = vld [vmem:[#allocation2 + $0x1] sm:$0xf] }
  0x99   : > { %v392_v37 = vpack.c.bf16 %v391_v36, %v391_v36 }
  0x9a   : > { %633 = vmatmul.mubr.msk.bf16.vlgmr.msra.gmra.mrb[0].mxu1 %vm167_vm0, %v221_v33 }
  0x9b   : > { %641 = vmatpush3.bf16.msra.mxu0 %v673_v32 }
  0x9c   : > { %642 = vmatprep.subr.bf16.mxu0 %v684_v1 }
  0x9f   : > { %643 = vmatpush3.bf16.msra.mxu0 %v674_v34 }
  0xa0   : > { %644 = vmatprep.subr.bf16.mxu0 %v684_v1 }
  0xa3   : > { %645 = vmatpush3.bf16.msra.mxu0 %v675_v35 }
  0xa6   : > { %647 = vmatmul.mubr.msk.bf16.vlgmr.msra.gmra.mrb[4].mxu0 %vm167_vm0, %v392_v37 }
 0x165   : > { %v312_v38 = vpop.f32.mrb[0].mxu0 }
 0x166   : > { %v620_v39 = vpop.f32.mrb[1].mxu0 }
 0x167   : > { %v315_v40 = vpop.f32.mrb[2].mxu0 }
 0x168   : > { %v621_v41 = vpop.f32.mrb[3].mxu0 }
 0x16d   : > { %v385_v42 = vpop.f32.mrb[0].mxu1 }
 0x16e   : > { %v386_v43 = vadd.f32 %v385_v42, %v312_v38  ;;  %v634_v44 = vpop.f32.mrb[1].mxu1 }
 0x16f   : > { %v388_v45 = vpop.f32.mrb[2].mxu1 }
 0x170   : > { %v635_v46 = vpop.f32.mrb[3].mxu1 }
 0x179   : > { %v471_v47 = vpop.f32.mrb[4].mxu0 }
 0x17a   : > { %v477_v49 = vadd.f32 %v471_v47, %v386_v43  ;;  %v648_v50 = vpop.f32.mrb[5].mxu0 }
 0x17b   : > { %v474_v51 = vpop.f32.mrb[6].mxu0 }
 0x17c   : > { %v485_v52 = vadd.f32 %v587_v48, %v477_v49  ;;  %v649_v53 = vpop.f32.mrb[7].mxu0 }
 0x17e   : > { %v486_v54 = vmax.f32 %v485_v52, 0.0 }
 0x180   : > { %488 = vst.msk [vmem:[%s165_s29] sm:$0xf] %vm487_vm4, %v486_v54 }
 0x181 PF: > { %s13_s12 = sadd.s32 1, %s682_s12  }
 0x182   : > { %p10_p4 = scmp.ge.s32.totalorder %s13_s12, 4  }
 0x184   :  { %12 = sbr.rel (!%p10_p4) target bundleno = 1 (0x1), region = 64 }

// kernel: usrm_forward.8
= control target key start
LH: loop header
LB: loop body
LE: loop exit
PB: predicated region body
PF: predicated region fallthrough
CT: control target
= control target key end

     0   :  { %s620_s12 = smov 0   ;;  %s690_s0 = inlined_call_operand.vmem [shape: f32[2,4,32], index: 0, kind: input, shape index: {}]   ;;  %s691_s1 = inlined_call_operand.vmem [shape: bf16[3,64,32], index: 1, kind: input, shape index: {}]   ;;  %s692_s2 = inlined_call_operand.vmem [shape: f32[1,32], index: 2, kind: input, shape index: {}]   ;;  %s693_s3 = inlined_call_operand.vmem [shape: f32[2,4,32], index: 3, kind: output, shape index: {}]  }
   0x1 LB: > { %s474_s13 = sadd.s32 4294967295, %s595_s12   ;;  %p478_p0 = scmp.ge.s32.totalorder %s595_s12, 1  ;;  %s595_s12 = sphi %s620_s12, %s13_s12  }
   0x2   : > { %p136_p1 = scmp.lt.s32.totalorder %s595_s12, 3 }
   0x4   : > { %p137_p2 = pnand %p478_p0, %p136_p1 }
   0x5   : > { %p158_p3 = scmp.lt.s32.totalorder (!%p137_p2), %s474_s13, 1  ;;  %v577_v0 = vld [vmem:[%s691_s1 + $0x20] sm:$0xff] (!%p137_p2)   ;;  %v597_v1 = vmov (!%p137_p2), 0.0   ;;  %v579_v3 = vld [vmem:[%s691_s1 + $0x28] sm:$0xff] (!%p137_p2)   ;;  %vm167_vm0 = vcmask (!%p137_p2), 523264   ;;  %v581_v6 = vld [vmem:[%s691_s1 + $0x30] sm:$0xff] (!%p137_p2)  }
   0x6   : > { %140 = sbr.rel (%p137_p2) target bundleno = 377 (0x179), region = 32  ;;  %530 = vmatprep.subr.bf16.mxu0 (!%p137_p2), %v597_v1  ;;  %542 = vmatprep.subr.bf16.mxu1 (!%p137_p2), %v597_v1  ;;  %v578_v2 = vld [vmem:[%s691_s1] sm:$0xff] (!%p137_p2)   ;;  %168 = vst.msk [vmem:[#allocation2] sm:$0xff] (!%p137_p2), %vm167_vm0, %v597_v1  ;;  %v580_v4 = vld [vmem:[%s691_s1 + $0x8] sm:$0xff] (!%p137_p2)   ;;  %s598_s28 = smov (!%p137_p2), 16   ;;  %v582_v7 = vld [vmem:[%s691_s1 + $0x10] sm:$0xff] (!%p137_p2)  }
   0x7   : > { %531 = vmatpush3.bf16.msra.mxu0 (!%p137_p2), %v577_v0  ;;  %543 = vmatpush3.bf16.msra.mxu1 (!%p137_p2), %v578_v2  ;;  %vm599_vm1 = vmmov (!%p137_p2), 0   ;;  %v583_v8 = vld [vmem:[%s691_s1 + $0x38] sm:$0xff] (!%p137_p2)   ;;  %vm174_vm2 = vcmask (!%p137_p2), 388224   ;;  %v585_v13 = vld [vmem:[%s691_s1 + $0x40] sm:$0xff] (!%p137_p2)   ;;  %v586_v16 = vld [vmem:[%s691_s1 + $0x48] sm:$0xff] (!%p137_p2)   ;;  %vm419_vm3 = vcmask (!%p137_p2), 257024  }
   0x8   : > { %532 = vmatprep.subr.bf16.mxu0 (!%p137_p2), %v597_v1  ;;  %544 = vmatprep.subr.bf16.mxu1 (!%p137_p2), %v597_v1  ;;  %v584_v9 = vld [vmem:[%s691_s1 + $0x18] sm:$0xff] (!%p137_p2)   ;;  %v587_v17 = vld [vmem:[%s691_s1 + $0x50] sm:$0xff] (!%p137_p2)   ;;  %v512_v31 = vld [vmem:[%s692_s2] ss:$0 sm:$0xff] (!%p137_p2) }
   0x9   : > { %538 = vmatprep.mubr.msk.bf16.mxu0 (!%p137_p2), %vm599_vm1, %v597_v1  ;;  %550 = vmatprep.mubr.msk.bf16.mxu1 (!%p137_p2), %vm599_vm1, %v597_v1  ;;  %v588_v18 = vld [vmem:[%s691_s1 + $0x58] sm:$0xff] (!%p137_p2)  }
   0xb   : > { %533 = vmatpush3.bf16.msra.mxu0 (!%p137_p2), %v579_v3  ;;  %545 = vmatpush3.bf16.msra.mxu1 (!%p137_p2), %v580_v4 }
   0xc   : > { %534 = vmatprep.subr.bf16.mxu0 (!%p137_p2), %v597_v1  ;;  %546 = vmatprep.subr.bf16.mxu1 (!%p137_p2), %v597_v1 }
   0xd   : > { %s695_s13 = smov (!%p158_p3, %s474_s13), 1 }
   0xe   : > { %s479_s20 = sshll.u32 %s695_s13, 2 }
   0xf   : > { %s161_s25 = scalar_lea.vmem %s690_s0, %s479_s20  ;;  %535 = vmatpush3.bf16.msra.mxu0 %v581_v6  ;;  %547 = vmatpush3.bf16.msra.mxu1 %v582_v7  ;;  %s165_s23 = scalar_lea.vmem %s693_s3, %s479_s20 }
  0x10   : > { %v169_v5 = vld [vmem:[%s161_s25] sm:$0xf]  ;;  %536 = vmatprep.subr.bf16.mxu0 %v597_v1  ;;  %548 = vmatprep.subr.bf16.mxu1 %v597_v1 }
  0x11   : > { %171 = vrot.lane.b32.xlu0 %v169_v5, %s598_s28 }
  0x13   : > { %537 = vmatpush3.bf16.msra.mxu0 %v583_v8  ;;  %549 = vmatpush3.bf16.msra.mxu1 %v584_v9 }
  0x14   : > { %554 = vmatprep.subr.bf16.mxu0 %v597_v1 }
  0x83   : > { %v172_v10 = vpop.permute.xlu0 %171 }
  0x84   : > { %175 = vst.msk [vmem:[#allocation2 + $0x2] sm:$0xf] %vm174_vm2, %v172_v10 }
  0x8b   : > { %v186_v11 = vld [vmem:[#allocation2 + $0x2] sm:$0xf] }
  0x8c   : > { %v176_v12 = vld [vmem:[#allocation2] sm:$0xf]  ;;  %v187_v14 = vpack.c.bf16 %v186_v11, %v186_v11  ;;  %v331_v19 = vld [vmem:[#allocation2 + $0x4] sm:$0xf] }
  0x8d   : > { %v177_v15 = vpack.c.bf16 %v176_v12, %v176_v12  ;;  %v332_v20 = vpack.c.bf16 %v331_v19, %v331_v19 }
  0x8e   : > { %539 = vmatmul.mubr.msk.bf16.vlgmr.msra.gmra.mrb[0].mxu0 %vm167_vm0, %v187_v14 }
  0x8f   : > { %551 = vmatmul.mubr.msk.bf16.vlgmr.msra.gmra.mrb[0].mxu1 %vm167_vm0, %v177_v15  ;;  %555 = vmatpush3.bf16.msra.mxu0 %v585_v13 }
  0x90   : > { %562 = vmatprep.mubr.msk.bf16.mxu0 %vm599_vm1, %v597_v1  ;;  %556 = vmatprep.subr.bf16.mxu0 %v597_v1 }
  0x93   : > { %557 = vmatpush3.bf16.msra.mxu0 %v586_v16 }
  0x94   : > { %558 = vmatprep.subr.bf16.mxu0 %v597_v1 }
  0x97   : > { %559 = vmatpush3.bf16.msra.mxu0 %v587_v17 }
  0x98   : > { %560 = vmatprep.subr.bf16.mxu0 %v597_v1 }
  0x9b   : > { %561 = vmatpush3.bf16.msra.mxu0 %v588_v18 }
  0x9e   : > { %563 = vmatmul.mubr.msk.bf16.vlgmr.msra.gmra.mrb[4].mxu0 %vm167_vm0, %v332_v20 }
 0x161   : > { %v258_v21 = vpop.f32.mrb[0].mxu0 }
 0x162   : > { %v325_v22 = vpop.f32.mrb[0].mxu1  ;;  %v540_v24 = vpop.f32.mrb[1].mxu0 }
 0x163   : > { %v326_v23 = vadd.f32 %v325_v22, %v258_v21  ;;  %v552_v25 = vpop.f32.mrb[1].mxu1  ;;  %v261_v26 = vpop.f32.mrb[2].mxu0 }
 0x164   : > { %v328_v27 = vpop.f32.mrb[2].mxu1  ;;  %v541_v28 = vpop.f32.mrb[3].mxu0 }
 0x165   : > { %v553_v29 = vpop.f32.mrb[3].mxu1 }
 0x171   : > { %v403_v30 = vpop.f32.mrb[4].mxu0 }
 0x172   : > { %v409_v32 = vadd.f32 %v403_v30, %v326_v23  ;;  %v564_v33 = vpop.f32.mrb[5].mxu0 }
 0x173   : > { %v406_v34 = vpop.f32.mrb[6].mxu0 }
 0x174   : > { %v417_v35 = vadd.f32 %v512_v31, %v409_v32  ;;  %v565_v36 = vpop.f32.mrb[7].mxu0 }
 0x176   : > { %v418_v37 = vmax.f32 %v417_v35, 0.0 }
 0x178   : > { %420 = vst.msk [vmem:[%s165_s23] sm:$0xf] %vm419_vm3, %v418_v37 }
 0x179 PF: > { %s13_s12 = sadd.s32 1, %s595_s12  }
 0x17a   : > { %p10_p4 = scmp.ge.s32.totalorder %s13_s12, 4  }
 0x17c   :  { %12 = sbr.rel (!%p10_p4) target bundleno = 1 (0x1), region = 64 }

// kernel: usrm_forward.9
= control target key start
LH: loop header
LB: loop body
LE: loop exit
PB: predicated region body
PF: predicated region fallthrough
CT: control target
= control target key end

     0   :  { %s642_s15 = smov 0   ;;  %s703_s0 = inlined_call_operand.vmem [shape: f32[2,4,32], index: 0, kind: input, shape index: {}]   ;;  %s704_s1 = inlined_call_operand.vmem [shape: f32[2,4,32], index: 1, kind: input, shape index: {}]   ;;  %s705_s2 = inlined_call_operand.vmem [shape: bf16[3,48,32], index: 2, kind: input, shape index: {}]   ;;  %s706_s3 = inlined_call_operand.vmem [shape: f32[1,32], index: 3, kind: input, shape index: {}]   ;;  %s707_s4 = inlined_call_operand.vmem [shape: f32[2,4,32], index: 4, kind: output, shape index: {}]  }
   0x1 LB: > { %s509_s16 = sadd.s32 4294967295, %s612_s15   ;;  %p513_p0 = scmp.ge.s32.totalorder %s612_s15, 1  ;;  %s612_s15 = sphi %s642_s15, %s14_s15  }
   0x2   : > { %p170_p1 = scmp.lt.s32.totalorder %s612_s15, 3 }
   0x4   : > { %p171_p2 = pnand %p513_p0, %p170_p1 }
   0x5   : > { %p198_p3 = scmp.lt.s32.totalorder (!%p171_p2), %s509_s16, 1  ;;  %v597_v0 = vld [vmem:[%s705_s2 + $0x18] sm:$0xff] (!%p171_p2)   ;;  %v614_v1 = vmov (!%p171_p2), 0.0   ;;  %vm211_vm0 = vcmask (!%p171_p2), 390144   ;;  %v598_v2 = vld [vmem:[%s705_s2] sm:$0xff] (!%p171_p2)   ;;  %v600_v4 = vld [vmem:[%s705_s2 + $0x8] sm:$0xff] (!%p171_p2)  }
   0x6   : > { %174 = sbr.rel (%p171_p2) target bundleno = 376 (0x178), region = 36  ;;  %556 = vmatprep.subr.bf16.mxu0 (!%p171_p2), %v614_v1  ;;  %566 = vmatprep.subr.bf16.mxu1 (!%p171_p2), %v614_v1  ;;  %212 = vst.msk [vmem:[#allocation2] sm:$0x3f] (!%p171_p2), %vm211_vm0, %v614_v1  ;;  %v599_v3 = vld [vmem:[%s705_s2 + $0x20] sm:$0xff] (!%p171_p2)   ;;  %vm615_vm1 = vmmov (!%p171_p2), 0   ;;  %v601_v5 = vld [vmem:[%s705_s2 + $0x28] sm:$0xff] (!%p171_p2)  }
   0x7   : > { %557 = vmatpush3.bf16.msra.mxu0 (!%p171_p2), %v597_v0  ;;  %567 = vmatpush3.bf16.msra.mxu1 (!%p171_p2), %v598_v2  ;;  %v602_v9 = vld [vmem:[%s705_s2 + $0x10] sm:$0xff] (!%p171_p2)   ;;  %s616_s10 = smov (!%p171_p2), 8   ;;  %vm220_vm2 = vcmask (!%p171_p2), 322624   ;;  %vm257_vm3 = vcmask (!%p171_p2), 392192   ;;  %v604_v16 = vld [vmem:[%s705_s2 + $0x38] sm:$0xff] (!%p171_p2)   ;;  %v605_v17 = vld [vmem:[%s705_s2 + $0x40] sm:$0xff] (!%p171_p2)  }
   0x8   : > { %558 = vmatprep.subr.bf16.mxu0 (!%p171_p2), %v614_v1  ;;  %562 = vmatprep.mubr.msk.bf16.mxu0 (!%p171_p2), %vm615_vm1, %v614_v1  ;;  %v603_v13 = vld [vmem:[%s705_s2 + $0x30] sm:$0xff] (!%p171_p2)   ;;  %v541_v30 = vld [vmem:[%s706_s3] ss:$0 sm:$0xff] (!%p171_p2)  ;;  %vm442_vm4 = vcmask (!%p171_p2), 257024  }
   0x9   : > { %568 = vmatprep.subr.bf16.mxu1 (!%p171_p2), %v614_v1  ;;  %572 = vmatprep.mubr.msk.bf16.mxu1 (!%p171_p2), %vm615_vm1, %v614_v1 }
   0xb   : > { %559 = vmatpush3.bf16.msra.mxu0 (!%p171_p2), %v599_v3  ;;  %569 = vmatpush3.bf16.msra.mxu1 (!%p171_p2), %v600_v4 }
   0xc   : > { %560 = vmatprep.subr.bf16.mxu0 (!%p171_p2), %v614_v1  ;;  %570 = vmatprep.subr.bf16.mxu1 (!%p171_p2), %v614_v1 }
   0xd   : > { %s709_s16 = smov (!%p198_p3, %s509_s16), 1 }
   0xe   : > { %s659_s23 = sshll.u32 %s709_s16, 2 }
   0xf   : > { %s201_s28 = scalar_lea.vmem %s703_s0, %s659_s23  ;;  %s205_s5 = scalar_lea.vmem %s704_s1, %s659_s23  ;;  %561 = vmatpush3.bf16.msra.mxu0 %v601_v5  ;;  %571 = vmatpush3.bf16.msra.mxu1 %v602_v9 }
  0x10   : > { %v213_v6 = vld [vmem:[%s201_s28] sm:$0xf]  ;;  %576 = vmatprep.subr.bf16.mxu0 %v614_v1  ;;  %s209_s22 = scalar_lea.vmem %s707_s4, %s659_s23 }
  0x11   : > { %v214_v7 = vld [vmem:[%s205_s5] sm:$0xf] }
  0x12   : > { %v215_v8 = vadd.f32 %v214_v7, %v213_v6 }
  0x14   : > { %217 = vrot.lane.b32.xlu0 %v215_v8, %s616_s10 }
  0x86   : > { %v218_v10 = vpop.permute.xlu0 %217 }
  0x87   : > { %221 = vst.msk [vmem:[#allocation2 + $0x1] sm:$0xf] %vm220_vm2, %v218_v10 }
  0x8e   : > { %v230_v11 = vld [vmem:[#allocation2 + $0x1] sm:$0xf] }
  0x8f   : > { %v222_v12 = vld [vmem:[#allocation2] sm:$0xf]  ;;  %v231_v14 = vpack.c.bf16 %v230_v11, %v230_v11 }
  0x90   : > { %v223_v15 = vpack.c.bf16 %v222_v12, %v222_v12  ;;  %v362_v18 = vld [vmem:[#allocation2 + $0x2] sm:$0xf] }
  0x91   : > { %563 = vmatmul.mubr.msk.bf16.vlgmr.msra.gmra.mrb[0].mxu0 %vm257_vm3, %v231_v14  ;;  %v363_v19 = vpack.c.bf16 %v362_v18, %v362_v18 }
  0x92   : > { %573 = vmatmul.mubr.msk.bf16.vlgmr.msra.gmra.mrb[0].mxu1 %vm257_vm3, %v223_v15  ;;  %577 = vmatpush3.bf16.msra.mxu0 %v603_v13 }
  0x93   : > { %582 = vmatprep.mubr.msk.bf16.mxu0 %vm615_vm1, %v614_v1  ;;  %578 = vmatprep.subr.bf16.mxu0 %v614_v1 }
  0x96   : > { %579 = vmatpush3.bf16.msra.mxu0 %v604_v16 }
  0x97   : > { %580 = vmatprep.subr.bf16.mxu0 %v614_v1 }
  0x9a   : > { %581 = vmatpush3.bf16.msra.mxu0 %v605_v17 }
  0x9d   : > { %583 = vmatmul.mubr.msk.bf16.vlgmr.msra.gmra.mrb[4].mxu0 %vm257_vm3, %v363_v19 }
 0x164   : > { %v295_v20 = vpop.f32.mrb[0].mxu0 }
 0x165   : > { %v356_v21 = vpop.f32.mrb[0].mxu1  ;;  %v564_v23 = vpop.f32.mrb[1].mxu0 }
 0x166   : > { %v357_v22 = vadd.f32 %v356_v21, %v295_v20  ;;  %v574_v24 = vpop.f32.mrb[1].mxu1  ;;  %v298_v25 = vpop.f32.mrb[2].mxu0 }
 0x167   : > { %v359_v26 = vpop.f32.mrb[2].mxu1  ;;  %v565_v27 = vpop.f32.mrb[3].mxu0 }
 0x168   : > { %v575_v28 = vpop.f32.mrb[3].mxu1 }
 0x170   : > { %v426_v29 = vpop.f32.mrb[4].mxu0 }
 0x171   : > { %v432_v31 = vadd.f32 %v426_v29, %v357_v22  ;;  %v584_v32 = vpop.f32.mrb[5].mxu0 }
 0x172   : > { %v429_v33 = vpop.f32.mrb[6].mxu0 }
 0x173   : > { %v440_v34 = vadd.f32 %v541_v30, %v432_v31  ;;  %v585_v35 = vpop.f32.mrb[7].mxu0 }
 0x175   : > { %v441_v36 = vmax.f32 %v440_v34, 0.0 }
 0x177   : > { %443 = vst.msk [vmem:[%s209_s22] sm:$0xf] %vm442_vm4, %v441_v36 }
 0x178 PF: > { %s14_s15 = sadd.s32 1, %s612_s15  }
 0x179   : > { %p11_p4 = scmp.ge.s32.totalorder %s14_s15, 4  }
 0x17b   :  { %13 = sbr.rel (!%p11_p4) target bundleno = 1 (0x1), region = 71 }

// kernel: usrm_forward.10
= control target key start
LH: loop header
LB: loop body
LE: loop exit
PB: predicated region body
PF: predicated region fallthrough
CT: control target
= control target key end

     0   :  { %s984_s21 = smov 0   ;;  %s1108_s0 = inlined_call_operand.vmem [shape: f32[2,8,64], index: 0, kind: input, shape index: {}]   ;;  %s1109_s1 = inlined_call_operand.vmem [shape: f32[2,4,32], index: 1, kind: input, shape index: {}]   ;;  %s1110_s2 = inlined_call_operand.vmem [shape: f32[8,4], index: 2, kind: input, shape index: {}]   ;;  %s1111_s3 = inlined_call_operand.vmem [shape: f32[32,64], index: 3, kind: input, shape index: {}]   ;;  %s1112_s4 = inlined_call_operand.vmem [shape: bf16[3,80,64], index: 4, kind: input, shape index: {}]   ;;  %s1113_s5 = inlined_call_operand.vmem [shape: f32[1,64], index: 5, kind: input, shape index: {}]   ;;  %s1114_s6 = inlined_call_operand.vmem [shape: f32[2,8,64], index: 6, kind: output, shape index: {}]  }
   0x1 LB: > { %s769_s22 = sadd.s32 4294967295, %s943_s21   ;;  %p773_p0 = scmp.ge.s32.totalorder %s943_s21, 1  ;;  %s943_s21 = sphi %s984_s21, %s16_s21  }
   0x2   : > { %p220_p1 = scmp.lt.s32.totalorder %s943_s21, 3 }
   0x4   : > { %p221_p2 = pnand %p773_p0, %p220_p1 }
   0x5   : > { %p252_p3 = scmp.lt.s32.totalorder (!%p221_p2), %s769_s22, 1  ;;  %v945_v0 = vmov (!%p221_p2), 0.0   ;;  %vm276_vm0 = vcmask (!%p221_p2), 1043456   ;;  %vm946_vm1 = vmmov (!%p221_p2), 0   ;;  %vm272_vm2 = vcmask (!%p221_p2), 31744   ;;  %v350_v1 = vld [vmem:[%s1111_s3] sm:$0xff] (!%p221_p2) }
   0x6   : > { %224 = sbr.rel (%p221_p2) target bundleno = 808 (0x328), region = 44  ;;  %846 = vmatprep.subr.mxu1 (!%p221_p2), %v945_v0  ;;  %848 = vmatprep.mubr.msk.f32.mxu1 (!%p221_p2), %vm946_vm1, %v945_v0  ;;  %v351_v2 = vld [vmem:[%s1111_s3 + $0x8] sm:$0xff] (!%p221_p2)  ;;  %v271_v3 = vld [vmem:[%s1110_s2] sm:$0xff] (!%p221_p2)  ;;  %v352_v4 = vld [vmem:[%s1111_s3 + $0x10] sm:$0xff] (!%p221_p2)  ;;  %v947_v8 = vmov (!%p221_p2), 0.0|0.0   ;;  %vm354_vm3 = vcmask (!%p221_p2), 261120  }
   0x7   : > { %862 = vmatprep.subr.bf16.mxu0 (!%p221_p2), %v945_v0  ;;  %872 = vmatprep.mubr.msk.bf16.mxu0 (!%p221_p2), %vm946_vm1, %v945_v0  ;;  %v353_v5 = vld [vmem:[%s1111_s3 + $0x18] sm:$0xff] (!%p221_p2)  ;;  %v905_v6 = vpack.c.bf16 (!%p221_p2), %v351_v2, %v350_v1  ;;  %v922_v12 = vld [vmem:[%s1112_s4 + $0x28] sm:$0xff] (!%p221_p2)   ;;  %v923_v13 = vld [vmem:[%s1112_s4] sm:$0xff] (!%p221_p2)   ;;  %vm265_vm4 = vcmask (!%p221_p2), 654336   ;;  %vm267_vm5 = vcmask (!%p221_p2), 648192   ;;  %s948_s15 = smov (!%p221_p2), 8  }
   0x8   : > { %v908_v9 = vpack.c.bf16 (!%p221_p2), %v353_v5, %v352_v4  ;;  %266 = vst.msk [vmem:[#allocation2] sm:$0xff] (!%p221_p2), %vm265_vm4, %v945_v0  ;;  %863 = vmatpush3.bf16.msra.mxu0 (!%p221_p2), %v922_v12  ;;  %v924_v14 = vld [vmem:[%s1112_s4 + $0x30] sm:$0xff] (!%p221_p2)   ;;  %v925_v15 = vld [vmem:[%s1112_s4 + $0x8] sm:$0xff] (!%p221_p2)   ;;  %v926_v16 = vld [vmem:[%s1112_s4 + $0x38] sm:$0xff] (!%p221_p2)   ;;  %vm433_vm6 = vcmask (!%p221_p2), 588864   ;;  %vm702_vm7 = vcmask (!%p221_p2), 523264  }
   0x9   : > { %268 = vst.msk [vmem:[#allocation2 + $0x8] sm:$0x3] (!%p221_p2), %vm267_vm5, %v945_v0  ;;  %864 = vmatprep.subr.bf16.mxu0 (!%p221_p2), %v945_v0  ;;  %v927_v17 = vld [vmem:[%s1112_s4 + $0x10] sm:$0xff] (!%p221_p2)   ;;  %v928_v18 = vld [vmem:[%s1112_s4 + $0x40] sm:$0xff] (!%p221_p2)   ;;  %v929_v19 = vld [vmem:[%s1112_s4 + $0x18] sm:$0xff] (!%p221_p2)  }
   0xa   : > { %v930_v20 = vld [vmem:[%s1112_s4 + $0x48] sm:$0xff] (!%p221_p2)   ;;  %v931_v21 = vld [vmem:[%s1112_s4 + $0x20] sm:$0xff] (!%p221_p2)   ;;  %v932_v29 = vld [vmem:[%s1112_s4 + $0x50] sm:$0xff] (!%p221_p2)  }
   0xb   : > { %v933_v32 = vld [vmem:[%s1112_s4 + $0x58] sm:$0xff] (!%p221_p2)   ;;  %v934_v33 = vld [vmem:[%s1112_s4 + $0x60] sm:$0xff] (!%p221_p2)   ;;  %v935_v34 = vld [vmem:[%s1112_s4 + $0x68] sm:$0xff] (!%p221_p2)  }
   0xc   : > { %865 = vmatpush3.bf16.msra.mxu0 (!%p221_p2), %v924_v14  ;;  %v936_v35 = vld [vmem:[%s1112_s4 + $0x70] sm:$0xff] (!%p221_p2)   ;;  %v818_v48 = vld [vmem:[%s1113_s5] ss:$0 sm:$0xff] (!%p221_p2) }
   0xd   : > { %s1116_s22 = smov (!%p252_p3, %s769_s22), 1  ;;  %866 = vmatprep.subr.bf16.mxu0 %v945_v0 }
   0xe   : > { %s775_s29 = sshll.u32 %s1116_s22, 2  ;;  %s774_s7 = sshll.u32 %s1116_s22, 3 }
   0xf   : > { %s259_s12 = scalar_lea.vmem %s1109_s1, %s775_s29  ;;  %s255_s14 = scalar_lea.vmem %s1108_s0, %s774_s7 }
  0x10   : > { %v270_v7 = vld [vmem:[%s259_s12] sm:$0xf]  ;;  %867 = vmatpush3.bf16.msra.mxu0 %v926_v16  ;;  %s263_s9 = scalar_lea.vmem %s1114_s6, %s774_s7 }
  0x11   : > { %847 = vmatpush3.msk.msra.mxu1 %vm276_vm0, %v270_v7  ;;  %868 = vmatprep.subr.bf16.mxu0 %v945_v0  ;;  %v269_v22 = vld [vmem:[%s255_s14] sm:$0xff] }
  0x12   : > { %849 = vmatmul.mubr.msk.f32.vlgmr.msra.gmra.mrb[0].mxu1 %vm272_vm2, %v271_v3  ;;  %904 = vmatprep.subr.bf16.mxu1 %v947_v8 }
  0x13   : > { %906 = vmatpush3.bf16.msra.mxu1 %v905_v6  ;;  %859 = vmatprep.mubr.msk.f32.mxu1 %vm946_vm1, %v945_v0 }
  0x14   : > { %907 = vmatprep.subr.bf16.mxu1 %v947_v8  ;;  %869 = vmatpush3.bf16.msra.mxu0 %v928_v18 }
  0x15   : > { %870 = vmatprep.subr.bf16.mxu0 %v945_v0 }
  0x17   : > { %909 = vmatpush3.bf16.msra.mxu1 %v908_v9 }
  0x18   : > { %876 = vmatprep.subr.bf16.mxu1 %v945_v0  ;;  %871 = vmatpush3.bf16.msra.mxu0 %v930_v20 }
  0x19   : > { %890 = vmatprep.subr.bf16.mxu0 %v945_v0 }
  0xe5   : > { %v346_v10 = vpop.f32.mrb[0].mxu1 }
  0xe6   : > { %v850_v11 = vpop.f32.mrb[1].mxu1  ;;  %860 = vmatmul.mubr.msk.f32.vlgmr.msra.gmra.mrb[2].mxu1 %vm354_vm3, %v346_v10 }
  0xe7   : > { %886 = vmatprep.mubr.msk.bf16.mxu1 %vm946_vm1, %v945_v0  ;;  %877 = vmatpush3.bf16.msra.mxu1 %v923_v13 }
  0xe8   : > { %878 = vmatprep.subr.bf16.mxu1 %v945_v0 }
  0xeb   : > { %879 = vmatpush3.bf16.msra.mxu1 %v925_v15 }
  0xec   : > { %880 = vmatprep.subr.bf16.mxu1 %v945_v0 }
  0xef   : > { %881 = vmatpush3.bf16.msra.mxu1 %v927_v17 }
  0xf0   : > { %882 = vmatprep.subr.bf16.mxu1 %v945_v0 }
  0xf3   : > { %883 = vmatpush3.bf16.msra.mxu1 %v929_v19 }
  0xf4   : > { %884 = vmatprep.subr.bf16.mxu1 %v945_v0 }
  0xf7   : > { %885 = vmatpush3.bf16.msra.mxu1 %v931_v21 }
 0x1b9   : > { %v424_v23 = vpop.f32.mrb[2].mxu1 }
 0x1ba   : > { %v428_v24 = vadd.f32 %v424_v23, %v269_v22  ;;  %v861_v25 = vpop.f32.mrb[3].mxu1 }
 0x1bc   : > { %430 = vrot.lane.b32.xlu0 %v428_v24, %s948_s15 }
 0x22e   : > { %v431_v26 = vpop.permute.xlu0 %430 }
 0x22f   : > { %434 = vst.msk [vmem:[#allocation2 + $0x1] sm:$0xff] %vm433_vm6, %v431_v26 }
 0x236   : > { %v447_v27 = vld [vmem:[#allocation2 + $0x1] sm:$0xff] }
 0x237   : > { %v435_v28 = vld [vmem:[#allocation2] sm:$0xff]  ;;  %v448_v30 = vpack.c.bf16 %v447_v27, %v447_v27 }
 0x238   : > { %v436_v31 = vpack.c.bf16 %v435_v28, %v435_v28  ;;  %v606_v36 = vld [vmem:[#allocation2 + $0x2] sm:$0xff] }
 0x239   : > { %873 = vmatmul.mubr.msk.bf16.vlgmr.msra.gmra.mrb[0].mxu0 %vm265_vm4, %v448_v30  ;;  %v607_v37 = vpack.c.bf16 %v606_v36, %v606_v36 }
 0x23a   : > { %887 = vmatmul.mubr.msk.bf16.vlgmr.msra.gmra.mrb[4].mxu1 %vm265_vm4, %v436_v31  ;;  %891 = vmatpush3.bf16.msra.mxu0 %v932_v29 }
 0x23b   : > { %900 = vmatprep.mubr.msk.bf16.mxu0 %vm946_vm1, %v945_v0  ;;  %892 = vmatprep.subr.bf16.mxu0 %v945_v0 }
 0x23e   : > { %893 = vmatpush3.bf16.msra.mxu0 %v933_v32 }
 0x23f   : > { %894 = vmatprep.subr.bf16.mxu0 %v945_v0 }
 0x242   : > { %895 = vmatpush3.bf16.msra.mxu0 %v934_v33 }
 0x243   : > { %896 = vmatprep.subr.bf16.mxu0 %v945_v0 }
 0x246   : > { %897 = vmatpush3.bf16.msra.mxu0 %v935_v34 }
 0x247   : > { %898 = vmatprep.subr.bf16.mxu0 %v945_v0 }
 0x24a   : > { %899 = vmatpush3.bf16.msra.mxu0 %v936_v35 }
 0x24d   : > { %901 = vmatmul.mubr.msk.bf16.vlgmr.msra.gmra.mrb[4].mxu0 %vm265_vm4, %v607_v37 }
 0x30c   : > { %v527_v38 = vpop.f32.mrb[0].mxu0 }
 0x30d   : > { %v600_v39 = vpop.f32.mrb[4].mxu1  ;;  %v874_v41 = vpop.f32.mrb[1].mxu0 }
 0x30e   : > { %v601_v40 = vadd.f32 %v600_v39, %v527_v38  ;;  %v888_v42 = vpop.f32.mrb[5].mxu1  ;;  %v530_v43 = vpop.f32.mrb[2].mxu0 }
 0x30f   : > { %v603_v44 = vpop.f32.mrb[6].mxu1  ;;  %v875_v45 = vpop.f32.mrb[3].mxu0 }
 0x310   : > { %v889_v46 = vpop.f32.mrb[7].mxu1 }
 0x320   : > { %v686_v47 = vpop.f32.mrb[4].mxu0 }
 0x321   : > { %v692_v49 = vadd.f32 %v686_v47, %v601_v40  ;;  %v902_v50 = vpop.f32.mrb[5].mxu0 }
 0x322   : > { %v689_v51 = vpop.f32.mrb[6].mxu0 }
 0x323   : > { %v700_v52 = vadd.f32 %v818_v48, %v692_v49  ;;  %v903_v53 = vpop.f32.mrb[7].mxu0 }
 0x325   : > { %v701_v54 = vmax.f32 %v700_v52, 0.0 }
 0x327   : > { %703 = vst.msk [vmem:[%s263_s9] sm:$0xff] %vm702_vm7, %v701_v54 }
 0x328 PF: > { %s16_s21 = sadd.s32 1, %s943_s21  }
 0x329   : > { %p13_p4 = scmp.ge.s32.totalorder %s16_s21, 4  }
 0x32b   :  { %15 = sbr.rel (!%p13_p4) target bundleno = 1 (0x1), region = 79 }

// kernel: tile.58
= control target key start
LH: loop header
LB: loop body
LE: loop exit
PB: predicated region body
PF: predicated region fallthrough
CT: control target
= control target key end

     0   :  { %s28_s0 = inlined_call_operand.vmem [shape: f32[8], index: 0, kind: input, shape index: {}]   ;;  %s29_s1 = inlined_call_operand.vmem [shape: f32[16,8], index: 1, kind: output, shape index: {}]  }
   0x1   :  { %v4_v0 = vld [vmem:[%s28_s0] ss:$0 sm:$0xff] }
   0x2   :  { %5 = vst [vmem:[%s29_s1] sm:$0xff] %v4_v0  ;;  %8 = vst [vmem:[%s29_s1 + $0x8] sm:$0xff] %v4_v0 }

// kernel: tile.59
= control target key start
LH: loop header
LB: loop body
LE: loop exit
PB: predicated region body
PF: predicated region fallthrough
CT: control target
= control target key end

     0   :  { %s131_s10 = smov 120   ;;  %s132_s11 = smov 104   ;;  %vm3_vm0 = vcmask 64512   ;;  %vm9_vm1 = vcmask 1048512   ;;  %vm15_vm2 = vcmask 982912   ;;  %vm21_vm3 = vcmask 917312   ;;  %s207_s0 = inlined_call_operand.vmem [shape: f32[16,8], index: 0, kind: input, shape index: {}]   ;;  %s208_s1 = inlined_call_operand.vmem [shape: f32[1,128], index: 1, kind: output, shape index: {}]  }
   0x1   :  { %v101_v0 = vld [vmem:[%s207_s0 + $0xf] sm:$0x1]   ;;  %v103_v1 = vld [vmem:[%s207_s0 + $0xd] sm:$0x1]   ;;  %v102_v2 = vld [vmem:[%s207_s0 + $0xe] sm:$0x1]  }
   0x2   :  { %7 = vrot.lane.b32.xlu0 %v101_v0, %s131_s10  ;;  %19 = vrot.lane.b32.xlu1 %v103_v1, %s132_s11  ;;  %v104_v3 = vld [vmem:[%s207_s0 + $0xc] sm:$0x1]   ;;  %s133_s16 = smov 112   ;;  %s134_s17 = smov 96   ;;  %v105_v4 = vld [vmem:[%s207_s0 + $0xb] sm:$0x1]  }
   0x3   :  { %v106_v5 = vld [vmem:[%s207_s0 + $0xa] sm:$0x1]   ;;  %v2_v6 = vld [vmem:[%s207_s0] sm:$0x1]   ;;  %s135_s24 = smov 88   ;;  %s136_s25 = smov 80  }
   0x4   :  { %4 = vst.msk [vmem:[#allocation0] sm:$0x1] %vm3_vm0, %v2_v6   ;;  %v107_v7 = vld [vmem:[%s207_s0 + $0x9] sm:$0x1]   ;;  %v108_v8 = vld [vmem:[%s207_s0 + $0x8] sm:$0x1]  }
   0x5   :  { %s137_s30 = smov 72   ;;  %s138_s2 = smov 64   ;;  %v109_v9 = vld [vmem:[%s207_s0 + $0x7] sm:$0x1]   ;;  %v110_v10 = vld [vmem:[%s207_s0 + $0x6] sm:$0x1]  }
   0x6   :  { %13 = vrot.lane.b32.xlu0 %v102_v2, %s133_s16  ;;  %25 = vrot.lane.b32.xlu1 %v104_v3, %s134_s17  ;;  %s139_s7 = smov 56   ;;  %s140_s8 = smov 48   ;;  %v111_v11 = vld [vmem:[%s207_s0 + $0x5] sm:$0x1]   ;;  %v112_v12 = vld [vmem:[%s207_s0 + $0x4] sm:$0x1]  }
   0x7   :  { %s141_s13 = smov 40   ;;  %s142_s14 = smov 32   ;;  %v113_v13 = vld [vmem:[%s207_s0 + $0x3] sm:$0x1]   ;;  %v114_v14 = vld [vmem:[%s207_s0 + $0x2] sm:$0x1]  }
   0x8   :  { %s143_s19 = smov 24   ;;  %s144_s20 = smov 16   ;;  %v115_v15 = vld [vmem:[%s207_s0 + $0x1] sm:$0x1]   ;;  %vm27_vm4 = vcmask 851712   ;;  %vm33_vm5 = vcmask 786112  }
   0x9   :  { %s145_s0 = smov 8   ;;  %vm39_vm6 = vcmask 720512   ;;  %vm45_vm7 = vcmask 654912   ;;  %vm51_vm8 = vcmask 589312   ;;  %vm57_vm9 = vcmask 523712  }
   0xa   :  { %31 = vrot.lane.b32.xlu0 %v105_v4, %s135_s24  ;;  %37 = vrot.lane.b32.xlu1 %v106_v5, %s136_s25  ;;  %vm63_vm10 = vcmask 458112   ;;  %vm69_vm11 = vcmask 392512   ;;  %vm75_vm12 = vcmask 326912   ;;  %vm81_vm13 = vcmask 261312  }
   0xb   :  { %vm87_vm14 = vcmask 195712   ;;  %vm93_vm15 = vcmask 130112  }
   0xe   :  { %43 = vrot.lane.b32.xlu0 %v107_v7, %s137_s30  ;;  %49 = vrot.lane.b32.xlu1 %v108_v8, %s138_s2 }
  0x12   :  { %55 = vrot.lane.b32.xlu0 %v109_v9, %s139_s7  ;;  %61 = vrot.lane.b32.xlu1 %v110_v10, %s140_s8 }
  0x16   :  { %67 = vrot.lane.b32.xlu0 %v111_v11, %s141_s13  ;;  %73 = vrot.lane.b32.xlu1 %v112_v12, %s142_s14 }
  0x1a   :  { %79 = vrot.lane.b32.xlu0 %v113_v13, %s143_s19  ;;  %85 = vrot.lane.b32.xlu1 %v114_v14, %s144_s20 }
  0x1e   :  { %91 = vrot.lane.b32.xlu0 %v115_v15, %s145_s0 }
  0x74   :  { %v8_v16 = vpop.permute.xlu0 %7   ;;  %v20_v17 = vpop.permute.xlu1 %19  }
  0x75   :  { %10 = vst.msk [vmem:[#allocation0] sm:$0x1] %vm9_vm1, %v8_v16  }
  0x78   :  { %v14_v18 = vpop.permute.xlu0 %13   ;;  %v26_v19 = vpop.permute.xlu1 %25  }
  0x79   :  { %16 = vst.msk [vmem:[#allocation0] sm:$0x1] %vm15_vm2, %v14_v18  }
  0x7a   :  { %22 = vst.msk [vmem:[#allocation0] sm:$0x1] %vm21_vm3, %v20_v17  }
  0x7b   :  { %28 = vst.msk [vmem:[#allocation0] sm:$0x1] %vm27_vm4, %v26_v19  }
  0x7c   :  { %v32_v20 = vpop.permute.xlu0 %31   ;;  %v38_v21 = vpop.permute.xlu1 %37  }
  0x7d   :  { %34 = vst.msk [vmem:[#allocation0] sm:$0x1] %vm33_vm5, %v32_v20  }
  0x7e   :  { %40 = vst.msk [vmem:[#allocation0] sm:$0x1] %vm39_vm6, %v38_v21  }
  0x80   :  { %v44_v22 = vpop.permute.xlu0 %43   ;;  %v50_v23 = vpop.permute.xlu1 %49  }
  0x81   :  { %46 = vst.msk [vmem:[#allocation0] sm:$0x1] %vm45_vm7, %v44_v22  }
  0x82   :  { %52 = vst.msk [vmem:[#allocation0] sm:$0x1] %vm51_vm8, %v50_v23  }
  0x84   :  { %v56_v24 = vpop.permute.xlu0 %55   ;;  %v62_v25 = vpop.permute.xlu1 %61  }
  0x85   :  { %58 = vst.msk [vmem:[#allocation0] sm:$0x1] %vm57_vm9, %v56_v24  }
  0x86   :  { %64 = vst.msk [vmem:[#allocation0] sm:$0x1] %vm63_vm10, %v62_v25  }
  0x88   :  { %v68_v26 = vpop.permute.xlu0 %67   ;;  %v74_v27 = vpop.permute.xlu1 %73  }
  0x89   :  { %70 = vst.msk [vmem:[#allocation0] sm:$0x1] %vm69_vm11, %v68_v26  }
  0x8a   :  { %76 = vst.msk [vmem:[#allocation0] sm:$0x1] %vm75_vm12, %v74_v27  }
  0x8c   :  { %v80_v28 = vpop.permute.xlu0 %79   ;;  %v86_v29 = vpop.permute.xlu1 %85  }
  0x8d   :  { %82 = vst.msk [vmem:[#allocation0] sm:$0x1] %vm81_vm13, %v80_v28  }
  0x8e   :  { %88 = vst.msk [vmem:[#allocation0] sm:$0x1] %vm87_vm14, %v86_v29  }
  0x90   :  { %v92_v30 = vpop.permute.xlu0 %91  }
  0x91   :  { %94 = vst.msk [vmem:[#allocation0] sm:$0x1] %vm93_vm15, %v92_v30  }
  0x98   :  { %v98_v31 = vld [vmem:[#allocation0] sm:$0x1] }
  0x99   :  { %100 = vst [vmem:[%s208_s1] sm:$0x1] %v98_v31 }

// kernel: usrm_forward.11
= control target key start
LH: loop header
LB: loop body
LE: loop exit
PB: predicated region body
PF: predicated region fallthrough
CT: control target
= control target key end

     0   :  { %s1199_s21 = smov 0   ;;  %s1383_s0 = inlined_call_operand.vmem [shape: f32[2,16,128], index: 0, kind: input, shape index: {}]   ;;  %s1384_s1 = inlined_call_operand.vmem [shape: f32[2,8,64], index: 1, kind: input, shape index: {}]   ;;  %s1385_s2 = inlined_call_operand.vmem [shape: f32[16,8], index: 2, kind: input, shape index: {}]   ;;  %s1386_s3 = inlined_call_operand.vmem [shape: f32[64,128], index: 3, kind: input, shape index: {}]   ;;  %s1387_s4 = inlined_call_operand.vmem [shape: bf16[3,144,128], index: 4, kind: input, shape index: {}]   ;;  %s1388_s5 = inlined_call_operand.vmem [shape: f32[1,128], index: 5, kind: input, shape index: {}]   ;;  %s1389_s6 = inlined_call_operand.vmem [shape: f32[2,16,128], index: 6, kind: output, shape index: {}]  }
   0x1 LB: > { %s977_s22 = sadd.s32 4294967295, %s1159_s21   ;;  %p981_p0 = scmp.ge.s32.totalorder %s1159_s21, 1  ;;  %s1159_s21 = sphi %s1199_s21, %s16_s21  }
   0x2   : > { %p221_p1 = scmp.lt.s32.totalorder %s1159_s21, 3 }
   0x4   : > { %p222_p2 = pnand %p981_p0, %p221_p1 }
   0x5   : > { %p255_p3 = scmp.lt.s32.totalorder (!%p222_p2), %s977_s22, 1  ;;  %v281_v0 = vld [vmem:[%s1385_s2] sm:$0xff] (!%p222_p2)  ;;  %vm283_vm0 = vcmask (!%p222_p2), 64512   ;;  %v366_v2 = vld [vmem:[%s1386_s3 + $0x8] sm:$0xff] (!%p222_p2)  ;;  %v367_v3 = vld [vmem:[%s1386_s3 + $0x10] sm:$0xff] (!%p222_p2)  ;;  %vm373_vm1 = vcmask (!%p222_p2), 523264  }
   0x6   : > { %225 = sbr.rel (%p222_p2) target bundleno = 847 (0x34f), region = 44  ;;  %1077 = vmatprep.mubr.msk.f32.mxu1 (!%p222_p2), %vm283_vm0, %v281_v0  ;;  %v365_v1 = vld [vmem:[%s1386_s3] sm:$0xff] (!%p222_p2)  ;;  %v282_v4 = vld [vmem:[%s1385_s2 + $0x8] sm:$0xff] (!%p222_p2)  ;;  %v368_v5 = vld [vmem:[%s1386_s3 + $0x18] sm:$0xff] (!%p222_p2)  ;;  %vm276_vm2 = vcmask (!%p222_p2), 123904   ;;  %v1161_v19 = vmov (!%p222_p2), 0  }
   0x7   : > { %v1099_v6 = vpack.c.bf16 (!%p222_p2), %v366_v2, %v365_v1  ;;  %v369_v8 = vld [vmem:[%s1386_s3 + $0x20] sm:$0xff] (!%p222_p2)  ;;  %v370_v9 = vld [vmem:[%s1386_s3 + $0x28] sm:$0xff] (!%p222_p2)  ;;  %v1103_v10 = vpack.c.bf16 (!%p222_p2), %v368_v5, %v367_v3  ;;  %v371_v11 = vld [vmem:[%s1386_s3 + $0x30] sm:$0xff] (!%p222_p2)  ;;  %619 = vmatprep.subr.bf16.mxu0 (!%p222_p2), %v1161_v19  ;;  %v1162_v20 = vmov (!%p222_p2), 0.0   ;;  %vm271_vm3 = vcmask (!%p222_p2), 130048   ;;  %s1163_s17 = smov (!%p222_p2), 8  }
   0x8   : > { %v372_v12 = vld [vmem:[%s1386_s3 + $0x38] sm:$0xff] (!%p222_p2)  ;;  %v1107_v13 = vpack.c.bf16 (!%p222_p2), %v370_v9, %v369_v8  ;;  %v1126_v17 = vld [vmem:[%s1387_s4] sm:$0xff] (!%p222_p2)   ;;  %v1128_v18 = vld [vmem:[%s1387_s4 + $0x48] sm:$0xff] (!%p222_p2)   ;;  %275 = vst [vmem:[#allocation2 + $0x20] sm:$0x3] (!%p222_p2), %v1162_v20  ;;  %vm461_vm4 = vcmask (!%p222_p2), 1040384  }
   0x9   : > { %v1111_v14 = vpack.c.bf16 (!%p222_p2), %v372_v12, %v371_v11  ;;  %277 = vst.msk [vmem:[#allocation2 + $0x28] sm:$0x3] (!%p222_p2), %vm276_vm2, %v1162_v20  ;;  %270 = vst [vmem:[#allocation2] sm:$0xff] (!%p222_p2), %v1162_v20  ;;  %v1127_v21 = vld [vmem:[%s1387_s4 + $0x8] sm:$0xff] (!%p222_p2)   ;;  %620 = vmatpush1.bf16.msra.mxu0 (!%p222_p2), %v1128_v18  ;;  %v1130_v22 = vld [vmem:[%s1387_s4 + $0x50] sm:$0xff] (!%p222_p2)   ;;  %vm481_vm5 = vcmask (!%p222_p2), 1040448  }
   0xa   : > { %273 = vst [vmem:[#allocation2 + $0x10] sm:$0xff] (!%p222_p2), %v1162_v20  ;;  %621 = vmatprep.subr.bf16.mxu0 (!%p222_p2), %v1161_v19  ;;  %v1129_v23 = vld [vmem:[%s1387_s4 + $0x10] sm:$0xff] (!%p222_p2)   ;;  %v1132_v24 = vld [vmem:[%s1387_s4 + $0x58] sm:$0xff] (!%p222_p2)   ;;  %v1134_v26 = vld [vmem:[%s1387_s4 + $0x60] sm:$0xff] (!%p222_p2)   ;;  %vm483_vm6 = vcmask (!%p222_p2), 57344   ;;  %vm474_vm7 = vcmask (!%p222_p2), 1047617  }
   0xb   : > { %v1131_v25 = vld [vmem:[%s1387_s4 + $0x18] sm:$0xff] (!%p222_p2)   ;;  %v1133_v27 = vld [vmem:[%s1387_s4 + $0x20] sm:$0xff] (!%p222_p2)   ;;  %v1135_v28 = vld [vmem:[%s1387_s4 + $0x28] sm:$0xff] (!%p222_p2)   ;;  %272 = vst.msk [vmem:[#allocation2 + $0x8] sm:$0xff] (!%p222_p2), %vm271_vm3, %v1162_v20  ;;  %vm476_vm8 = vcmask (!%p222_p2), 64513   ;;  %vm478_vm9 = vcmask (!%p222_p2), 1047616  }
   0xc   : > { %274 = vst.msk [vmem:[#allocation2 + $0x18] sm:$0xff] (!%p222_p2), %vm271_vm3, %v1162_v20  ;;  %v1136_v29 = vld [vmem:[%s1387_s4 + $0x68] sm:$0xff] (!%p222_p2)   ;;  %v1137_v30 = vld [vmem:[%s1387_s4 + $0x30] sm:$0xff] (!%p222_p2)   ;;  %v1139_v34 = vld [vmem:[%s1387_s4 + $0x38] sm:$0xff] (!%p222_p2)   ;;  %vm536_vm10 = vsmask.f32 (!%p222_p2), 7424 }
   0xd   : > { %s1391_s22 = smov (!%p255_p3, %s977_s22), 1  ;;  %622 = vmatpush1.bf16.msra.mxu0 %v1130_v22  ;;  %v1138_v33 = vld [vmem:[%s1387_s4 + $0x70] sm:$0xff]   ;;  %v1140_v38 = vld [vmem:[%s1387_s4 + $0x78] sm:$0xff]   ;;  %v1141_v41 = vld [vmem:[%s1387_s4 + $0x40] sm:$0xff]   ;;  %vm789_vm11 = vcmask 1046528  }
   0xe   : > { %s984_s7 = sshll.u32 %s1391_s22, 3  ;;  %623 = vmatprep.subr.bf16.mxu0 %v1161_v19  ;;  %s1060_s19 = sshll.u32 %s1391_s22, 4  ;;  %v1142_v44 = vld [vmem:[%s1387_s4 + $0x80] sm:$0xff]   ;;  %v1143_v47 = vld [vmem:[%s1387_s4 + $0x88] sm:$0xff]   ;;  %v1144_v18 = vld [vmem:[%s1387_s4 + $0x90] sm:$0xff]  }
   0xf   : > { %s263_s14 = scalar_lea.vmem %s1384_s1, %s984_s7  ;;  %s259_s26 = scalar_lea.vmem %s1383_s0, %s1060_s19 }
  0x10   : > { %v280_v7 = vld [vmem:[%s263_s14] sm:$0xff]  ;;  %v279_v31 = vld [vmem:[%s259_s26 + $0x8] sm:$0xff]  ;;  %s268_s24 = scalar_lea.vmem %s1389_s6, %s1060_s19 }
  0x11   : > { %1075 = vmatprep.subr.mxu1 %v280_v7  ;;  %624 = vmatpush1.bf16.msra.mxu0 %v1132_v24  ;;  %v278_v32 = vld [vmem:[%s259_s26] sm:$0xff]  ;;  %v1145_v24 = vld [vmem:[%s1387_s4 + $0x98] sm:$0xff]  }
  0x12   : > { %1076 = vmatpush3.msra.mxu1 %v280_v7  ;;  %625 = vmatprep.subr.bf16.mxu0 %v1161_v19 }
  0x13   : > { %1078 = vmatmul.mubr.msk.f32.vlgmr.msra.gmra.mrb[0].mxu1 %vm283_vm0, %v282_v4  ;;  %1100 = vmatprep.subr.bf16.mxu1 %v1099_v6 }
  0x14   : > { %1102 = vmatpush3.bf16.msra.mxu1 %v1099_v6 }
  0x15   : > { %1104 = vmatprep.subr.bf16.mxu1 %v1103_v10  ;;  %626 = vmatpush1.bf16.msra.mxu0 %v1134_v26  ;;  %v1147_v26 = vld [vmem:[%s1387_s4 + $0xa8] sm:$0xff]  }
  0x16   : > { %627 = vmatprep.subr.bf16.mxu0 %v1161_v19 }
  0x18   : > { %1106 = vmatpush3.bf16.msra.mxu1 %v1103_v10 }
  0x19   : > { %1108 = vmatprep.subr.bf16.mxu1 %v1107_v13  ;;  %628 = vmatpush1.bf16.msra.mxu0 %v1136_v29  ;;  %v1150_v29 = vld [vmem:[%s1387_s4 + $0xc0] sm:$0xff]  }
  0x1a   : > { %629 = vmatprep.subr.bf16.mxu0 %v1161_v19 }
  0x1c   : > { %1110 = vmatpush3.bf16.msra.mxu1 %v1107_v13 }
  0x1d   : > { %1112 = vmatprep.subr.bf16.mxu1 %v1111_v14  ;;  %630 = vmatpush1.bf16.msra.mxu0 %v1138_v33 }
  0x1e   : > { %631 = vmatprep.subr.bf16.mxu0 %v1161_v19 }
  0x20   : > { %1114 = vmatpush3.bf16.msra.mxu1 %v1111_v14 }
  0x21   : > { %717 = vmatprep.subr.bf16.mxu1 %v1161_v19  ;;  %632 = vmatpush1.bf16.msra.mxu0 %v1140_v38 }
  0x22   : > { %633 = vmatprep.subr.bf16.mxu0 %v1161_v19 }
  0x25   : > { %634 = vmatpush1.bf16.msra.mxu0 %v1142_v44 }
  0x26   : > { %635 = vmatprep.subr.bf16.mxu0 %v1161_v19 }
  0x29   : > { %636 = vmatpush1.bf16.msra.mxu0 %v1143_v47 }
  0x2a   : > { %854 = vmatprep.subr.bf16.mxu0 %v1161_v19 }
  0xe6   : > { %v1079_v15 = vpop.f32.mrb[0].mxu1 }
  0xe7   : > { %v356_v16 = vpop.f32.mrb[1].mxu1 }
  0xe8   : > { %1096 = vmatprep.mubr.msk.f32.mxu1 %vm373_vm1, %v356_v16 }
  0xe9   : > { %1097 = vmatmul.mubr.msk.f32.vlgmr.msra.gmra.mrb[2].mxu1 %vm373_vm1, %v1079_v15 }
  0xea   : > { %718 = vmatpush1.bf16.msra.mxu1 %v1126_v17 }
  0xeb   : > { %719 = vmatprep.subr.bf16.mxu1 %v1161_v19 }
  0xee   : > { %720 = vmatpush1.bf16.msra.mxu1 %v1127_v21 }
  0xef   : > { %721 = vmatprep.subr.bf16.mxu1 %v1161_v19 }
  0xf2   : > { %722 = vmatpush1.bf16.msra.mxu1 %v1129_v23 }
  0xf3   : > { %723 = vmatprep.subr.bf16.mxu1 %v1161_v19 }
  0xf6   : > { %724 = vmatpush1.bf16.msra.mxu1 %v1131_v25  ;;  %v1146_v25 = vld [vmem:[%s1387_s4 + $0xa0] sm:$0xff]  }
  0xf7   : > { %725 = vmatprep.subr.bf16.mxu1 %v1161_v19 }
  0xfa   : > { %726 = vmatpush1.bf16.msra.mxu1 %v1133_v27  ;;  %v1148_v27 = vld [vmem:[%s1387_s4 + $0xb0] sm:$0xff]  }
  0xfb   : > { %727 = vmatprep.subr.bf16.mxu1 %v1161_v19 }
  0xfe   : > { %728 = vmatpush1.bf16.msra.mxu1 %v1135_v28  ;;  %v1149_v28 = vld [vmem:[%s1387_s4 + $0xb8] sm:$0xff]  }
  0xff   : > { %729 = vmatprep.subr.bf16.mxu1 %v1161_v19 }
 0x102   : > { %730 = vmatpush1.bf16.msra.mxu1 %v1137_v30  ;;  %v1151_v30 = vld [vmem:[%s1387_s4 + $0xc8] sm:$0xff]  }
 0x103   : > { %731 = vmatprep.subr.bf16.mxu1 %v1161_v19 }
 0x106   : > { %732 = vmatpush1.bf16.msra.mxu1 %v1139_v34  ;;  %v1152_v34 = vld [vmem:[%s1387_s4 + $0xd0] sm:$0xff]  }
 0x107   : > { %733 = vmatprep.subr.bf16.mxu1 %v1161_v19 }
 0x10a   : > { %734 = vmatpush1.bf16.msra.mxu1 %v1141_v41 }
 0x1bc   : > { %v1098_v35 = vpop.f32.mrb[2].mxu1 }
 0x1bd   : > { %v456_v36 = vadd.f32 %v1098_v35, %v279_v31  ;;  %v446_v37 = vpop.f32.mrb[3].mxu1 }
 0x1be   : > { %v455_v39 = vadd.f32 %v446_v37, %v278_v32 }
 0x1bf   : > { %v458_v40 = vmax.f32 %v456_v36, 0.0 }
 0x1c0   : > { %v457_v42 = vmax.f32 %v455_v39, 0.0 }
 0x1c1   : > { %v463_v43 = vrot.slane %v458_v40, 7 }
 0x1c2   : > { %v462_v45 = vrot.slane %v457_v42, 7 }
 0x1c3   : > { %469 = vrot.lane.b32.xlu1 %v463_v43, %s1163_s17 }
 0x1c4   : > { %465 = vrot.lane.b32.xlu0 %v462_v45, %s1163_s17  ;;  %v464_v46 = vsel %vm461_vm4, %v462_v45, %v463_v43 }
 0x1c8   : > { %467 = vrot.lane.b32.xlu0 %v464_v46, %s1163_s17 }
 0x235   : > { %v470_v48 = vpop.permute.xlu1 %469 }
 0x236   : > { %482 = vst.msk [vmem:[#allocation2 + $0x20] sm:$0x1] %vm481_vm5, %v470_v48  ;;  %v466_v49 = vpop.permute.xlu0 %465 }
 0x237   : > { %484 = vst.msk [vmem:[#allocation2 + $0x28] sm:$0x1] %vm483_vm6, %v470_v48 }
 0x238   : > { %475 = vst.msk [vmem:[#allocation2] sm:$0xfe] %vm474_vm7, %v466_v49 }
 0x239   : > { %477 = vst.msk [vmem:[#allocation2 + $0x8] sm:$0xfe] %vm476_vm8, %v466_v49 }
 0x23a   : > { %v468_v50 = vpop.permute.xlu0 %467 }
 0x23b   : > { %479 = vst.msk [vmem:[#allocation2 + $0x10] sm:$0xff] %vm478_vm9, %v468_v50 }
 0x23c   : > { %480 = vst.msk [vmem:[#allocation2 + $0x18] sm:$0xff] %vm283_vm0, %v468_v50 }
 0x23d   : > { %v511_v52 = vld [vmem:[#allocation2 + $0x20] sm:$0x1] }
 0x23e   : > { %v512_v51 = vld [vmem:[#allocation2 + $0x28] sm:$0x1]  ;;  %v515_v57 = vpack.c.bf16 %v511_v52, %v511_v52  ;;  %v760_v32 = vld [vmem:[#allocation2 + $0x20] sm:$0x3] }
 0x23f   : > { %v516_v53 = vpack.c.bf16 %v512_v51, %v512_v51  ;;  %v485_v55 = vld [vmem:[#allocation2] sm:$0xff]  ;;  %v761_v1 = vld [vmem:[#allocation2 + $0x28] sm:$0x3]  ;;  %v764_v35 = vpack.c.bf16 %v760_v32, %v760_v32 }
 0x240   : > { %v486_v54 = vld [vmem:[#allocation2 + $0x8] sm:$0xff]  ;;  %v509_v60 = vld [vmem:[#allocation2] sm:$0xfe]  ;;  %v545_v6 = vshll.u32 %v515_v57, 16  ;;  %v765_v8 = vpack.c.bf16 %v761_v1, %v761_v1 }
 0x241   : > { %v510_v56 = vld [vmem:[#allocation2 + $0x8] sm:$0xfe]  ;;  %v557_v2 = vshll.u32 %v516_v53, 16  ;;  %v758_v31 = vld [vmem:[#allocation2] sm:$0xfc]  ;;  %v791_v37 = vrot.slane %v764_v35, 1 }
 0x242   : > { %v1327_v59 = vld [vmem:[#allocation2 + $0x10] sm:$0xff]  ;;  %v759_v3 = vld [vmem:[#allocation2 + $0x8] sm:$0xfc]  ;;  %v547_v16 = vrot.slane %v545_v6, 1  ;;  %v794_v22 = vrot.slane %v765_v8, 1 }
 0x243   : > { %v488_v58 = vld [vmem:[#allocation2 + $0x18] sm:$0xff]  ;;  %v489_v62 = vpack.c.bf16 %v1327_v59, %v485_v55  ;;  %v513_v0 = vpack.c.bf16 %v1327_v59, %v509_v60  ;;  %v559_v13 = vrot.slane %v557_v2, 1  ;;  %v762_v33 = vpack.c.bf16 %v1327_v59, %v758_v31 }
 0x244   : > { %v490_v61 = vpack.c.bf16 %v488_v58, %v486_v54  ;;  %v514_v63 = vpack.c.bf16 %v488_v58, %v510_v56  ;;  %v763_v7 = vpack.c.bf16 %v488_v58, %v759_v3 }
 0x245   : > { %v540_v5 = vshll.u32 %v513_v0, 16  ;;  %v538_v11 = vshrl.u32 %v513_v0, 16  ;;  %v790_v36 = vrot.slane %v762_v33, 1 }
 0x246   : > { %1028 = vmatprep.mubr.msk.bf16.mxu1 %vm271_vm3, %v490_v61  ;;  %v552_v4 = vshll.u32 %v514_v63, 16  ;;  %v550_v9 = vshrl.u32 %v514_v63, 16  ;;  %v793_v17 = vrot.slane %v763_v7, 1 }
 0x247   : > { %750 = vmatmul.mubr.bf16.vlgmr.msra.gmra.mrb[4].mxu1 %v489_v62  ;;  %v542_v12 = vrot.slane %v540_v5, 1  ;;  %v792_v38 = vsel %vm789_vm11, %v790_v36, %v791_v37 }
 0x248   : > { %v554_v10 = vrot.slane %v552_v4, 1  ;;  %v795_v23 = vsel %vm789_vm11, %v793_v17, %v794_v22 }
 0x249   : > { %v543_v15 = vor.u32 %v542_v12, %v538_v11 }
 0x24a   : > { %v555_v14 = vor.u32 %v554_v10, %v550_v9 }
 0x24b   : > { %v548_v21 = vsel %vm536_vm10, %v543_v15, %v547_v16 }
 0x24c   : > { %v560_v20 = vsel %vm536_vm10, %v555_v14, %v559_v13 }
 0x24d   : > { %1018 = vmatprep.mubr.msk.bf16.mxu0 %vm271_vm3, %v560_v20 }
 0x24e   : > { %652 = vmatmul.mubr.bf16.vlgmr.msra.gmra.mrb[0].mxu0 %v548_v21 }
 0x24f   : > { %855 = vmatpush1.bf16.msra.mxu0 %v1144_v18  ;;  %1056 = vmatprep.mubr.msk.bf16.mxu0 %vm271_vm3, %v795_v23 }
 0x250   : > { %856 = vmatprep.subr.bf16.mxu0 %v1161_v19 }
 0x253   : > { %857 = vmatpush1.bf16.msra.mxu0 %v1145_v24 }
 0x254   : > { %858 = vmatprep.subr.bf16.mxu0 %v1161_v19 }
 0x257   : > { %859 = vmatpush1.bf16.msra.mxu0 %v1146_v25 }
 0x258   : > { %860 = vmatprep.subr.bf16.mxu0 %v1161_v19 }
 0x25b   : > { %861 = vmatpush1.bf16.msra.mxu0 %v1147_v26 }
 0x25c   : > { %862 = vmatprep.subr.bf16.mxu0 %v1161_v19 }
 0x25f   : > { %863 = vmatpush1.bf16.msra.mxu0 %v1148_v27 }
 0x260   : > { %864 = vmatprep.subr.bf16.mxu0 %v1161_v19 }
 0x263   : > { %865 = vmatpush1.bf16.msra.mxu0 %v1149_v28 }
 0x264   : > { %866 = vmatprep.subr.bf16.mxu0 %v1161_v19 }
 0x267   : > { %867 = vmatpush1.bf16.msra.mxu0 %v1150_v29 }
 0x268   : > { %868 = vmatprep.subr.bf16.mxu0 %v1161_v19 }
 0x26b   : > { %869 = vmatpush1.bf16.msra.mxu0 %v1151_v30 }
 0x26c   : > { %870 = vmatprep.subr.bf16.mxu0 %v1161_v19  ;;  %v1057_v19 = vld [vmem:[%s1388_s5] ss:$0 sm:$0xff] }
 0x26f   : > { %871 = vmatpush1.bf16.msra.mxu0 %v1152_v34 }
 0x272   : > { %887 = vmatmul.mubr.bf16.vlgmr.msra.gmra.mrb[4].mxu0 %v792_v38 }
 0x31a   : > { %v751_v39 = vpop.f32.mrb[4].mxu1 }
 0x31b   : > { %v753_v40 = vpop.f32.mrb[5].mxu1 }
 0x31c   : > { %v754_v41 = vpop.f32.mrb[6].mxu1 }
 0x31d   : > { %v756_v42 = vpop.f32.mrb[7].mxu1 }
 0x321   : > { %v653_v43 = vpop.f32.mrb[0].mxu0 }
 0x322   : > { %v752_v44 = vadd.f32 %v751_v39, %v653_v43  ;;  %v655_v45 = vpop.f32.mrb[1].mxu0 }
 0x323   : > { %v656_v46 = vpop.f32.mrb[2].mxu0 }
 0x324   : > { %v755_v47 = vadd.f32 %v754_v41, %v656_v46  ;;  %v658_v48 = vpop.f32.mrb[3].mxu0 }
 0x345   : > { %v888_v49 = vpop.f32.mrb[4].mxu0 }
 0x346   : > { %v895_v50 = vadd.f32 %v888_v49, %v752_v44  ;;  %v890_v51 = vpop.f32.mrb[5].mxu0 }
 0x347   : > { %v891_v52 = vpop.f32.mrb[6].mxu0 }
 0x348   : > { %v904_v53 = vadd.f32 %v1057_v19, %v895_v50  ;;  %v896_v54 = vadd.f32 %v891_v52, %v755_v47  ;;  %v893_v55 = vpop.f32.mrb[7].mxu0 }
 0x34a   : > { %v906_v56 = vmax.f32 %v904_v53, 0.0  ;;  %v905_v57 = vadd.f32 %v1057_v19, %v896_v54 }
 0x34c   : > { %908 = vst [vmem:[%s268_s24] sm:$0xff] %v906_v56  ;;  %v907_v58 = vmax.f32 %v905_v57, 0.0 }
 0x34e   : > { %909 = vst [vmem:[%s268_s24 + $0x8] sm:$0xff] %v907_v58 }
 0x34f PF: > { %s16_s21 = sadd.s32 1, %s1159_s21  }
 0x350   : > { %p13_p4 = scmp.ge.s32.totalorder %s16_s21, 4  }
 0x352   :  { %15 = sbr.rel (!%p13_p4) target bundleno = 1 (0x1), region = 79 }

</bundles_post_ra>
